<compile_context>
chip_gen: v7x
topology: tpu7x:2x2x1
jax: 0.10.0
libtpu: 0.0.40
codegen_flags: <defaults>
</compile_context>

<pallas_src>
import functools

import jax
import jax.numpy as jnp
from jax.experimental import pallas as pl
from jax.experimental.pallas import tpu as pltpu


def _resblock_kernel(xpad_ref, mask_ref, w1_ref, b1_ref, w2_ref, b2_ref,
                     o_ref, slab_ref, hpad_ref, *, H, W, C, res_scale):
    """One image per grid step.

    xpad_ref : (1, Hp*Wp, C)  flat zero-padded input (NHWC, spatial flattened)
    mask_ref : (M, 1)         1.0 where the padded-width column is a real
                              output pixel (x < W), 0.0 for the 2 garbage cols
    w*_ref   : (9*C, C)       conv weights, rows ordered (dy, dx, c_in)
    b*_ref   : (1, C)
    o_ref    : (1, M, C)      conv result in padded-width layout:
                              row i -> pixel (i // Wp, i % Wp), cols x < W valid
    slab_ref : (M, 9*C)       im2col scratch (VMEM)
    hpad_ref : (Hp*Wp, C)     flat zero-padded hidden activations (VMEM)
    """
    Wp = W + 2
    M = H * Wp - 2  # number of padded-width output rows

    def im2col(read_patch):
        # 9 contiguous row-slices of a flat padded buffer -> (M, 9*C) slab.
        for tap in range(9):
            dy, dx = divmod(tap, 3)
            slab_ref[:, tap * C:(tap + 1) * C] = read_patch(dy * Wp + dx)

    # ---- conv1 + bias + ReLU: single MXU matmul with K = 9*C ----------------
    im2col(lambda off: xpad_ref[0, pl.ds(off, M), :])
    h = jnp.dot(slab_ref[...], w1_ref[...], preferred_element_type=jnp.float32)
    h = jnp.maximum(h + b1_ref[0, :], 0.0)

    # ---- store hidden activations into the padded scratch -------------------
    # Garbage columns (x in {W, W+1}) map onto border positions of hpad, so
    # masking them to zero restores conv2's zero padding.  Only the small
    # leading/trailing border regions need explicit zeroing.
    h = h * mask_ref[...]
    hpad_ref[pl.ds(0, Wp + 1), :] = jnp.zeros((Wp + 1, C), jnp.float32)
    hpad_ref[pl.ds(Wp + 1, M), :] = h
    hpad_ref[pl.ds(Wp + 1 + M, Wp + 1), :] = jnp.zeros((Wp + 1, C), jnp.float32)

    # ---- conv2 + bias --------------------------------------------------------
    im2col(lambda off: hpad_ref[pl.ds(off, M), :])
    out = jnp.dot(slab_ref[...], w2_ref[...], preferred_element_type=jnp.float32)
    out = out + b2_ref[0, :]

    # ---- residual add: identity = interior of the padded input (contiguous) -
    identity = xpad_ref[0, pl.ds(Wp + 1, M), :]
    o_ref[0] = identity + res_scale * out


def residual_block_no_bn(x_nchw, w1, b1, w2, b2, res_scale=1.0):
    """x_nchw: (N, C, H, W) f32;  w*: (C, C, 3, 3) OIHW;  b*: (C,)."""
    N, C, H, W = x_nchw.shape
    Hp, Wp = H + 2, W + 2
    M = H * Wp - 2

    # NHWC, zero-pad spatially by 1, flatten spatial -> (N, Hp*Wp, C).
    x_nhwc = jnp.transpose(x_nchw, (0, 2, 3, 1)).astype(jnp.float32)
    xpad = jnp.pad(x_nhwc, ((0, 0), (1, 1), (1, 1), (0, 0)))
    xpad_flat = xpad.reshape(N, Hp * Wp, C)

    # (C_out, C_in, kh, kw) -> (kh*kw*C_in, C_out): one matmul RHS per conv.
    def reshape_w(w):
        return jnp.transpose(w, (2, 3, 1, 0)).reshape(9 * C, C).astype(jnp.float32)

    w1r, w2r = reshape_w(w1), reshape_w(w2)
    b1r = b1.reshape(1, C).astype(jnp.float32)
    b2r = b2.reshape(1, C).astype(jnp.float32)

    # 1.0 for padded-width rows that are real output pixels (x < W).
    col = jnp.arange(M, dtype=jnp.int32) % Wp
    mask = (col < W).astype(jnp.float32).reshape(M, 1)

    kernel = functools.partial(_resblock_kernel, H=H, W=W, C=C,
                               res_scale=float(res_scale))

    out_flat = pl.pallas_call(
        kernel,
        out_shape=jax.ShapeDtypeStruct((N, M, C), jnp.float32),
        grid_spec=pltpu.PrefetchScalarGridSpec(
            num_scalar_prefetch=0,
            grid=(N,),
            in_specs=[
                pl.BlockSpec((1, Hp * Wp, C), lambda n: (n, 0, 0)),
                pl.BlockSpec((M, 1), lambda n: (0, 0)),
                pl.BlockSpec((9 * C, C), lambda n: (0, 0)),
                pl.BlockSpec((1, C), lambda n: (0, 0)),
                pl.BlockSpec((9 * C, C), lambda n: (0, 0)),
                pl.BlockSpec((1, C), lambda n: (0, 0)),
            ],
            out_specs=pl.BlockSpec((1, M, C), lambda n: (n, 0, 0)),
            scratch_shapes=[
                pltpu.VMEM((M, 9 * C), jnp.float32),    # im2col slab
                pltpu.VMEM((Hp * Wp, C), jnp.float32),  # padded hidden acts
            ],
        ),
        compiler_params=pltpu.CompilerParams(
            dimension_semantics=("parallel",)),
    )(xpad_flat, mask, w1r, b1r, w2r, b2r)

    # padded-width layout -> NHWC (drop the 2 garbage columns) -> NCHW.
    out_full = jnp.pad(out_flat, ((0, 0), (0, 2), (0, 0)))       # (N, H*Wp, C)
    out_nhwc = out_full.reshape(N, H, Wp, C)[:, :, :W, :]
    return jnp.transpose(out_nhwc, (0, 3, 1, 2))


if __name__ == "__main__":
    key = jax.random.PRNGKey(0)
    k_x, k_w1, k_w2, k_b1, k_b2 = jax.random.split(key, 5)

    N, C, H, W = 2, 32, 16, 16          # small synthetic mid_channels = 32
    res_scale = 1.0

    x = jax.random.normal(k_x, (N, C, H, W), jnp.float32)
    # ESRGAN-style init: kaiming-like normal scaled by 0.1; small random bias
    # to exercise the bias path.
    fan_in = C * 3 * 3
    std = 0.1 * (2.0 / fan_in) ** 0.5
    w1 = std * jax.random.normal(k_w1, (C, C, 3, 3), jnp.float32)
    w2 = std * jax.random.normal(k_w2, (C, C, 3, 3), jnp.float32)
    b1 = 0.1 * jax.random.normal(k_b1, (C,), jnp.float32)
    b2 = 0.1 * jax.random.normal(k_b2, (C,), jnp.float32)

    out = residual_block_no_bn(x, w1, b1, w2, b2, res_scale)
    out = jax.block_until_ready(out)

    # pure-JAX reference (same NCHW semantics as the PyTorch module)
    def ref(xr):
        h = jax.lax.conv_general_dilated(
            xr, w1, (1, 1), ((1, 1), (1, 1)),
            dimension_numbers=("NCHW", "OIHW", "NCHW"))
        h = jnp.maximum(h + b1[None, :, None, None], 0.0)
        o = jax.lax.conv_general_dilated(
            h, w2, (1, 1), ((1, 1), (1, 1)),
            dimension_numbers=("NCHW", "OIHW", "NCHW"))
        o = o + b2[None, :, None, None]
        return xr + res_scale * o

    expected = ref(x)
    err = float(jnp.max(jnp.abs(out - expected)))
    assert jnp.allclose(out, expected, atol=1e-3, rtol=1e-3), err
    print("KERNEL_OK")
</pallas_src>

<mosaic_0001>
module attributes {stable_mosaic.version = 11 : i64} {
  func.func @_resblock_kernel(%arg0: i32, %arg1: memref<1x324x32xf32, #tpu.memory_space<vmem>>, %arg2: memref<286x1xf32, #tpu.memory_space<vmem>>, %arg3: memref<288x32xf32, #tpu.memory_space<vmem>>, %arg4: memref<1x32xf32, #tpu.memory_space<vmem>>, %arg5: memref<288x32xf32, #tpu.memory_space<vmem>>, %arg6: memref<1x32xf32, #tpu.memory_space<vmem>>, %arg7: memref<1x286x32xf32, #tpu.memory_space<vmem>>, %arg8: memref<286x288xf32, #tpu.memory_space<vmem>>, %arg9: memref<324x32xf32, #tpu.memory_space<vmem>>) attributes {dimension_semantics = [#tpu.dimension_semantics<parallel>], iteration_bounds = array<i64: 2>, scalar_prefetch = 0 : i64, scratch_operands = 2 : i64, tpu.core_type = #tpu.core_type<tc>, window_params = [{transform_indices = @transform_0, window_bounds = array<i64: 1, 324, 32>}, {pipeline_mode = #tpu.pipeline_mode<synchronous>, transform_indices = @transform_1, window_bounds = array<i64: 286, 1>}, {pipeline_mode = #tpu.pipeline_mode<synchronous>, transform_indices = @transform_2, window_bounds = array<i64: 288, 32>}, {pipeline_mode = #tpu.pipeline_mode<synchronous>, transform_indices = @transform_3, window_bounds = array<i64: 1, 32>}, {pipeline_mode = #tpu.pipeline_mode<synchronous>, transform_indices = @transform_4, window_bounds = array<i64: 288, 32>}, {pipeline_mode = #tpu.pipeline_mode<synchronous>, transform_indices = @transform_5, window_bounds = array<i64: 1, 32>}, {transform_indices = @transform_6, window_bounds = array<i64: 1, 286, 32>}]} {
    %c0 = arith.constant 0 : index
    %c0_0 = arith.constant 0 : index
    %c0_1 = arith.constant 0 : index
    %0 = vector.load %arg1[%c0, %c0_0, %c0_1] : memref<1x324x32xf32, #tpu.memory_space<vmem>>, vector<1x286x32xf32>
    %1 = vector.shape_cast %0 : vector<1x286x32xf32> to vector<286x32xf32>
    %c0_2 = arith.constant 0 : index
    %c0_3 = arith.constant 0 : index
    %2 = vector.load %arg8[%c0_2, %c0_3] : memref<286x288xf32, #tpu.memory_space<vmem>>, vector<286x32xf32>
    tpu.vector_store %arg8[%c0_2, %c0_3], %1 {strides = array<i32>} : memref<286x288xf32, #tpu.memory_space<vmem>>, vector<286x32xf32>,
    %c0_4 = arith.constant 0 : index
    %c1 = arith.constant 1 : index
    %c0_5 = arith.constant 0 : index
    %3 = vector.load %arg1[%c0_4, %c1, %c0_5] : memref<1x324x32xf32, #tpu.memory_space<vmem>>, vector<1x286x32xf32>
    %4 = vector.shape_cast %3 : vector<1x286x32xf32> to vector<286x32xf32>
    %c0_6 = arith.constant 0 : index
    %c32 = arith.constant 32 : index
    %5 = vector.load %arg8[%c0_6, %c32] : memref<286x288xf32, #tpu.memory_space<vmem>>, vector<286x32xf32>
    tpu.vector_store %arg8[%c0_6, %c32], %4 {strides = array<i32>} : memref<286x288xf32, #tpu.memory_space<vmem>>, vector<286x32xf32>,
    %c0_7 = arith.constant 0 : index
    %c2 = arith.constant 2 : index
    %c0_8 = arith.constant 0 : index
    %6 = vector.load %arg1[%c0_7, %c2, %c0_8] : memref<1x324x32xf32, #tpu.memory_space<vmem>>, vector<1x286x32xf32>
    %7 = vector.shape_cast %6 : vector<1x286x32xf32> to vector<286x32xf32>
    %c0_9 = arith.constant 0 : index
    %c64 = arith.constant 64 : index
    %8 = vector.load %arg8[%c0_9, %c64] : memref<286x288xf32, #tpu.memory_space<vmem>>, vector<286x32xf32>
    tpu.vector_store %arg8[%c0_9, %c64], %7 {strides = array<i32>} : memref<286x288xf32, #tpu.memory_space<vmem>>, vector<286x32xf32>,
    %c0_10 = arith.constant 0 : index
    %c18 = arith.constant 18 : index
    %c0_11 = arith.constant 0 : index
    %9 = vector.load %arg1[%c0_10, %c18, %c0_11] : memref<1x324x32xf32, #tpu.memory_space<vmem>>, vector<1x286x32xf32>
    %10 = vector.shape_cast %9 : vector<1x286x32xf32> to vector<286x32xf32>
    %c0_12 = arith.constant 0 : index
    %c96 = arith.constant 96 : index
    %11 = vector.load %arg8[%c0_12, %c96] : memref<286x288xf32, #tpu.memory_space<vmem>>, vector<286x32xf32>
    tpu.vector_store %arg8[%c0_12, %c96], %10 {strides = array<i32>} : memref<286x288xf32, #tpu.memory_space<vmem>>, vector<286x32xf32>,
    %c0_13 = arith.constant 0 : index
    %c19 = arith.constant 19 : index
    %c0_14 = arith.constant 0 : index
    %12 = vector.load %arg1[%c0_13, %c19, %c0_14] : memref<1x324x32xf32, #tpu.memory_space<vmem>>, vector<1x286x32xf32>
    %13 = vector.shape_cast %12 : vector<1x286x32xf32> to vector<286x32xf32>
    %c0_15 = arith.constant 0 : index
    %c128 = arith.constant 128 : index
    %14 = vector.load %arg8[%c0_15, %c128] : memref<286x288xf32, #tpu.memory_space<vmem>>, vector<286x32xf32>
    tpu.vector_store %arg8[%c0_15, %c128], %13 {strides = array<i32>} : memref<286x288xf32, #tpu.memory_space<vmem>>, vector<286x32xf32>,
    %c0_16 = arith.constant 0 : index
    %c20 = arith.constant 20 : index
    %c0_17 = arith.constant 0 : index
    %15 = vector.load %arg1[%c0_16, %c20, %c0_17] : memref<1x324x32xf32, #tpu.memory_space<vmem>>, vector<1x286x32xf32>
    %16 = vector.shape_cast %15 : vector<1x286x32xf32> to vector<286x32xf32>
    %c0_18 = arith.constant 0 : index
    %c160 = arith.constant 160 : index
    %17 = vector.load %arg8[%c0_18, %c160] : memref<286x288xf32, #tpu.memory_space<vmem>>, vector<286x32xf32>
    tpu.vector_store %arg8[%c0_18, %c160], %16 {strides = array<i32>} : memref<286x288xf32, #tpu.memory_space<vmem>>, vector<286x32xf32>,
    %c0_19 = arith.constant 0 : index
    %c36 = arith.constant 36 : index
    %c0_20 = arith.constant 0 : index
    %18 = vector.load %arg1[%c0_19, %c36, %c0_20] : memref<1x324x32xf32, #tpu.memory_space<vmem>>, vector<1x286x32xf32>
    %19 = vector.shape_cast %18 : vector<1x286x32xf32> to vector<286x32xf32>
    %c0_21 = arith.constant 0 : index
    %c192 = arith.constant 192 : index
    %20 = vector.load %arg8[%c0_21, %c192] : memref<286x288xf32, #tpu.memory_space<vmem>>, vector<286x32xf32>
    tpu.vector_store %arg8[%c0_21, %c192], %19 {strides = array<i32>} : memref<286x288xf32, #tpu.memory_space<vmem>>, vector<286x32xf32>,
    %c0_22 = arith.constant 0 : index
    %c37 = arith.constant 37 : index
    %c0_23 = arith.constant 0 : index
    %21 = vector.load %arg1[%c0_22, %c37, %c0_23] : memref<1x324x32xf32, #tpu.memory_space<vmem>>, vector<1x286x32xf32>
    %22 = vector.shape_cast %21 : vector<1x286x32xf32> to vector<286x32xf32>
    %c0_24 = arith.constant 0 : index
    %c224 = arith.constant 224 : index
    %23 = vector.load %arg8[%c0_24, %c224] : memref<286x288xf32, #tpu.memory_space<vmem>>, vector<286x32xf32>
    tpu.vector_store %arg8[%c0_24, %c224], %22 {strides = array<i32>} : memref<286x288xf32, #tpu.memory_space<vmem>>, vector<286x32xf32>,
    %c0_25 = arith.constant 0 : index
    %c38 = arith.constant 38 : index
    %c0_26 = arith.constant 0 : index
    %24 = vector.load %arg1[%c0_25, %c38, %c0_26] : memref<1x324x32xf32, #tpu.memory_space<vmem>>, vector<1x286x32xf32>
    %25 = vector.shape_cast %24 : vector<1x286x32xf32> to vector<286x32xf32>
    %c0_27 = arith.constant 0 : index
    %c256 = arith.constant 256 : index
    %26 = vector.load %arg8[%c0_27, %c256] : memref<286x288xf32, #tpu.memory_space<vmem>>, vector<286x32xf32>
    tpu.vector_store %arg8[%c0_27, %c256], %25 {strides = array<i32>} : memref<286x288xf32, #tpu.memory_space<vmem>>, vector<286x32xf32>,
    %c0_28 = arith.constant 0 : index
    %c0_29 = arith.constant 0 : index
    %27 = vector.load %arg8[%c0_28, %c0_29] : memref<286x288xf32, #tpu.memory_space<vmem>>, vector<286x288xf32>
    %c0_30 = arith.constant 0 : index
    %c0_31 = arith.constant 0 : index
    %28 = vector.load %arg3[%c0_30, %c0_31] : memref<288x32xf32, #tpu.memory_space<vmem>>, vector<288x32xf32>
    %cst = arith.constant dense<0.000000e+00> : vector<286x32xf32>
    %29 = tpu.matmul %27, %28, %cst {dimension_numbers = #tpu.dot_dimension_numbers<[1], [0], [0], [1], [0, 0, 1, 1], [], []>} : vector<286x288xf32>, vector<288x32xf32>, vector<286x32xf32> -> vector<286x32xf32>
    %c0_32 = arith.constant 0 : index
    %c0_33 = arith.constant 0 : index
    %30 = vector.load %arg4[%c0_32, %c0_33] : memref<1x32xf32, #tpu.memory_space<vmem>>, vector<1x32xf32>
    %31 = vector.shape_cast %30 : vector<1x32xf32> to vector<32xf32>
    %32 = vector.shape_cast %31 : vector<32xf32> to vector<1x32xf32>
    %33 = vector.broadcast %32 : vector<1x32xf32> to vector<286x32xf32>
    %34 = arith.addf %29, %33 : vector<286x32xf32>
    %cst_34 = arith.constant 0.000000e+00 : f32
    %35 = vector.broadcast %cst_34 : f32 to vector<286x32xf32>
    %36 = arith.maximumf %34, %35 : vector<286x32xf32>
    %c0_35 = arith.constant 0 : index
    %c0_36 = arith.constant 0 : index
    %37 = vector.load %arg2[%c0_35, %c0_36] : memref<286x1xf32, #tpu.memory_space<vmem>>, vector<286x1xf32>
    %38 = vector.broadcast %37 : vector<286x1xf32> to vector<286x32xf32>
    %39 = arith.mulf %36, %38 : vector<286x32xf32>
    %cst_37 = arith.constant 0.000000e+00 : f32
    %40 = vector.broadcast %cst_37 : f32 to vector<19x32xf32>
    %c0_38 = arith.constant 0 : index
    %c0_39 = arith.constant 0 : index
    %41 = vector.load %arg9[%c0_38, %c0_39] : memref<324x32xf32, #tpu.memory_space<vmem>>, vector<19x32xf32>
    tpu.vector_store %arg9[%c0_38, %c0_39], %40 {strides = array<i32>} : memref<324x32xf32, #tpu.memory_space<vmem>>, vector<19x32xf32>,
    %c19_40 = arith.constant 19 : index
    %c0_41 = arith.constant 0 : index
    %42 = vector.load %arg9[%c19_40, %c0_41] : memref<324x32xf32, #tpu.memory_space<vmem>>, vector<286x32xf32>
    tpu.vector_store %arg9[%c19_40, %c0_41], %39 {strides = array<i32>} : memref<324x32xf32, #tpu.memory_space<vmem>>, vector<286x32xf32>,
    %cst_42 = arith.constant 0.000000e+00 : f32
    %43 = vector.broadcast %cst_42 : f32 to vector<19x32xf32>
    %c305 = arith.constant 305 : index
    %c0_43 = arith.constant 0 : index
    %44 = vector.load %arg9[%c305, %c0_43] : memref<324x32xf32, #tpu.memory_space<vmem>>, vector<19x32xf32>
    tpu.vector_store %arg9[%c305, %c0_43], %43 {strides = array<i32>} : memref<324x32xf32, #tpu.memory_space<vmem>>, vector<19x32xf32>,
    %c0_44 = arith.constant 0 : index
    %c0_45 = arith.constant 0 : index
    %45 = vector.load %arg9[%c0_44, %c0_45] : memref<324x32xf32, #tpu.memory_space<vmem>>, vector<286x32xf32>
    %c0_46 = arith.constant 0 : index
    %c0_47 = arith.constant 0 : index
    %46 = vector.load %arg8[%c0_46, %c0_47] : memref<286x288xf32, #tpu.memory_space<vmem>>, vector<286x32xf32>
    tpu.vector_store %arg8[%c0_46, %c0_47], %45 {strides = array<i32>} : memref<286x288xf32, #tpu.memory_space<vmem>>, vector<286x32xf32>,
    %c1_48 = arith.constant 1 : index
    %c0_49 = arith.constant 0 : index
    %47 = vector.load %arg9[%c1_48, %c0_49] : memref<324x32xf32, #tpu.memory_space<vmem>>, vector<286x32xf32>
    %c0_50 = arith.constant 0 : index
    %c32_51 = arith.constant 32 : index
    %48 = vector.load %arg8[%c0_50, %c32_51] : memref<286x288xf32, #tpu.memory_space<vmem>>, vector<286x32xf32>
    tpu.vector_store %arg8[%c0_50, %c32_51], %47 {strides = array<i32>} : memref<286x288xf32, #tpu.memory_space<vmem>>, vector<286x32xf32>,
    %c2_52 = arith.constant 2 : index
    %c0_53 = arith.constant 0 : index
    %49 = vector.load %arg9[%c2_52, %c0_53] : memref<324x32xf32, #tpu.memory_space<vmem>>, vector<286x32xf32>
    %c0_54 = arith.constant 0 : index
    %c64_55 = arith.constant 64 : index
    %50 = vector.load %arg8[%c0_54, %c64_55] : memref<286x288xf32, #tpu.memory_space<vmem>>, vector<286x32xf32>
    tpu.vector_store %arg8[%c0_54, %c64_55], %49 {strides = array<i32>} : memref<286x288xf32, #tpu.memory_space<vmem>>, vector<286x32xf32>,
    %c18_56 = arith.constant 18 : index
    %c0_57 = arith.constant 0 : index
    %51 = vector.load %arg9[%c18_56, %c0_57] : memref<324x32xf32, #tpu.memory_space<vmem>>, vector<286x32xf32>
    %c0_58 = arith.constant 0 : index
    %c96_59 = arith.constant 96 : index
    %52 = vector.load %arg8[%c0_58, %c96_59] : memref<286x288xf32, #tpu.memory_space<vmem>>, vector<286x32xf32>
    tpu.vector_store %arg8[%c0_58, %c96_59], %51 {strides = array<i32>} : memref<286x288xf32, #tpu.memory_space<vmem>>, vector<286x32xf32>,
    %c19_60 = arith.constant 19 : index
    %c0_61 = arith.constant 0 : index
    %53 = vector.load %arg9[%c19_60, %c0_61] : memref<324x32xf32, #tpu.memory_space<vmem>>, vector<286x32xf32>
    %c0_62 = arith.constant 0 : index
    %c128_63 = arith.constant 128 : index
    %54 = vector.load %arg8[%c0_62, %c128_63] : memref<286x288xf32, #tpu.memory_space<vmem>>, vector<286x32xf32>
    tpu.vector_store %arg8[%c0_62, %c128_63], %53 {strides = array<i32>} : memref<286x288xf32, #tpu.memory_space<vmem>>, vector<286x32xf32>,
    %c20_64 = arith.constant 20 : index
    %c0_65 = arith.constant 0 : index
    %55 = vector.load %arg9[%c20_64, %c0_65] : memref<324x32xf32, #tpu.memory_space<vmem>>, vector<286x32xf32>
    %c0_66 = arith.constant 0 : index
    %c160_67 = arith.constant 160 : index
    %56 = vector.load %arg8[%c0_66, %c160_67] : memref<286x288xf32, #tpu.memory_space<vmem>>, vector<286x32xf32>
    tpu.vector_store %arg8[%c0_66, %c160_67], %55 {strides = array<i32>} : memref<286x288xf32, #tpu.memory_space<vmem>>, vector<286x32xf32>,
    %c36_68 = arith.constant 36 : index
    %c0_69 = arith.constant 0 : index
    %57 = vector.load %arg9[%c36_68, %c0_69] : memref<324x32xf32, #tpu.memory_space<vmem>>, vector<286x32xf32>
    %c0_70 = arith.constant 0 : index
    %c192_71 = arith.constant 192 : index
    %58 = vector.load %arg8[%c0_70, %c192_71] : memref<286x288xf32, #tpu.memory_space<vmem>>, vector<286x32xf32>
    tpu.vector_store %arg8[%c0_70, %c192_71], %57 {strides = array<i32>} : memref<286x288xf32, #tpu.memory_space<vmem>>, vector<286x32xf32>,
    %c37_72 = arith.constant 37 : index
    %c0_73 = arith.constant 0 : index
    %59 = vector.load %arg9[%c37_72, %c0_73] : memref<324x32xf32, #tpu.memory_space<vmem>>, vector<286x32xf32>
    %c0_74 = arith.constant 0 : index
    %c224_75 = arith.constant 224 : index
    %60 = vector.load %arg8[%c0_74, %c224_75] : memref<286x288xf32, #tpu.memory_space<vmem>>, vector<286x32xf32>
    tpu.vector_store %arg8[%c0_74, %c224_75], %59 {strides = array<i32>} : memref<286x288xf32, #tpu.memory_space<vmem>>, vector<286x32xf32>,
    %c38_76 = arith.constant 38 : index
    %c0_77 = arith.constant 0 : index
    %61 = vector.load %arg9[%c38_76, %c0_77] : memref<324x32xf32, #tpu.memory_space<vmem>>, vector<286x32xf32>
    %c0_78 = arith.constant 0 : index
    %c256_79 = arith.constant 256 : index
    %62 = vector.load %arg8[%c0_78, %c256_79] : memref<286x288xf32, #tpu.memory_space<vmem>>, vector<286x32xf32>
    tpu.vector_store %arg8[%c0_78, %c256_79], %61 {strides = array<i32>} : memref<286x288xf32, #tpu.memory_space<vmem>>, vector<286x32xf32>,
    %c0_80 = arith.constant 0 : index
    %c0_81 = arith.constant 0 : index
    %63 = vector.load %arg8[%c0_80, %c0_81] : memref<286x288xf32, #tpu.memory_space<vmem>>, vector<286x288xf32>
    %c0_82 = arith.constant 0 : index
    %c0_83 = arith.constant 0 : index
    %64 = vector.load %arg5[%c0_82, %c0_83] : memref<288x32xf32, #tpu.memory_space<vmem>>, vector<288x32xf32>
    %cst_84 = arith.constant dense<0.000000e+00> : vector<286x32xf32>
    %65 = tpu.matmul %63, %64, %cst_84 {dimension_numbers = #tpu.dot_dimension_numbers<[1], [0], [0], [1], [0, 0, 1, 1], [], []>} : vector<286x288xf32>, vector<288x32xf32>, vector<286x32xf32> -> vector<286x32xf32>
    %c0_85 = arith.constant 0 : index
    %c0_86 = arith.constant 0 : index
    %66 = vector.load %arg6[%c0_85, %c0_86] : memref<1x32xf32, #tpu.memory_space<vmem>>, vector<1x32xf32>
    %67 = vector.shape_cast %66 : vector<1x32xf32> to vector<32xf32>
    %68 = vector.shape_cast %67 : vector<32xf32> to vector<1x32xf32>
    %69 = vector.broadcast %68 : vector<1x32xf32> to vector<286x32xf32>
    %70 = arith.addf %65, %69 : vector<286x32xf32>
    %c0_87 = arith.constant 0 : index
    %c19_88 = arith.constant 19 : index
    %c0_89 = arith.constant 0 : index
    %71 = vector.load %arg1[%c0_87, %c19_88, %c0_89] : memref<1x324x32xf32, #tpu.memory_space<vmem>>, vector<1x286x32xf32>
    %72 = vector.shape_cast %71 : vector<1x286x32xf32> to vector<286x32xf32>
    %cst_90 = arith.constant 1.000000e+00 : f32
    %73 = vector.broadcast %cst_90 : f32 to vector<286x32xf32>
    %74 = arith.mulf %73, %70 : vector<286x32xf32>
    %75 = arith.addf %72, %74 : vector<286x32xf32>
    %c0_91 = arith.constant 0 : index
    %c0_92 = arith.constant 0 : index
    %c0_93 = arith.constant 0 : index
    %76 = vector.load %arg7[%c0_91, %c0_92, %c0_93] : memref<1x286x32xf32, #tpu.memory_space<vmem>>, vector<1x286x32xf32>
    %77 = vector.shape_cast %76 : vector<1x286x32xf32> to vector<286x32xf32>
    %78 = vector.shape_cast %75 : vector<286x32xf32> to vector<1x286x32xf32>
    tpu.vector_store %arg7[%c0_91, %c0_92, %c0_93], %78 {strides = array<i32>} : memref<1x286x32xf32, #tpu.memory_space<vmem>>, vector<1x286x32xf32>,
    return
  }
  func.func @transform_0(%arg0: i32) -> (i32, i32, i32) {
    %c0_i32 = arith.constant 0 : i32
    %c0_i32_0 = arith.constant 0 : i32
    %c0_i32_1 = arith.constant 0 : i32
    return %arg0, %c0_i32, %c0_i32_0 : i32, i32, i32
  }
  func.func @transform_1(%arg0: i32) -> (i32, i32) {
    %c0_i32 = arith.constant 0 : i32
    %c0_i32_0 = arith.constant 0 : i32
    %c0_i32_1 = arith.constant 0 : i32
    return %c0_i32, %c0_i32_0 : i32, i32
  }
  func.func @transform_2(%arg0: i32) -> (i32, i32) {
    %c0_i32 = arith.constant 0 : i32
    %c0_i32_0 = arith.constant 0 : i32
    %c0_i32_1 = arith.constant 0 : i32
    return %c0_i32, %c0_i32_0 : i32, i32
  }
  func.func @transform_3(%arg0: i32) -> (i32, i32) {
    %c0_i32 = arith.constant 0 : i32
    %c0_i32_0 = arith.constant 0 : i32
    %c0_i32_1 = arith.constant 0 : i32
    return %c0_i32, %c0_i32_0 : i32, i32
  }
  func.func @transform_4(%arg0: i32) -> (i32, i32) {
    %c0_i32 = arith.constant 0 : i32
    %c0_i32_0 = arith.constant 0 : i32
    %c0_i32_1 = arith.constant 0 : i32
    return %c0_i32, %c0_i32_0 : i32, i32
  }
  func.func @transform_5(%arg0: i32) -> (i32, i32) {
    %c0_i32 = arith.constant 0 : i32
    %c0_i32_0 = arith.constant 0 : i32
    %c0_i32_1 = arith.constant 0 : i32
    return %c0_i32, %c0_i32_0 : i32, i32
  }
  func.func @transform_6(%arg0: i32) -> (i32, i32, i32) {
    %c0_i32 = arith.constant 0 : i32
    %c0_i32_0 = arith.constant 0 : i32
    %c0_i32_1 = arith.constant 0 : i32
    return %arg0, %c0_i32, %c0_i32_0 : i32, i32, i32
  }
}

</mosaic_0001>

<bundles_post_ra>
// kernel: tpu_custom_call.1
= control target key start
LH: loop header
LB: loop body
LE: loop exit
PB: predicated region body
PF: predicated region fallthrough
CT: control target
= control target key end

     0   :  { %s5748_s21 = smov 0   ;;  %s8328_s0 = inlined_call_operand.vmem [shape: f32[2,324,32], index: 0, kind: input, shape index: {}]   ;;  %s8329_s1 = inlined_call_operand.vmem [shape: f32[286,1], index: 1, kind: input, shape index: {}]   ;;  %s8330_s2 = inlined_call_operand.vmem [shape: f32[288,32], index: 2, kind: input, shape index: {}]   ;;  %s8331_s3 = inlined_call_operand.vmem [shape: f32[1,32], index: 3, kind: input, shape index: {}]   ;;  %s8332_s4 = inlined_call_operand.vmem [shape: f32[288,32], index: 4, kind: input, shape index: {}]   ;;  %s8333_s5 = inlined_call_operand.vmem [shape: f32[1,32], index: 5, kind: input, shape index: {}]   ;;  %s8334_s6 = inlined_call_operand.vmem [shape: f32[2,286,32], index: 6, kind: output, shape index: {}]  }
   0x1 LB: > { %s5276_s22 = sadd.s32 4294967295, %s5705_s21   ;;  %p5280_p0 = scmp.ge.s32.totalorder %s5705_s21, 1  ;;  %s5705_s21 = sphi %s5748_s21, %s16_s21  }
   0x2   : > { %p212_p1 = scmp.lt.s32.totalorder %s5705_s21, 3 }
   0x4   : > { %p213_p2 = pnand %p5280_p0, %p212_p1 }
   0x5   : > { %p242_p3 = scmp.lt.s32.totalorder (!%p213_p2), %s5276_s22, 1  ;;  %s5707_s27 = smov (!%p213_p2), 32   ;;  %vm288_vm0 = vcmask (!%p213_p2), 261120   ;;  %vm324_vm1 = vcmask (!%p213_p2), 259072   ;;  %vm506_vm2 = vcmask (!%p213_p2), 523520   ;;  %vm542_vm3 = vcmask (!%p213_p2), 521472  }
   0x6   : > { %216 = sbr.rel (%p213_p2) target bundleno = 1451 (0x5ab), region = 44  ;;  %s5708_s28 = smov (!%p213_p2), 64   ;;  %vm724_vm4 = vcmask (!%p213_p2), 785920   ;;  %vm760_vm5 = vcmask (!%p213_p2), 783872   ;;  %vm942_vm6 = vcmask (!%p213_p2), 1048320   ;;  %vm978_vm7 = vcmask (!%p213_p2), 1046272  }
   0x7   : > { %s5709_s29 = smov (!%p213_p2), 96   ;;  %vm2811_vm8 = vcmask (!%p213_p2), 256000  }
   0xd   : > { %s8336_s22 = smov (!%p242_p3, %s5276_s22), 1 }
   0xe   : > { %s5679_s23 = smul.u32 328, %s8336_s22 }
   0xf   : > { %s5680_s12 = smul.u32 288, %s8336_s22 }
  0x10   : > { %s5762_s26 = scalar_lea.vmem %s8328_s0, %s5679_s23 }
  0x11   : > { %v328_v0 = vld [vmem:[%s5762_s26 + $0x11] sm:$0xff]  ;;  %v326_v1 = vld [vmem:[%s5762_s26 + $0x1] sm:$0xff]  ;;  %v329_v2 = vld [vmem:[%s5762_s26 + $0x19] sm:$0xff]  ;;  %s7982_s14 = scalar_lea.vmem %s8334_s6, %s5680_s12 }
  0x12   : > { %402 = vrot.lane.b32.xlu1 %v328_v0, %s5707_s27  ;;  %398 = vrot.lane.b32.xlu0 %v326_v1, %s5707_s27  ;;  %v327_v3 = vld [vmem:[%s5762_s26 + $0x9] sm:$0xff]  ;;  %v330_v5 = vld [vmem:[%s5762_s26 + $0x21] sm:$0xff] }
  0x13   : > { %v331_v4 = vld [vmem:[%s5762_s26 + $0x29] sm:$0xff]  ;;  %v333_v6 = vld [vmem:[%s5762_s26 + $0x39] sm:$0xff]  ;;  %v332_v7 = vld [vmem:[%s5762_s26 + $0x31] sm:$0xff] }
  0x14   : > { %v335_v8 = vld [vmem:[%s5762_s26 + $0x49] sm:$0xff]  ;;  %v334_v9 = vld [vmem:[%s5762_s26 + $0x41] sm:$0xff]  ;;  %v337_v10 = vld [vmem:[%s5762_s26 + $0x59] sm:$0xff] }
  0x15   : > { %v336_v11 = vld [vmem:[%s5762_s26 + $0x51] sm:$0xff]  ;;  %v252_v12 = vld [vmem:[%s5762_s26] sm:$0xff]  ;;  %v339_v14 = vld [vmem:[%s5762_s26 + $0x69] sm:$0xff] }
  0x16   : > { %404 = vrot.lane.b32.xlu1 %v329_v2, %s5707_s27  ;;  %400 = vrot.lane.b32.xlu0 %v327_v3, %s5707_s27  ;;  %v254_v13 = vld [vmem:[%s5762_s26 + $0x10] sm:$0xff]  ;;  %v338_v15 = vld [vmem:[%s5762_s26 + $0x61] sm:$0xff]  ;;  %289 = vst.msk [vmem:[#allocation2] sm:$0xff] %vm288_vm0, %v252_v12 }
  0x17   : > { %291 = vst.msk [vmem:[#allocation2 + $0x30] sm:$0xff] %vm288_vm0, %v254_v13  ;;  %v253_v16 = vld [vmem:[%s5762_s26 + $0x8] sm:$0xff]  ;;  %v255_v17 = vld [vmem:[%s5762_s26 + $0x18] sm:$0xff]  ;;  %v256_v18 = vld [vmem:[%s5762_s26 + $0x20] sm:$0xff] }
  0x18   : > { %290 = vst.msk [vmem:[#allocation2 + $0x18] sm:$0xff] %vm288_vm0, %v253_v16  ;;  %292 = vst.msk [vmem:[#allocation2 + $0x48] sm:$0xff] %vm288_vm0, %v255_v17  ;;  %v257_v19 = vld [vmem:[%s5762_s26 + $0x28] sm:$0xff]  ;;  %v258_v20 = vld [vmem:[%s5762_s26 + $0x30] sm:$0xff] }
  0x19   : > { %293 = vst.msk [vmem:[#allocation2 + $0x60] sm:$0xff] %vm288_vm0, %v256_v18  ;;  %294 = vst.msk [vmem:[#allocation2 + $0x78] sm:$0xff] %vm288_vm0, %v257_v19  ;;  %v341_v21 = vld [vmem:[%s5762_s26 + $0x79] sm:$0xff]  ;;  %v340_v22 = vld [vmem:[%s5762_s26 + $0x71] sm:$0xff] }
  0x1a   : > { %408 = vrot.lane.b32.xlu1 %v331_v4, %s5707_s27  ;;  %406 = vrot.lane.b32.xlu0 %v330_v5, %s5707_s27  ;;  %295 = vst.msk [vmem:[#allocation2 + $0x90] sm:$0xff] %vm288_vm0, %v258_v20  ;;  %v259_v23 = vld [vmem:[%s5762_s26 + $0x38] sm:$0xff]  ;;  %v260_v24 = vld [vmem:[%s5762_s26 + $0x40] sm:$0xff] }
  0x1b   : > { %296 = vst.msk [vmem:[#allocation2 + $0xa8] sm:$0xff] %vm288_vm0, %v259_v23  ;;  %v261_v25 = vld [vmem:[%s5762_s26 + $0x48] sm:$0xff]  ;;  %297 = vst.msk [vmem:[#allocation2 + $0xc0] sm:$0xff] %vm288_vm0, %v260_v24  ;;  %v262_v26 = vld [vmem:[%s5762_s26 + $0x50] sm:$0xff] }
  0x1c   : > { %298 = vst.msk [vmem:[#allocation2 + $0xd8] sm:$0xff] %vm288_vm0, %v261_v25  ;;  %v263_v27 = vld [vmem:[%s5762_s26 + $0x58] sm:$0xff]  ;;  %v343_v28 = vld [vmem:[%s5762_s26 + $0x89] sm:$0xff]  ;;  %299 = vst.msk [vmem:[#allocation2 + $0xf0] sm:$0xff] %vm288_vm0, %v262_v26 }
  0x1d   : > { %300 = vst.msk [vmem:[#allocation2 + $0x108] sm:$0xff] %vm288_vm0, %v263_v27  ;;  %v342_v29 = vld [vmem:[%s5762_s26 + $0x81] sm:$0xff]  ;;  %v266_v32 = vld [vmem:[%s5762_s26 + $0x70] sm:$0xff]  ;;  %v267_v33 = vld [vmem:[%s5762_s26 + $0x78] sm:$0xff] }
  0x1e   : > { %412 = vrot.lane.b32.xlu1 %v333_v6, %s5707_s27  ;;  %410 = vrot.lane.b32.xlu0 %v332_v7, %s5707_s27  ;;  %v264_v30 = vld [vmem:[%s5762_s26 + $0x60] sm:$0xff]  ;;  %v265_v31 = vld [vmem:[%s5762_s26 + $0x68] sm:$0xff]  ;;  %303 = vst.msk [vmem:[#allocation2 + $0x150] sm:$0xff] %vm288_vm0, %v266_v32  ;;  %304 = vst.msk [vmem:[#allocation2 + $0x168] sm:$0xff] %vm288_vm0, %v267_v33 }
  0x1f   : > { %301 = vst.msk [vmem:[#allocation2 + $0x120] sm:$0xff] %vm288_vm0, %v264_v30  ;;  %302 = vst.msk [vmem:[#allocation2 + $0x138] sm:$0xff] %vm288_vm0, %v265_v31  ;;  %v345_v34 = vld [vmem:[%s5762_s26 + $0x99] sm:$0xff]  ;;  %v344_v35 = vld [vmem:[%s5762_s26 + $0x91] sm:$0xff] }
  0x20   : > { %v268_v36 = vld [vmem:[%s5762_s26 + $0x80] sm:$0xff]  ;;  %v269_v37 = vld [vmem:[%s5762_s26 + $0x88] sm:$0xff]  ;;  %v270_v38 = vld [vmem:[%s5762_s26 + $0x90] sm:$0xff] }
  0x21   : > { %305 = vst.msk [vmem:[#allocation2 + $0x180] sm:$0xff] %vm288_vm0, %v268_v36  ;;  %306 = vst.msk [vmem:[#allocation2 + $0x198] sm:$0xff] %vm288_vm0, %v269_v37  ;;  %v271_v39 = vld [vmem:[%s5762_s26 + $0x98] sm:$0xff]  ;;  %v272_v40 = vld [vmem:[%s5762_s26 + $0xa0] sm:$0xff] }
  0x22   : > { %416 = vrot.lane.b32.xlu1 %v335_v8, %s5707_s27  ;;  %414 = vrot.lane.b32.xlu0 %v334_v9, %s5707_s27  ;;  %307 = vst.msk [vmem:[#allocation2 + $0x1b0] sm:$0xff] %vm288_vm0, %v270_v38  ;;  %308 = vst.msk [vmem:[#allocation2 + $0x1c8] sm:$0xff] %vm288_vm0, %v271_v39  ;;  %v273_v41 = vld [vmem:[%s5762_s26 + $0xa8] sm:$0xff]  ;;  %v274_v42 = vld [vmem:[%s5762_s26 + $0xb0] sm:$0xff] }
  0x23   : > { %309 = vst.msk [vmem:[#allocation2 + $0x1e0] sm:$0xff] %vm288_vm0, %v272_v40  ;;  %v275_v43 = vld [vmem:[%s5762_s26 + $0xb8] sm:$0xff]  ;;  %310 = vst.msk [vmem:[#allocation2 + $0x1f8] sm:$0xff] %vm288_vm0, %v273_v41  ;;  %v276_v44 = vld [vmem:[%s5762_s26 + $0xc0] sm:$0xff] }
  0x24   : > { %311 = vst.msk [vmem:[#allocation2 + $0x210] sm:$0xff] %vm288_vm0, %v274_v42  ;;  %312 = vst.msk [vmem:[#allocation2 + $0x228] sm:$0xff] %vm288_vm0, %v275_v43  ;;  %v277_v45 = vld [vmem:[%s5762_s26 + $0xc8] sm:$0xff]  ;;  %v278_v48 = vld [vmem:[%s5762_s26 + $0xd0] sm:$0xff] }
  0x25   : > { %313 = vst.msk [vmem:[#allocation2 + $0x240] sm:$0xff] %vm288_vm0, %v276_v44  ;;  %314 = vst.msk [vmem:[#allocation2 + $0x258] sm:$0xff] %vm288_vm0, %v277_v45  ;;  %v347_v46 = vld [vmem:[%s5762_s26 + $0xa9] sm:$0xff]  ;;  %v346_v47 = vld [vmem:[%s5762_s26 + $0xa1] sm:$0xff] }
  0x26   : > { %420 = vrot.lane.b32.xlu1 %v337_v10, %s5707_s27  ;;  %418 = vrot.lane.b32.xlu0 %v336_v11, %s5707_s27  ;;  %315 = vst.msk [vmem:[#allocation2 + $0x270] sm:$0xff] %vm288_vm0, %v278_v48  ;;  %v279_v49 = vld [vmem:[%s5762_s26 + $0xd8] sm:$0xff]  ;;  %v280_v52 = vld [vmem:[%s5762_s26 + $0xe0] sm:$0xff] }
  0x27   : > { %316 = vst.msk [vmem:[#allocation2 + $0x288] sm:$0xff] %vm288_vm0, %v279_v49  ;;  %v349_v50 = vld [vmem:[%s5762_s26 + $0xb9] sm:$0xff]  ;;  %v348_v51 = vld [vmem:[%s5762_s26 + $0xb1] sm:$0xff]  ;;  %317 = vst.msk [vmem:[#allocation2 + $0x2a0] sm:$0xff] %vm288_vm0, %v280_v52 }
  0x28   : > { %v281_v53 = vld [vmem:[%s5762_s26 + $0xe8] sm:$0xff]  ;;  %v282_v56 = vld [vmem:[%s5762_s26 + $0xf0] sm:$0xff]  ;;  %v283_v57 = vld [vmem:[%s5762_s26 + $0xf8] sm:$0xff] }
  0x29   : > { %318 = vst.msk [vmem:[#allocation2 + $0x2b8] sm:$0xff] %vm288_vm0, %v281_v53  ;;  %v351_v54 = vld [vmem:[%s5762_s26 + $0xc9] sm:$0xff]  ;;  %v350_v55 = vld [vmem:[%s5762_s26 + $0xc1] sm:$0xff]  ;;  %319 = vst.msk [vmem:[#allocation2 + $0x2d0] sm:$0xff] %vm288_vm0, %v282_v56 }
  0x2a   : > { %424 = vrot.lane.b32.xlu1 %v339_v14, %s5707_s27  ;;  %422 = vrot.lane.b32.xlu0 %v338_v15, %s5707_s27  ;;  %320 = vst.msk [vmem:[#allocation2 + $0x2e8] sm:$0xff] %vm288_vm0, %v283_v57  ;;  %v353_v58 = vld [vmem:[%s5762_s26 + $0xd9] sm:$0xff]  ;;  %v352_v59 = vld [vmem:[%s5762_s26 + $0xd1] sm:$0xff] }
  0x2b   : > { %v284_v60 = vld [vmem:[%s5762_s26 + $0x100] sm:$0xff]  ;;  %v285_v61 = vld [vmem:[%s5762_s26 + $0x108] sm:$0xff]  ;;  %v286_v0 = vld [vmem:[%s5762_s26 + $0x110] sm:$0xff] }
  0x2c   : > { %321 = vst.msk [vmem:[#allocation2 + $0x300] sm:$0xff] %vm288_vm0, %v284_v60  ;;  %322 = vst.msk [vmem:[#allocation2 + $0x318] sm:$0xff] %vm288_vm0, %v285_v61  ;;  %v355_v62 = vld [vmem:[%s5762_s26 + $0xe9] sm:$0xff]  ;;  %v354_v63 = vld [vmem:[%s5762_s26 + $0xe1] sm:$0xff] }
  0x2d   : > { %323 = vst.msk [vmem:[#allocation2 + $0x330] sm:$0xff] %vm288_vm0, %v286_v0  ;;  %v287_v1 = vld [vmem:[%s5762_s26 + $0x118] sm:$0x3f]  ;;  %v359_v4 = vld [vmem:[%s5762_s26 + $0x109] sm:$0xff]  ;;  %v358_v5 = vld [vmem:[%s5762_s26 + $0x101] sm:$0xff] }
  0x2e   : > { %428 = vrot.lane.b32.xlu1 %v341_v21, %s5707_s27  ;;  %426 = vrot.lane.b32.xlu0 %v340_v22, %s5707_s27  ;;  %325 = vst.msk [vmem:[#allocation2 + $0x348] sm:$0x3f] %vm324_vm1, %v287_v1  ;;  %v357_v2 = vld [vmem:[%s5762_s26 + $0xf9] sm:$0xff]  ;;  %v356_v3 = vld [vmem:[%s5762_s26 + $0xf1] sm:$0xff] }
  0x2f   : > { %v361_v6 = vld [vmem:[%s5762_s26 + $0x119] sm:$0x3f]  ;;  %v360_v7 = vld [vmem:[%s5762_s26 + $0x111] sm:$0xff]  ;;  %v544_v9 = vld [vmem:[%s5762_s26 + $0x2] sm:$0xff] }
  0x30   : > { %v545_v8 = vld [vmem:[%s5762_s26 + $0xa] sm:$0xff]  ;;  %v5913_v10 = vld [vmem:[%s5762_s26 + $0x1a] sm:$0xff]  ;;  %v5916_v11 = vld [vmem:[%s5762_s26 + $0x12] sm:$0xff] }
  0x31   : > { %v5923_v12 = vld [vmem:[%s5762_s26 + $0x2a] sm:$0xff]  ;;  %v5926_v13 = vld [vmem:[%s5762_s26 + $0x22] sm:$0xff]  ;;  %v5933_v14 = vld [vmem:[%s5762_s26 + $0x3a] sm:$0xff] }
  0x32   : > { %432 = vrot.lane.b32.xlu1 %v343_v28, %s5707_s27  ;;  %430 = vrot.lane.b32.xlu0 %v342_v29, %s5707_s27  ;;  %v5936_v15 = vld [vmem:[%s5762_s26 + $0x32] sm:$0xff]  ;;  %v5943_v16 = vld [vmem:[%s5762_s26 + $0x4a] sm:$0xff] }
  0x33   : > { %v5946_v17 = vld [vmem:[%s5762_s26 + $0x42] sm:$0xff]  ;;  %v5953_v18 = vld [vmem:[%s5762_s26 + $0x5a] sm:$0xff]  ;;  %v5956_v19 = vld [vmem:[%s5762_s26 + $0x52] sm:$0xff] }
  0x34   : > { %v5963_v20 = vld [vmem:[%s5762_s26 + $0x6a] sm:$0xff]  ;;  %v5966_v21 = vld [vmem:[%s5762_s26 + $0x62] sm:$0xff]  ;;  %v5973_v22 = vld [vmem:[%s5762_s26 + $0x7a] sm:$0xff] }
  0x35   : > { %v5976_v23 = vld [vmem:[%s5762_s26 + $0x72] sm:$0xff]  ;;  %v5983_v24 = vld [vmem:[%s5762_s26 + $0x8a] sm:$0xff]  ;;  %v5986_v25 = vld [vmem:[%s5762_s26 + $0x82] sm:$0xff] }
  0x36   : > { %436 = vrot.lane.b32.xlu1 %v345_v34, %s5707_s27  ;;  %434 = vrot.lane.b32.xlu0 %v344_v35, %s5707_s27  ;;  %v5993_v26 = vld [vmem:[%s5762_s26 + $0x9a] sm:$0xff]  ;;  %v5996_v27 = vld [vmem:[%s5762_s26 + $0x92] sm:$0xff] }
  0x37   : > { %v6003_v28 = vld [vmem:[%s5762_s26 + $0xaa] sm:$0xff]  ;;  %v6006_v29 = vld [vmem:[%s5762_s26 + $0xa2] sm:$0xff]  ;;  %v6013_v30 = vld [vmem:[%s5762_s26 + $0xba] sm:$0xff] }
  0x38   : > { %v6016_v31 = vld [vmem:[%s5762_s26 + $0xb2] sm:$0xff]  ;;  %v6025_v34 = vld [vmem:[%s5762_s26 + $0xca] sm:$0xff]  ;;  %v6028_v35 = vld [vmem:[%s5762_s26 + $0xc2] sm:$0xff] }
  0x39   : > { %v6037_v38 = vld [vmem:[%s5762_s26 + $0xda] sm:$0xff]  ;;  %v6040_v39 = vld [vmem:[%s5762_s26 + $0xd2] sm:$0xff]  ;;  %v6049_v42 = vld [vmem:[%s5762_s26 + $0xea] sm:$0xff] }
  0x3a   : > { %440 = vrot.lane.b32.xlu1 %v347_v46, %s5707_s27  ;;  %438 = vrot.lane.b32.xlu0 %v346_v47, %s5707_s27  ;;  %v6052_v43 = vld [vmem:[%s5762_s26 + $0xe2] sm:$0xff]  ;;  %v6061_v46 = vld [vmem:[%s5762_s26 + $0xfa] sm:$0xff] }
  0x3b   : > { %v6064_v47 = vld [vmem:[%s5762_s26 + $0xf2] sm:$0xff] }
  0x3e   : > { %444 = vrot.lane.b32.xlu1 %v349_v50, %s5707_s27  ;;  %442 = vrot.lane.b32.xlu0 %v348_v51, %s5707_s27  ;;  %v6073_v50 = vld [vmem:[%s5762_s26 + $0x10a] sm:$0xff]  ;;  %v6076_v51 = vld [vmem:[%s5762_s26 + $0x102] sm:$0xff] }
  0x42   : > { %448 = vrot.lane.b32.xlu1 %v351_v54, %s5707_s27  ;;  %446 = vrot.lane.b32.xlu0 %v350_v55, %s5707_s27  ;;  %v579_v54 = vld [vmem:[%s5762_s26 + $0x11a] sm:$0x3f]  ;;  %v6086_v55 = vld [vmem:[%s5762_s26 + $0x112] sm:$0xff] }
  0x46   : > { %452 = vrot.lane.b32.xlu1 %v353_v58, %s5707_s27  ;;  %450 = vrot.lane.b32.xlu0 %v352_v59, %s5707_s27 }
  0x4a   : > { %456 = vrot.lane.b32.xlu1 %v355_v62, %s5707_s27  ;;  %454 = vrot.lane.b32.xlu0 %v354_v63, %s5707_s27 }
  0x4e   : > { %460 = vrot.lane.b32.xlu1 %v357_v2, %s5707_s27  ;;  %458 = vrot.lane.b32.xlu0 %v356_v3, %s5707_s27 }
  0x52   : > { %464 = vrot.lane.b32.xlu1 %v359_v4, %s5707_s27  ;;  %462 = vrot.lane.b32.xlu0 %v358_v5, %s5707_s27 }
  0x56   : > { %468 = vrot.lane.b32.xlu1 %v361_v6, %s5707_s27  ;;  %466 = vrot.lane.b32.xlu0 %v360_v7, %s5707_s27 }
  0x5a   : > { %618 = vrot.lane.b32.xlu1 %v545_v8, %s5708_s28  ;;  %616 = vrot.lane.b32.xlu0 %v544_v9, %s5708_s28 }
  0x5e   : > { %622 = vrot.lane.b32.xlu1 %v5913_v10, %s5708_s28  ;;  %620 = vrot.lane.b32.xlu0 %v5916_v11, %s5708_s28 }
  0x62   : > { %626 = vrot.lane.b32.xlu1 %v5923_v12, %s5708_s28  ;;  %624 = vrot.lane.b32.xlu0 %v5926_v13, %s5708_s28 }
  0x66   : > { %630 = vrot.lane.b32.xlu1 %v5933_v14, %s5708_s28  ;;  %628 = vrot.lane.b32.xlu0 %v5936_v15, %s5708_s28 }
  0x6a   : > { %634 = vrot.lane.b32.xlu1 %v5943_v16, %s5708_s28  ;;  %632 = vrot.lane.b32.xlu0 %v5946_v17, %s5708_s28 }
  0x6e   : > { %638 = vrot.lane.b32.xlu1 %v5953_v18, %s5708_s28  ;;  %636 = vrot.lane.b32.xlu0 %v5956_v19, %s5708_s28 }
  0x72   : > { %642 = vrot.lane.b32.xlu1 %v5963_v20, %s5708_s28  ;;  %640 = vrot.lane.b32.xlu0 %v5966_v21, %s5708_s28 }
  0x76   : > { %646 = vrot.lane.b32.xlu1 %v5973_v22, %s5708_s28  ;;  %644 = vrot.lane.b32.xlu0 %v5976_v23, %s5708_s28 }
  0x7a   : > { %650 = vrot.lane.b32.xlu1 %v5983_v24, %s5708_s28  ;;  %648 = vrot.lane.b32.xlu0 %v5986_v25, %s5708_s28 }
  0x7e   : > { %654 = vrot.lane.b32.xlu1 %v5993_v26, %s5708_s28  ;;  %652 = vrot.lane.b32.xlu0 %v5996_v27, %s5708_s28 }
  0x82   : > { %658 = vrot.lane.b32.xlu1 %v6003_v28, %s5708_s28  ;;  %656 = vrot.lane.b32.xlu0 %v6006_v29, %s5708_s28 }
  0x84   : > { %v399_v32 = vpop.permute.xlu0 %398  ;;  %v403_v33 = vpop.permute.xlu1 %402 }
  0x85   : > { %507 = vst.msk [vmem:[#allocation2] sm:$0xff] %vm506_vm2, %v399_v32  ;;  %509 = vst.msk [vmem:[#allocation2 + $0x30] sm:$0xff] %vm506_vm2, %v403_v33 }
  0x86   : > { %662 = vrot.lane.b32.xlu1 %v6013_v30, %s5708_s28  ;;  %660 = vrot.lane.b32.xlu0 %v6016_v31, %s5708_s28 }
  0x88   : > { %v401_v36 = vpop.permute.xlu0 %400  ;;  %v405_v37 = vpop.permute.xlu1 %404 }
  0x89   : > { %508 = vst.msk [vmem:[#allocation2 + $0x18] sm:$0xff] %vm506_vm2, %v401_v36  ;;  %510 = vst.msk [vmem:[#allocation2 + $0x48] sm:$0xff] %vm506_vm2, %v405_v37  ;;  %v1889_v36 = vld [vmem:[%s8330_s2 + $0x48] sm:$0xff] }
  0x8a   : > { %666 = vrot.lane.b32.xlu1 %v6025_v34, %s5708_s28  ;;  %664 = vrot.lane.b32.xlu0 %v6028_v35, %s5708_s28 }
  0x8c   : > { %v407_v40 = vpop.permute.xlu0 %406  ;;  %v409_v41 = vpop.permute.xlu1 %408 }
  0x8d   : > { %511 = vst.msk [vmem:[#allocation2 + $0x60] sm:$0xff] %vm506_vm2, %v407_v40  ;;  %512 = vst.msk [vmem:[#allocation2 + $0x78] sm:$0xff] %vm506_vm2, %v409_v41  ;;  %v1890_v40 = vld [vmem:[%s8330_s2 + $0x50] sm:$0xff]  ;;  %v1891_v41 = vld [vmem:[%s8330_s2 + $0x58] sm:$0xff] }
  0x8e   : > { %670 = vrot.lane.b32.xlu1 %v6037_v38, %s5708_s28  ;;  %668 = vrot.lane.b32.xlu0 %v6040_v39, %s5708_s28 }
  0x90   : > { %v411_v44 = vpop.permute.xlu0 %410  ;;  %v413_v45 = vpop.permute.xlu1 %412 }
  0x91   : > { %513 = vst.msk [vmem:[#allocation2 + $0x90] sm:$0xff] %vm506_vm2, %v411_v44  ;;  %514 = vst.msk [vmem:[#allocation2 + $0xa8] sm:$0xff] %vm506_vm2, %v413_v45 }
  0x92   : > { %674 = vrot.lane.b32.xlu1 %v6049_v42, %s5708_s28  ;;  %672 = vrot.lane.b32.xlu0 %v6052_v43, %s5708_s28 }
  0x94   : > { %v415_v48 = vpop.permute.xlu0 %414  ;;  %v417_v49 = vpop.permute.xlu1 %416 }
  0x95   : > { %515 = vst.msk [vmem:[#allocation2 + $0xc0] sm:$0xff] %vm506_vm2, %v415_v48  ;;  %516 = vst.msk [vmem:[#allocation2 + $0xd8] sm:$0xff] %vm506_vm2, %v417_v49  ;;  %v981_v48 = vld [vmem:[%s5762_s26 + $0x1b] sm:$0xff]  ;;  %v982_v49 = vld [vmem:[%s5762_s26 + $0x23] sm:$0xff] }
  0x96   : > { %678 = vrot.lane.b32.xlu1 %v6061_v46, %s5708_s28  ;;  %676 = vrot.lane.b32.xlu0 %v6064_v47, %s5708_s28  ;;  %1017 = vst.msk [vmem:[#allocation2 + $0x20] sm:$0xff] %vm288_vm0, %v981_v48  ;;  %1018 = vst.msk [vmem:[#allocation2 + $0x38] sm:$0xff] %vm288_vm0, %v982_v49  ;;  %v1906_v48 = vld [vmem:[%s8330_s2 + $0xd0] sm:$0xff] }
  0x97   : > { %v6385_v49 = vld [vmem:[%s5762_s26 + $0x6c] sm:$0xff] }
  0x98   : > { %v419_v52 = vpop.permute.xlu0 %418  ;;  %v421_v53 = vpop.permute.xlu1 %420 }
  0x99   : > { %517 = vst.msk [vmem:[#allocation2 + $0xf0] sm:$0xff] %vm506_vm2, %v419_v52  ;;  %518 = vst.msk [vmem:[#allocation2 + $0x108] sm:$0xff] %vm506_vm2, %v421_v53  ;;  %v795_v52 = vld [vmem:[%s5762_s26 + $0x11a] sm:$0xff] }
  0x9a   : > { %682 = vrot.lane.b32.xlu1 %v6073_v50, %s5708_s28  ;;  %680 = vrot.lane.b32.xlu0 %v6076_v51, %s5708_s28 }
  0x9c   : > { %v423_v56 = vpop.permute.xlu0 %422  ;;  %v425_v57 = vpop.permute.xlu1 %424 }
  0x9d   : > { %519 = vst.msk [vmem:[#allocation2 + $0x120] sm:$0xff] %vm506_vm2, %v423_v56  ;;  %520 = vst.msk [vmem:[#allocation2 + $0x138] sm:$0xff] %vm506_vm2, %v425_v57  ;;  %v1895_v57 = vld [vmem:[%s8330_s2 + $0x78] sm:$0xff] }
  0x9e   : > { %686 = vrot.lane.b32.xlu1 %v579_v54, %s5708_s28  ;;  %684 = vrot.lane.b32.xlu0 %v6086_v55, %s5708_s28 }
  0xa0   : > { %v427_v58 = vpop.permute.xlu0 %426  ;;  %v429_v59 = vpop.permute.xlu1 %428 }
  0xa1   : > { %521 = vst.msk [vmem:[#allocation2 + $0x150] sm:$0xff] %vm506_vm2, %v427_v58  ;;  %522 = vst.msk [vmem:[#allocation2 + $0x168] sm:$0xff] %vm506_vm2, %v429_v59  ;;  %v984_v59 = vld [vmem:[%s5762_s26 + $0x33] sm:$0xff] }
  0xa2   : > { %836 = vrot.lane.b32.xlu1 %v5913_v10, %s5709_s29  ;;  %834 = vrot.lane.b32.xlu0 %v5916_v11, %s5709_s29  ;;  %1020 = vst.msk [vmem:[#allocation2 + $0x68] sm:$0xff] %vm288_vm0, %v984_v59  ;;  %v6410_v59 = vld [vmem:[%s5762_s26 + $0x7c] sm:$0xff] }
  0xa4   : > { %v431_v60 = vpop.permute.xlu0 %430  ;;  %v433_v61 = vpop.permute.xlu1 %432 }
  0xa5   : > { %523 = vst.msk [vmem:[#allocation2 + $0x180] sm:$0xff] %vm506_vm2, %v431_v60  ;;  %524 = vst.msk [vmem:[#allocation2 + $0x198] sm:$0xff] %vm506_vm2, %v433_v61  ;;  %v797_v60 = vld [vmem:[%s5762_s26 + $0x12a] sm:$0x3f]  ;;  %v796_v61 = vld [vmem:[%s5762_s26 + $0x122] sm:$0xff] }
  0xa6   : > { %840 = vrot.lane.b32.xlu1 %v5923_v12, %s5709_s29  ;;  %838 = vrot.lane.b32.xlu0 %v5926_v13, %s5709_s29 }
  0xa8   : > { %v435_v62 = vpop.permute.xlu0 %434  ;;  %v437_v63 = vpop.permute.xlu1 %436 }
  0xa9   : > { %525 = vst.msk [vmem:[#allocation2 + $0x1b0] sm:$0xff] %vm506_vm2, %v435_v62  ;;  %526 = vst.msk [vmem:[#allocation2 + $0x1c8] sm:$0xff] %vm506_vm2, %v437_v63 }
  0xaa   : > { %844 = vrot.lane.b32.xlu1 %v5933_v14, %s5709_s29  ;;  %842 = vrot.lane.b32.xlu0 %v5936_v15, %s5709_s29  ;;  %v1880_v14 = vld [vmem:[%s8330_s2] sm:$0xff]  ;;  %v1881_v15 = vld [vmem:[%s8330_s2 + $0x8] sm:$0xff] }
  0xac   : > { %v439_v0 = vpop.permute.xlu0 %438  ;;  %v441_v1 = vpop.permute.xlu1 %440 }
  0xad   : > { %527 = vst.msk [vmem:[#allocation2 + $0x1e0] sm:$0xff] %vm506_vm2, %v439_v0  ;;  %528 = vst.msk [vmem:[#allocation2 + $0x1f8] sm:$0xff] %vm506_vm2, %v441_v1  ;;  %v985_v0 = vld [vmem:[%s5762_s26 + $0x3b] sm:$0xff]  ;;  %v1897_v1 = vld [vmem:[%s8330_s2 + $0x88] sm:$0xff] }
  0xae   : > { %848 = vrot.lane.b32.xlu1 %v5943_v16, %s5709_s29  ;;  %846 = vrot.lane.b32.xlu0 %v5946_v17, %s5709_s29  ;;  %v5710_v16 = vmov 0.0|0.0   ;;  %v5564_v17 = vpack.c.bf16 %v1881_v15, %v1880_v14  ;;  %1021 = vst.msk [vmem:[#allocation2 + $0x80] sm:$0xff] %vm288_vm0, %v985_v0 }
  0xaf   : > { %5563 = vmatprep.subr.bf16.mxu0 %v5710_v16 }
  0xb0   : > { %v443_v2 = vpop.permute.xlu0 %442  ;;  %v445_v3 = vpop.permute.xlu1 %444  ;;  %5565 = vmatpush1.bf16.msra.mxu0 %v5564_v17 }
  0xb1   : > { %529 = vst.msk [vmem:[#allocation2 + $0x210] sm:$0xff] %vm506_vm2, %v443_v2  ;;  %530 = vst.msk [vmem:[#allocation2 + $0x228] sm:$0xff] %vm506_vm2, %v445_v3  ;;  %5566 = vmatprep.subr.bf16.mxu0 %v5710_v16  ;;  %v986_v3 = vld [vmem:[%s5762_s26 + $0x43] sm:$0xff] }
  0xb2   : > { %852 = vrot.lane.b32.xlu1 %v5953_v18, %s5709_s29  ;;  %850 = vrot.lane.b32.xlu0 %v5956_v19, %s5709_s29  ;;  %1022 = vst.msk [vmem:[#allocation2 + $0x98] sm:$0xff] %vm288_vm0, %v986_v3  ;;  %v1914_v3 = vld [vmem:[%s8330_s2 + $0x110] sm:$0xff] }
  0xb4   : > { %v447_v4 = vpop.permute.xlu0 %446  ;;  %v449_v5 = vpop.permute.xlu1 %448 }
  0xb5   : > { %531 = vst.msk [vmem:[#allocation2 + $0x240] sm:$0xff] %vm506_vm2, %v447_v4  ;;  %532 = vst.msk [vmem:[#allocation2 + $0x258] sm:$0xff] %vm506_vm2, %v449_v5  ;;  %v1053_v4 = vld [vmem:[%s5762_s26 + $0x1c] sm:$0xff]  ;;  %v1052_v5 = vld [vmem:[%s5762_s26 + $0x14] sm:$0xff] }
  0xb6   : > { %856 = vrot.lane.b32.xlu1 %v5963_v20, %s5709_s29  ;;  %854 = vrot.lane.b32.xlu0 %v5966_v21, %s5709_s29  ;;  %v1882_v20 = vld [vmem:[%s8330_s2 + $0x10] sm:$0xff]  ;;  %v1883_v21 = vld [vmem:[%s8330_s2 + $0x18] sm:$0xff] }
  0xb8   : > { %v451_v6 = vpop.permute.xlu0 %450  ;;  %v453_v7 = vpop.permute.xlu1 %452 }
  0xb9   : > { %533 = vst.msk [vmem:[#allocation2 + $0x270] sm:$0xff] %vm506_vm2, %v451_v6  ;;  %534 = vst.msk [vmem:[#allocation2 + $0x288] sm:$0xff] %vm506_vm2, %v453_v7 }
  0xba   : > { %860 = vrot.lane.b32.xlu1 %v5973_v22, %s5709_s29  ;;  %858 = vrot.lane.b32.xlu0 %v5976_v23, %s5709_s29  ;;  %v5567_v22 = vpack.c.bf16 %v1883_v21, %v1882_v20  ;;  %v1901_v20 = vld [vmem:[%s8330_s2 + $0xa8] sm:$0xff] }
  0xbc   : > { %v455_v8 = vpop.permute.xlu0 %454  ;;  %v457_v9 = vpop.permute.xlu1 %456  ;;  %5568 = vmatpush1.bf16.msra.mxu0 %v5567_v22  ;;  %v990_v22 = vld [vmem:[%s5762_s26 + $0x63] sm:$0xff] }
  0xbd   : > { %535 = vst.msk [vmem:[#allocation2 + $0x2a0] sm:$0xff] %vm506_vm2, %v455_v8  ;;  %536 = vst.msk [vmem:[#allocation2 + $0x2b8] sm:$0xff] %vm506_vm2, %v457_v9  ;;  %5569 = vmatprep.subr.bf16.mxu0 %v5710_v16  ;;  %v987_v8 = vld [vmem:[%s5762_s26 + $0x4b] sm:$0xff] }
  0xbe   : > { %864 = vrot.lane.b32.xlu1 %v5983_v24, %s5709_s29  ;;  %862 = vrot.lane.b32.xlu0 %v5986_v25, %s5709_s29  ;;  %v1884_v25 = vld [vmem:[%s8330_s2 + $0x20] sm:$0xff]  ;;  %1023 = vst.msk [vmem:[#allocation2 + $0xb0] sm:$0xff] %vm288_vm0, %v987_v8  ;;  %v1898_v9 = vld [vmem:[%s8330_s2 + $0x90] sm:$0xff]  ;;  %1026 = vst.msk [vmem:[#allocation2 + $0xf8] sm:$0xff] %vm288_vm0, %v990_v22 }
  0xc0   : > { %v459_v10 = vpop.permute.xlu0 %458  ;;  %v461_v11 = vpop.permute.xlu1 %460 }
  0xc1   : > { %537 = vst.msk [vmem:[#allocation2 + $0x2d0] sm:$0xff] %vm506_vm2, %v459_v10  ;;  %538 = vst.msk [vmem:[#allocation2 + $0x2e8] sm:$0xff] %vm506_vm2, %v461_v11  ;;  %v1899_v10 = vld [vmem:[%s8330_s2 + $0x98] sm:$0xff] }
  0xc2   : > { %868 = vrot.lane.b32.xlu1 %v5993_v26, %s5709_s29  ;;  %866 = vrot.lane.b32.xlu0 %v5996_v27, %s5709_s29  ;;  %v1885_v26 = vld [vmem:[%s8330_s2 + $0x28] sm:$0xff]  ;;  %v988_v11 = vld [vmem:[%s5762_s26 + $0x53] sm:$0xff]  ;;  %v5591_v14 = vpack.c.bf16 %v1899_v10, %v1898_v9 }
  0xc3   : > { %v5570_v27 = vpack.c.bf16 %v1885_v26, %v1884_v25  ;;  %1024 = vst.msk [vmem:[#allocation2 + $0xc8] sm:$0xff] %vm288_vm0, %v988_v11  ;;  %v1484_v11 = vld [vmem:[%s5762_s26 + $0x25] sm:$0xff] }
  0xc4   : > { %v463_v12 = vpop.permute.xlu0 %462  ;;  %v465_v13 = vpop.permute.xlu1 %464 }
  0xc5   : > { %539 = vst.msk [vmem:[#allocation2 + $0x300] sm:$0xff] %vm506_vm2, %v463_v12  ;;  %540 = vst.msk [vmem:[#allocation2 + $0x318] sm:$0xff] %vm506_vm2, %v465_v13  ;;  %5571 = vmatpush1.bf16.msra.mxu0 %v5570_v27  ;;  %v6294_v12 = vld [vmem:[%s5762_s26 + $0x2c] sm:$0xff]  ;;  %v6297_v13 = vld [vmem:[%s5762_s26 + $0x24] sm:$0xff] }
  0xc6   : > { %872 = vrot.lane.b32.xlu1 %v6003_v28, %s5709_s29  ;;  %870 = vrot.lane.b32.xlu0 %v6006_v29, %s5709_s29  ;;  %v991_v27 = vld [vmem:[%s5762_s26 + $0x6b] sm:$0xff] }
  0xc7   : > { %5572 = vmatprep.subr.bf16.mxu0 %v5710_v16  ;;  %1027 = vst.msk [vmem:[#allocation2 + $0x110] sm:$0xff] %vm288_vm0, %v991_v27 }
  0xc8   : > { %v467_v18 = vpop.permute.xlu0 %466  ;;  %v469_v19 = vpop.permute.xlu1 %468 }
  0xc9   : > { %541 = vst.msk [vmem:[#allocation2 + $0x330] sm:$0xff] %vm506_vm2, %v467_v18  ;;  %v989_v18 = vld [vmem:[%s5762_s26 + $0x5b] sm:$0xff] }
  0xca   : > { %543 = vst.msk [vmem:[#allocation2 + $0x348] sm:$0x3f] %vm542_vm3, %v469_v19  ;;  %876 = vrot.lane.b32.xlu1 %v6013_v30, %s5709_s29  ;;  %874 = vrot.lane.b32.xlu0 %v6016_v31, %s5709_s29  ;;  %v1886_v30 = vld [vmem:[%s8330_s2 + $0x30] sm:$0xff]  ;;  %v1887_v31 = vld [vmem:[%s8330_s2 + $0x38] sm:$0xff] }
  0xcb   : > { %v5573_v32 = vpack.c.bf16 %v1887_v31, %v1886_v30  ;;  %1025 = vst.msk [vmem:[#allocation2 + $0xe0] sm:$0xff] %vm288_vm0, %v989_v18  ;;  %v1900_v19 = vld [vmem:[%s8330_s2 + $0xa0] sm:$0xff]  ;;  %v992_v31 = vld [vmem:[%s5762_s26 + $0x73] sm:$0xff] }
  0xcc   : > { %v617_v23 = vpop.permute.xlu0 %616  ;;  %v619_v24 = vpop.permute.xlu1 %618  ;;  %v5594_v21 = vpack.c.bf16 %v1901_v20, %v1900_v19  ;;  %1028 = vst.msk [vmem:[#allocation2 + $0x128] sm:$0xff] %vm288_vm0, %v992_v31  ;;  %v1703_v20 = vld [vmem:[%s5762_s26 + $0x3e] sm:$0xff]  ;;  %v1705_v31 = vld [vmem:[%s5762_s26 + $0x4e] sm:$0xff] }
  0xcd   : > { %725 = vst.msk [vmem:[#allocation2] sm:$0xff] %vm724_vm4, %v617_v23  ;;  %726 = vst.msk [vmem:[#allocation2 + $0x18] sm:$0xff] %vm724_vm4, %v619_v24  ;;  %5574 = vmatpush1.bf16.msra.mxu0 %v5573_v32  ;;  %v6317_v23 = vld [vmem:[%s5762_s26 + $0x3c] sm:$0xff]  ;;  %v6320_v24 = vld [vmem:[%s5762_s26 + $0x34] sm:$0xff] }
  0xce   : > { %880 = vrot.lane.b32.xlu1 %v6025_v34, %s5709_s29  ;;  %878 = vrot.lane.b32.xlu0 %v6028_v35, %s5709_s29  ;;  %v1888_v35 = vld [vmem:[%s8330_s2 + $0x40] sm:$0xff]  ;;  %v6340_v32 = vld [vmem:[%s5762_s26 + $0x4c] sm:$0xff]  ;;  %1739 = vst.msk [vmem:[#allocation2 + $0x58] sm:$0xff] %vm288_vm0, %v1703_v20  ;;  %1741 = vst.msk [vmem:[#allocation2 + $0x88] sm:$0xff] %vm288_vm0, %v1705_v31 }
  0xcf   : > { %v5576_v37 = vpack.c.bf16 %v1889_v36, %v1888_v35  ;;  %5575 = vmatprep.subr.bf16.mxu0 %v5710_v16  ;;  %v993_v36 = vld [vmem:[%s5762_s26 + $0x7b] sm:$0xff] }
  0xd0   : > { %v621_v28 = vpop.permute.xlu0 %620  ;;  %v623_v29 = vpop.permute.xlu1 %622  ;;  %1029 = vst.msk [vmem:[#allocation2 + $0x140] sm:$0xff] %vm288_vm0, %v993_v36  ;;  %v1488_v36 = vld [vmem:[%s5762_s26 + $0x45] sm:$0xff]  ;;  %v1499_v31 = vld [vmem:[%s5762_s26 + $0x9d] sm:$0xff] }
  0xd1   : > { %727 = vst.msk [vmem:[#allocation2 + $0x30] sm:$0xff] %vm724_vm4, %v621_v28  ;;  %728 = vst.msk [vmem:[#allocation2 + $0x48] sm:$0xff] %vm724_vm4, %v623_v29  ;;  %5577 = vmatpush1.bf16.msra.mxu0 %v5576_v37  ;;  %v1902_v28 = vld [vmem:[%s8330_s2 + $0xb0] sm:$0xff]  ;;  %v1903_v29 = vld [vmem:[%s8330_s2 + $0xb8] sm:$0xff] }
  0xd2   : > { %884 = vrot.lane.b32.xlu1 %v6037_v38, %s5709_s29  ;;  %882 = vrot.lane.b32.xlu0 %v6040_v39, %s5709_s29  ;;  %v5597_v30 = vpack.c.bf16 %v1903_v29, %v1902_v28  ;;  %v1904_v37 = vld [vmem:[%s8330_s2 + $0xc0] sm:$0xff] }
  0xd3   : > { %5578 = vmatprep.subr.bf16.mxu0 %v5710_v16 }
  0xd4   : > { %v625_v33 = vpop.permute.xlu0 %624  ;;  %v627_v34 = vpop.permute.xlu1 %626 }
  0xd5   : > { %729 = vst.msk [vmem:[#allocation2 + $0x60] sm:$0xff] %vm724_vm4, %v625_v33  ;;  %730 = vst.msk [vmem:[#allocation2 + $0x78] sm:$0xff] %vm724_vm4, %v627_v34  ;;  %v6343_v33 = vld [vmem:[%s5762_s26 + $0x44] sm:$0xff] }
  0xd6   : > { %888 = vrot.lane.b32.xlu1 %v6049_v42, %s5709_s29  ;;  %886 = vrot.lane.b32.xlu0 %v6052_v43, %s5709_s29  ;;  %v5579_v42 = vpack.c.bf16 %v1891_v41, %v1890_v40  ;;  %v980_v43 = vld [vmem:[%s5762_s26 + $0x13] sm:$0xff]  ;;  %v6363_v40 = vld [vmem:[%s5762_s26 + $0x5c] sm:$0xff] }
  0xd7   : > { %1016 = vst.msk [vmem:[#allocation2 + $0x8] sm:$0xff] %vm288_vm0, %v980_v43  ;;  %v6366_v41 = vld [vmem:[%s5762_s26 + $0x54] sm:$0xff] }
  0xd8   : > { %v629_v38 = vpop.permute.xlu0 %628  ;;  %v631_v39 = vpop.permute.xlu1 %630  ;;  %5580 = vmatpush1.bf16.msra.mxu0 %v5579_v42 }
  0xd9   : > { %731 = vst.msk [vmem:[#allocation2 + $0x90] sm:$0xff] %vm724_vm4, %v629_v38  ;;  %732 = vst.msk [vmem:[#allocation2 + $0xa8] sm:$0xff] %vm724_vm4, %v631_v39  ;;  %5581 = vmatprep.subr.bf16.mxu0 %v5710_v16  ;;  %v1905_v38 = vld [vmem:[%s8330_s2 + $0xc8] sm:$0xff] }
  0xda   : > { %892 = vrot.lane.b32.xlu1 %v6061_v46, %s5709_s29  ;;  %890 = vrot.lane.b32.xlu0 %v6064_v47, %s5709_s29  ;;  %v1892_v46 = vld [vmem:[%s8330_s2 + $0x60] sm:$0xff]  ;;  %v1893_v47 = vld [vmem:[%s8330_s2 + $0x68] sm:$0xff]  ;;  %v5600_v42 = vpack.c.bf16 %v1905_v38, %v1904_v37 }
  0xdb   : > { %v5582_v53 = vpack.c.bf16 %v1893_v47, %v1892_v46  ;;  %v994_v39 = vld [vmem:[%s5762_s26 + $0x83] sm:$0xff]  ;;  %v1907_v46 = vld [vmem:[%s8330_s2 + $0xd8] sm:$0xff] }
  0xdc   : > { %v633_v44 = vpop.permute.xlu0 %632  ;;  %v635_v45 = vpop.permute.xlu1 %634  ;;  %1030 = vst.msk [vmem:[#allocation2 + $0x158] sm:$0xff] %vm288_vm0, %v994_v39  ;;  %v5603_v47 = vpack.c.bf16 %v1907_v46, %v1906_v48  ;;  %v1706_v38 = vld [vmem:[%s5762_s26 + $0x56] sm:$0xff] }
  0xdd   : > { %733 = vst.msk [vmem:[#allocation2 + $0xc0] sm:$0xff] %vm724_vm4, %v633_v44  ;;  %734 = vst.msk [vmem:[#allocation2 + $0xd8] sm:$0xff] %vm724_vm4, %v635_v45  ;;  %5583 = vmatpush1.bf16.msra.mxu0 %v5582_v53  ;;  %v995_v45 = vld [vmem:[%s5762_s26 + $0x8b] sm:$0xff]  ;;  %v1490_v48 = vld [vmem:[%s5762_s26 + $0x55] sm:$0xff] }
  0xde   : > { %896 = vrot.lane.b32.xlu1 %v6073_v50, %s5709_s29  ;;  %894 = vrot.lane.b32.xlu0 %v6076_v51, %s5709_s29  ;;  %v983_v50 = vld [vmem:[%s5762_s26 + $0x2b] sm:$0xff]  ;;  %1031 = vst.msk [vmem:[#allocation2 + $0x170] sm:$0xff] %vm288_vm0, %v995_v45  ;;  %1742 = vst.msk [vmem:[#allocation2 + $0xa0] sm:$0xff] %vm288_vm0, %v1706_v38 }
  0xdf   : > { %1019 = vst.msk [vmem:[#allocation2 + $0x50] sm:$0xff] %vm288_vm0, %v983_v50  ;;  %v1894_v51 = vld [vmem:[%s8330_s2 + $0x70] sm:$0xff]  ;;  %5584 = vmatprep.subr.bf16.mxu0 %v5710_v16  ;;  %v1909_v50 = vld [vmem:[%s8330_s2 + $0xe8] sm:$0xff] }
  0xe0   : > { %v637_v54 = vpop.permute.xlu0 %636  ;;  %v639_v56 = vpop.permute.xlu1 %638  ;;  %v5585_v58 = vpack.c.bf16 %v1895_v57, %v1894_v51  ;;  %v1912_v57 = vld [vmem:[%s8330_s2 + $0x100] sm:$0xff] }
  0xe1   : > { %735 = vst.msk [vmem:[#allocation2 + $0xf0] sm:$0xff] %vm724_vm4, %v637_v54  ;;  %736 = vst.msk [vmem:[#allocation2 + $0x108] sm:$0xff] %vm724_vm4, %v639_v56  ;;  %v1908_v56 = vld [vmem:[%s8330_s2 + $0xe0] sm:$0xff] }
  0xe2   : > { %900 = vrot.lane.b32.xlu1 %v795_v52, %s5709_s29  ;;  %898 = vrot.lane.b32.xlu0 %v6086_v55, %s5709_s29  ;;  %v1896_v55 = vld [vmem:[%s8330_s2 + $0x80] sm:$0xff]  ;;  %v5606_v51 = vpack.c.bf16 %v1909_v50, %v1908_v56 }
  0xe3   : > { %5586 = vmatpush1.bf16.msra.mxu0 %v5585_v58  ;;  %v5588_v2 = vpack.c.bf16 %v1897_v1, %v1896_v55  ;;  %v6388_v52 = vld [vmem:[%s5762_s26 + $0x64] sm:$0xff]  ;;  %v1701_v55 = vld [vmem:[%s5762_s26 + $0x2e] sm:$0xff] }
  0xe4   : > { %v641_v62 = vpop.permute.xlu0 %640  ;;  %v643_v63 = vpop.permute.xlu1 %642  ;;  %5587 = vmatprep.subr.bf16.mxu0 %v5710_v16  ;;  %v1913_v58 = vld [vmem:[%s8330_s2 + $0x108] sm:$0xff]  ;;  %v1910_v1 = vld [vmem:[%s8330_s2 + $0xf0] sm:$0xff]  ;;  %1737 = vst.msk [vmem:[#allocation2 + $0x28] sm:$0xff] %vm288_vm0, %v1701_v55  ;;  %v1491_v56 = vld [vmem:[%s5762_s26 + $0x5d] sm:$0xff] }
  0xe5   : > { %737 = vst.msk [vmem:[#allocation2 + $0x120] sm:$0xff] %vm724_vm4, %v641_v62  ;;  %738 = vst.msk [vmem:[#allocation2 + $0x138] sm:$0xff] %vm724_vm4, %v643_v63  ;;  %v1700_v62 = vld [vmem:[%s5762_s26 + $0x26] sm:$0xff] }
  0xe6   : > { %904 = vrot.lane.b32.xlu1 %v797_v60, %s5709_s29  ;;  %902 = vrot.lane.b32.xlu0 %v796_v61, %s5709_s29  ;;  %v6413_v60 = vld [vmem:[%s5762_s26 + $0x74] sm:$0xff]  ;;  %v5611_v61 = vpack.c.bf16 %v1913_v58, %v1912_v57  ;;  %1736 = vst.msk [vmem:[#allocation2 + $0x10] sm:$0xff] %vm288_vm0, %v1700_v62  ;;  %v1792_v46 = vld [vmem:[#allocation2 + $0xa0] sm:$0xff] }
  0xe7   : > { %5589 = vmatpush1.bf16.msra.mxu0 %v5588_v2  ;;  %v1911_v2 = vld [vmem:[%s8330_s2 + $0xf8] sm:$0xff]  ;;  %v1492_v57 = vld [vmem:[%s5762_s26 + $0x65] sm:$0xff] }
  0xe8   : > { %v645_v6 = vpop.permute.xlu0 %644  ;;  %v647_v7 = vpop.permute.xlu1 %646  ;;  %5590 = vmatprep.subr.bf16.mxu0 %v5710_v16  ;;  %5612 = vmatprep.subr.bf16.mxu1 %v5611_v61  ;;  %v1284_v38 = vld [vmem:[%s5762_s26 + $0xa4] sm:$0xff] }
  0xe9   : > { %739 = vst.msk [vmem:[#allocation2 + $0x150] sm:$0xff] %vm724_vm4, %v645_v6  ;;  %740 = vst.msk [vmem:[#allocation2 + $0x168] sm:$0xff] %vm724_vm4, %v647_v7  ;;  %5614 = vmatpush3.bf16.msra.mxu1 %v5611_v61  ;;  %v5609_v6 = vpack.c.bf16 %v1911_v2, %v1910_v1  ;;  %v1915_v7 = vld [vmem:[%s8330_s2 + $0x118] sm:$0xff] }
  0xea   : > { %1126 = vrot.lane.b32.xlu1 %v1053_v4, %s5707_s27  ;;  %1124 = vrot.lane.b32.xlu0 %v1052_v5, %s5707_s27  ;;  %v6436_v4 = vld [vmem:[%s5762_s26 + $0x8c] sm:$0xff]  ;;  %v6439_v5 = vld [vmem:[%s5762_s26 + $0x84] sm:$0xff]  ;;  %v5615_v10 = vpack.c.bf16 %v1915_v7, %v1914_v3 }
  0xeb   : > { %5592 = vmatpush1.bf16.msra.mxu0 %v5591_v14  ;;  %v1777_v19 = vld [vmem:[#allocation2 + $0x28] sm:$0xff]  ;;  %v1710_v61 = vld [vmem:[%s5762_s26 + $0x76] sm:$0xff] }
  0xec   : > { %v649_v15 = vpop.permute.xlu0 %648  ;;  %v651_v17 = vpop.permute.xlu1 %650  ;;  %5593 = vmatprep.subr.bf16.mxu0 %v5710_v16  ;;  %5616 = vmatprep.subr.bf16.mxu1 %v5615_v10  ;;  %1746 = vst.msk [vmem:[#allocation2 + $0x100] sm:$0xff] %vm288_vm0, %v1710_v61  ;;  %v1494_v2 = vld [vmem:[%s5762_s26 + $0x75] sm:$0xff] }
  0xed   : > { %741 = vst.msk [vmem:[#allocation2 + $0x180] sm:$0xff] %vm724_vm4, %v649_v15  ;;  %742 = vst.msk [vmem:[#allocation2 + $0x198] sm:$0xff] %vm724_vm4, %v651_v17  ;;  %v1774_v14 = vld [vmem:[#allocation2 + $0x10] sm:$0xff]  ;;  %5618 = vmatpush3.bf16.msra.mxu1 %v5615_v10 }
  0xee   : > { %1130 = vrot.lane.b32.xlu1 %v6294_v12, %s5707_s27  ;;  %1128 = vrot.lane.b32.xlu0 %v6297_v13, %s5707_s27  ;;  %v1702_v15 = vld [vmem:[%s5762_s26 + $0x36] sm:$0xff] }
  0xef   : > { %5595 = vmatpush1.bf16.msra.mxu0 %v5594_v21  ;;  %5447 = vmatprep.mubr.msk.f32.mxu1 %vm288_vm0, %v1774_v14  ;;  %1738 = vst.msk [vmem:[#allocation2 + $0x40] sm:$0xff] %vm288_vm0, %v1702_v15  ;;  %v1485_v21 = vld [vmem:[%s5762_s26 + $0x2d] sm:$0xff]  ;;  %v1496_v14 = vld [vmem:[%s5762_s26 + $0x85] sm:$0xff] }
  0xf0   : > { %v653_v25 = vpop.permute.xlu0 %652  ;;  %v655_v26 = vpop.permute.xlu1 %654  ;;  %5596 = vmatprep.subr.bf16.mxu0 %v5710_v16  ;;  %5619 = vmatprep.subr.bf16.mxu1 %v5710_v16 }
  0xf1   : > { %743 = vst.msk [vmem:[#allocation2 + $0x1b0] sm:$0xff] %vm724_vm4, %v653_v25  ;;  %744 = vst.msk [vmem:[#allocation2 + $0x1c8] sm:$0xff] %vm724_vm4, %v655_v26  ;;  %5448 = vmatmul.mubr.msk.f32.vlgmr.msra.gmra.mrb[0].mxu1 %vm288_vm0, %v1777_v19  ;;  %v1486_v26 = vld [vmem:[%s5762_s26 + $0x35] sm:$0xff]  ;;  %v1715_v19 = vld [vmem:[%s5762_s26 + $0x9e] sm:$0xff] }
  0xf2   : > { %1134 = vrot.lane.b32.xlu1 %v6317_v23, %s5707_s27  ;;  %1132 = vrot.lane.b32.xlu0 %v6320_v24, %s5707_s27  ;;  %1751 = vst.msk [vmem:[#allocation2 + $0x178] sm:$0xff] %vm288_vm0, %v1715_v19  ;;  %v1505_v19 = vld [vmem:[%s5762_s26 + $0xcd] sm:$0xff] }
  0xf3   : > { %5598 = vmatpush1.bf16.msra.mxu0 %v5597_v30  ;;  %v1783_v30 = vld [vmem:[#allocation2 + $0x58] sm:$0xff]  ;;  %v1804_v3 = vld [vmem:[#allocation2 + $0x100] sm:$0xff] }
  0xf4   : > { %v657_v34 = vpop.permute.xlu0 %656  ;;  %v659_v35 = vpop.permute.xlu1 %658  ;;  %5599 = vmatprep.subr.bf16.mxu0 %v5710_v16 }
  0xf5   : > { %745 = vst.msk [vmem:[#allocation2 + $0x1e0] sm:$0xff] %vm724_vm4, %v657_v34  ;;  %746 = vst.msk [vmem:[#allocation2 + $0x1f8] sm:$0xff] %vm724_vm4, %v659_v35 }
  0xf6   : > { %1138 = vrot.lane.b32.xlu1 %v6340_v32, %s5707_s27  ;;  %1136 = vrot.lane.b32.xlu0 %v6343_v33, %s5707_s27  ;;  %v1780_v27 = vld [vmem:[#allocation2 + $0x40] sm:$0xff] }
  0xf7   : > { %5601 = vmatpush1.bf16.msra.mxu0 %v5600_v42  ;;  %5450 = vmatprep.mubr.msk.f32.mxu1 %vm288_vm0, %v1780_v27  ;;  %v1789_v42 = vld [vmem:[#allocation2 + $0x88] sm:$0xff] }
  0xf8   : > { %v661_v43 = vpop.permute.xlu0 %660  ;;  %v663_v44 = vpop.permute.xlu1 %662  ;;  %5602 = vmatprep.subr.bf16.mxu0 %v5710_v16  ;;  %5451 = vmatmul.mubr.msk.f32.gmra.mrb[2].mxu1 %vm288_vm0, %v1783_v30  ;;  %v997_v30 = vld [vmem:[%s5762_s26 + $0x9b] sm:$0xff] }
  0xf9   : > { %747 = vst.msk [vmem:[#allocation2 + $0x210] sm:$0xff] %vm724_vm4, %v661_v43  ;;  %748 = vst.msk [vmem:[#allocation2 + $0x228] sm:$0xff] %vm724_vm4, %v663_v44  ;;  %v1707_v43 = vld [vmem:[%s5762_s26 + $0x5e] sm:$0xff] }
  0xfa   : > { %1142 = vrot.lane.b32.xlu1 %v6363_v40, %s5707_s27  ;;  %1140 = vrot.lane.b32.xlu0 %v6366_v41, %s5707_s27  ;;  %1743 = vst.msk [vmem:[#allocation2 + $0xb8] sm:$0xff] %vm288_vm0, %v1707_v43  ;;  %1033 = vst.msk [vmem:[#allocation2 + $0x1a0] sm:$0xff] %vm288_vm0, %v997_v30 }
  0xfb   : > { %5604 = vmatpush1.bf16.msra.mxu0 %v5603_v47  ;;  %v1708_v47 = vld [vmem:[%s5762_s26 + $0x66] sm:$0xff] }
  0xfc   : > { %v665_v53 = vpop.permute.xlu0 %664  ;;  %v667_v54 = vpop.permute.xlu1 %666  ;;  %5605 = vmatprep.subr.bf16.mxu0 %v5710_v16  ;;  %1744 = vst.msk [vmem:[#allocation2 + $0xd0] sm:$0xff] %vm288_vm0, %v1708_v47  ;;  %v1718_v47 = vld [vmem:[%s5762_s26 + $0xb6] sm:$0xff] }
  0xfd   : > { %749 = vst.msk [vmem:[#allocation2 + $0x240] sm:$0xff] %vm724_vm4, %v665_v53  ;;  %750 = vst.msk [vmem:[#allocation2 + $0x258] sm:$0xff] %vm724_vm4, %v667_v54 }
  0xfe   : > { %1146 = vrot.lane.b32.xlu1 %v6385_v49, %s5707_s27  ;;  %1144 = vrot.lane.b32.xlu0 %v6388_v52, %s5707_s27  ;;  %1754 = vst.msk [vmem:[#allocation2 + $0x1c0] sm:$0xff] %vm288_vm0, %v1718_v47  ;;  %v1007_v47 = vld [vmem:[%s5762_s26 + $0xeb] sm:$0xff] }
  0xff   : > { %5607 = vmatpush1.bf16.msra.mxu0 %v5606_v51  ;;  %1043 = vst.msk [vmem:[#allocation2 + $0x290] sm:$0xff] %vm288_vm0, %v1007_v47  ;;  %v1013_v47 = vld [vmem:[%s5762_s26 + $0x11b] sm:$0xff] }
 0x100   : > { %v669_v63 = vpop.permute.xlu0 %668  ;;  %v671_v0 = vpop.permute.xlu1 %670  ;;  %5608 = vmatprep.subr.bf16.mxu0 %v5710_v16  ;;  %1049 = vst.msk [vmem:[#allocation2 + $0x320] sm:$0xff] %vm288_vm0, %v1013_v47 }
 0x101   : > { %751 = vst.msk [vmem:[#allocation2 + $0x270] sm:$0xff] %vm724_vm4, %v669_v63  ;;  %752 = vst.msk [vmem:[#allocation2 + $0x288] sm:$0xff] %vm724_vm4, %v671_v0  ;;  %v1711_v63 = vld [vmem:[%s5762_s26 + $0x7e] sm:$0xff] }
 0x102   : > { %1150 = vrot.lane.b32.xlu1 %v6410_v59, %s5707_s27  ;;  %1148 = vrot.lane.b32.xlu0 %v6413_v60, %s5707_s27  ;;  %1747 = vst.msk [vmem:[#allocation2 + $0x118] sm:$0xff] %vm288_vm0, %v1711_v63 }
 0x103   : > { %5610 = vmatpush1.bf16.msra.mxu0 %v5609_v6  ;;  %v1798_v58 = vld [vmem:[#allocation2 + $0xd0] sm:$0xff]  ;;  %v1712_v6 = vld [vmem:[%s5762_s26 + $0x86] sm:$0xff] }
 0x104   : > { %v673_v8 = vpop.permute.xlu0 %672  ;;  %v675_v9 = vpop.permute.xlu1 %674  ;;  %1748 = vst.msk [vmem:[#allocation2 + $0x130] sm:$0xff] %vm288_vm0, %v1712_v6 }
 0x105   : > { %753 = vst.msk [vmem:[#allocation2 + $0x2a0] sm:$0xff] %vm724_vm4, %v673_v8  ;;  %754 = vst.msk [vmem:[#allocation2 + $0x2b8] sm:$0xff] %vm724_vm4, %v675_v9  ;;  %v1495_v9 = vld [vmem:[%s5762_s26 + $0x7d] sm:$0xff] }
 0x106   : > { %1154 = vrot.lane.b32.xlu1 %v6436_v4, %s5707_s27  ;;  %1152 = vrot.lane.b32.xlu0 %v6439_v5, %s5707_s27  ;;  %v1828_v61 = vld [vmem:[#allocation2 + $0x1c0] sm:$0xff] }
 0x108   : > { %v677_v17 = vpop.permute.xlu0 %676  ;;  %v679_v18 = vpop.permute.xlu1 %678 }
 0x109   : > { %755 = vst.msk [vmem:[#allocation2 + $0x2d0] sm:$0xff] %vm724_vm4, %v677_v17  ;;  %756 = vst.msk [vmem:[#allocation2 + $0x2e8] sm:$0xff] %vm724_vm4, %v679_v18  ;;  %v1807_v8 = vld [vmem:[#allocation2 + $0x118] sm:$0xff] }
 0x10a   : > { %1556 = vrot.lane.b32.xlu1 %v1484_v11, %s5709_s29  ;;  %1340 = vrot.lane.b32.xlu0 %v6297_v13, %s5708_s28  ;;  %v1704_v13 = vld [vmem:[%s5762_s26 + $0x46] sm:$0xff]  ;;  %v1714_v17 = vld [vmem:[%s5762_s26 + $0x96] sm:$0xff] }
 0x10b   : > { %1740 = vst.msk [vmem:[#allocation2 + $0x70] sm:$0xff] %vm288_vm0, %v1704_v13  ;;  %v1810_v15 = vld [vmem:[#allocation2 + $0x130] sm:$0xff]  ;;  %1750 = vst.msk [vmem:[#allocation2 + $0x160] sm:$0xff] %vm288_vm0, %v1714_v17 }
 0x10c   : > { %v681_v22 = vpop.permute.xlu0 %680  ;;  %v683_v25 = vpop.permute.xlu1 %682 }
 0x10d   : > { %757 = vst.msk [vmem:[#allocation2 + $0x300] sm:$0xff] %vm724_vm4, %v681_v22  ;;  %758 = vst.msk [vmem:[#allocation2 + $0x318] sm:$0xff] %vm724_vm4, %v683_v25  ;;  %v996_v25 = vld [vmem:[%s5762_s26 + $0x93] sm:$0xff] }
 0x10e   : > { %1558 = vrot.lane.b32.xlu1 %v1485_v21, %s5709_s29  ;;  %1342 = vrot.lane.b32.xlu0 %v6294_v12, %s5708_s28  ;;  %v1487_v12 = vld [vmem:[%s5762_s26 + $0x3d] sm:$0xff]  ;;  %1032 = vst.msk [vmem:[#allocation2 + $0x188] sm:$0xff] %vm288_vm0, %v996_v25  ;;  %v1290_v25 = vld [vmem:[%s5762_s26 + $0xd4] sm:$0xff] }
 0x110   : > { %v685_v28 = vpop.permute.xlu0 %684  ;;  %v687_v29 = vpop.permute.xlu1 %686 }
 0x111   : > { %759 = vst.msk [vmem:[#allocation2 + $0x330] sm:$0xff] %vm724_vm4, %v685_v28 }
 0x112   : > { %761 = vst.msk [vmem:[#allocation2 + $0x348] sm:$0x3f] %vm760_vm5, %v687_v29  ;;  %1560 = vrot.lane.b32.xlu1 %v1486_v26, %s5709_s29  ;;  %1344 = vrot.lane.b32.xlu0 %v6320_v24, %s5708_s28  ;;  %v1786_v37 = vld [vmem:[#allocation2 + $0x70] sm:$0xff]  ;;  %v1816_v27 = vld [vmem:[#allocation2 + $0x160] sm:$0xff]  ;;  %v1819_v29 = vld [vmem:[#allocation2 + $0x178] sm:$0xff] }
 0x113   : > { %5453 = vmatprep.mubr.msk.f32.mxu1 %vm288_vm0, %v1786_v37  ;;  %v1282_v26 = vld [vmem:[%s5762_s26 + $0x94] sm:$0xff] }
 0x114   : > { %v835_v34 = vpop.permute.xlu0 %834  ;;  %v837_v35 = vpop.permute.xlu1 %836  ;;  %5454 = vmatmul.mubr.msk.f32.gmra.mrb[4].mxu1 %vm288_vm0, %v1789_v42 }
 0x115   : > { %943 = vst.msk [vmem:[#allocation2] sm:$0xff] %vm942_vm6, %v835_v34  ;;  %944 = vst.msk [vmem:[#allocation2 + $0x18] sm:$0xff] %vm942_vm6, %v837_v35  ;;  %5456 = vmatprep.mubr.msk.f32.mxu1 %vm288_vm0, %v1792_v46  ;;  %v5711_v34 = vmov 0   ;;  %v1717_v35 = vld [vmem:[%s5762_s26 + $0xae] sm:$0xff] }
 0x116   : > { %1562 = vrot.lane.b32.xlu1 %v1487_v12, %s5709_s29  ;;  %1346 = vrot.lane.b32.xlu0 %v6317_v23, %s5708_s28  ;;  %v1489_v23 = vld [vmem:[%s5762_s26 + $0x4d] sm:$0xff]  ;;  %v1283_v12 = vld [vmem:[%s5762_s26 + $0x9c] sm:$0xff]  ;;  %1753 = vst.msk [vmem:[#allocation2 + $0x1a8] sm:$0xff] %vm288_vm0, %v1717_v35 }
 0x117   : > { %5696 = vset.pattern.permute.xlu1 %v5711_v34  ;;  %5695 = vset.pattern.permute.xlu0 %v5711_v34  ;;  %v999_v46 = vld [vmem:[%s5762_s26 + $0xab] sm:$0xff]  ;;  %v1507_v34 = vld [vmem:[%s5762_s26 + $0xdd] sm:$0xff] }
 0x118   : > { %v839_v39 = vpop.permute.xlu0 %838  ;;  %v841_v24 = vpop.permute.xlu1 %840  ;;  %1035 = vst.msk [vmem:[#allocation2 + $0x1d0] sm:$0xff] %vm288_vm0, %v999_v46  ;;  %v1291_v35 = vld [vmem:[%s5762_s26 + $0xdc] sm:$0xff] }
 0x119   : > { %945 = vst.msk [vmem:[#allocation2 + $0x30] sm:$0xff] %vm942_vm6, %v839_v39  ;;  %946 = vst.msk [vmem:[#allocation2 + $0x48] sm:$0xff] %vm942_vm6, %v841_v24  ;;  %v998_v39 = vld [vmem:[%s5762_s26 + $0xa3] sm:$0xff] }
 0x11a   : > { %1564 = vrot.lane.b32.xlu1 %v1488_v36, %s5709_s29  ;;  %1348 = vrot.lane.b32.xlu0 %v6343_v33, %s5708_s28  ;;  %v1795_v33 = vld [vmem:[#allocation2 + $0xb8] sm:$0xff]  ;;  %1034 = vst.msk [vmem:[#allocation2 + $0x1b8] sm:$0xff] %vm288_vm0, %v998_v39  ;;  %v1292_v39 = vld [vmem:[%s5762_s26 + $0xe4] sm:$0xff] }
 0x11b   : > { %5457 = vmatmul.mubr.msk.f32.gmra.mrb[6].mxu1 %vm288_vm0, %v1795_v33  ;;  %v1719_v33 = vld [vmem:[%s5762_s26 + $0xbe] sm:$0xff] }
 0x11c   : > { %v843_v44 = vpop.permute.xlu0 %842  ;;  %v845_v45 = vpop.permute.xlu1 %844  ;;  %5459 = vmatprep.mubr.msk.f32.mxu1 %vm288_vm0, %v1798_v58  ;;  %1755 = vst.msk [vmem:[#allocation2 + $0x1d8] sm:$0xff] %vm288_vm0, %v1719_v33  ;;  %v1293_v33 = vld [vmem:[%s5762_s26 + $0xec] sm:$0xff] }
 0x11d   : > { %947 = vst.msk [vmem:[#allocation2 + $0x60] sm:$0xff] %vm942_vm6, %v843_v44  ;;  %948 = vst.msk [vmem:[#allocation2 + $0x78] sm:$0xff] %vm942_vm6, %v845_v45  ;;  %v1825_v44 = vld [vmem:[#allocation2 + $0x1a8] sm:$0xff] }
 0x11e   : > { %1566 = vrot.lane.b32.xlu1 %v1489_v23, %s5709_s29  ;;  %1350 = vrot.lane.b32.xlu0 %v6340_v32, %s5708_s28  ;;  %v1709_v32 = vld [vmem:[%s5762_s26 + $0x6e] sm:$0xff]  ;;  %v1500_v23 = vld [vmem:[%s5762_s26 + $0xa5] sm:$0xff] }
 0x11f   : > { %1745 = vst.msk [vmem:[#allocation2 + $0xe8] sm:$0xff] %vm288_vm0, %v1709_v32 }
 0x120   : > { %v847_v53 = vpop.permute.xlu0 %846  ;;  %v849_v54 = vpop.permute.xlu1 %848 }
 0x121   : > { %949 = vst.msk [vmem:[#allocation2 + $0x90] sm:$0xff] %vm942_vm6, %v847_v53  ;;  %950 = vst.msk [vmem:[#allocation2 + $0xa8] sm:$0xff] %vm942_vm6, %v849_v54  ;;  %v1501_v53 = vld [vmem:[%s5762_s26 + $0xad] sm:$0xff] }
 0x122   : > { %1568 = vrot.lane.b32.xlu1 %v1490_v48, %s5709_s29  ;;  %1352 = vrot.lane.b32.xlu0 %v6366_v41, %s5708_s28  ;;  %v1285_v54 = vld [vmem:[%s5762_s26 + $0xac] sm:$0xff] }
 0x124   : > { %v851_v50 = vpop.permute.xlu0 %850  ;;  %v853_v51 = vpop.permute.xlu1 %852 }
 0x125   : > { %951 = vst.msk [vmem:[#allocation2 + $0xc0] sm:$0xff] %vm942_vm6, %v851_v50  ;;  %952 = vst.msk [vmem:[#allocation2 + $0xd8] sm:$0xff] %vm942_vm6, %v853_v51  ;;  %v1286_v50 = vld [vmem:[%s5762_s26 + $0xb4] sm:$0xff] }
 0x126   : > { %1570 = vrot.lane.b32.xlu1 %v1491_v56, %s5709_s29  ;;  %1354 = vrot.lane.b32.xlu0 %v6363_v40, %s5708_s28  ;;  %v1801_v0 = vld [vmem:[#allocation2 + $0xe8] sm:$0xff]  ;;  %v1000_v51 = vld [vmem:[%s5762_s26 + $0xb3] sm:$0xff] }
 0x127   : > { %v1493_v40 = vld [vmem:[%s5762_s26 + $0x6d] sm:$0xff]  ;;  %5460 = vmatmul.mubr.msk.f32.gmra.mrb[8].mxu1 %vm288_vm0, %v1801_v0  ;;  %1036 = vst.msk [vmem:[#allocation2 + $0x1e8] sm:$0xff] %vm288_vm0, %v1000_v51 }
 0x128   : > { %v855_v41 = vpop.permute.xlu0 %854  ;;  %v857_v62 = vpop.permute.xlu1 %856  ;;  %5462 = vmatprep.mubr.msk.f32.mxu1 %vm288_vm0, %v1804_v3  ;;  %v1721_v3 = vld [vmem:[%s5762_s26 + $0xce] sm:$0xff] }
 0x129   : > { %953 = vst.msk [vmem:[#allocation2 + $0xf0] sm:$0xff] %vm942_vm6, %v855_v41  ;;  %954 = vst.msk [vmem:[#allocation2 + $0x108] sm:$0xff] %vm942_vm6, %v857_v62  ;;  %v1502_v41 = vld [vmem:[%s5762_s26 + $0xb5] sm:$0xff] }
 0x12a   : > { %1572 = vrot.lane.b32.xlu1 %v1492_v57, %s5709_s29  ;;  %1356 = vrot.lane.b32.xlu0 %v6388_v52, %s5708_s28  ;;  %v1831_v62 = vld [vmem:[#allocation2 + $0x1d8] sm:$0xff]  ;;  %1757 = vst.msk [vmem:[#allocation2 + $0x208] sm:$0xff] %vm288_vm0, %v1721_v3 }
 0x12b   : > { %5463 = vmatmul.mubr.msk.f32.gmra.mrb[10].mxu1 %vm288_vm0, %v1807_v8  ;;  %v1002_v8 = vld [vmem:[%s5762_s26 + $0xc3] sm:$0xff]  ;;  %v1008_v51 = vld [vmem:[%s5762_s26 + $0xf3] sm:$0xff]  ;;  %v1009_v3 = vld [vmem:[%s5762_s26 + $0xfb] sm:$0xff] }
 0x12c   : > { %v859_v55 = vpop.permute.xlu0 %858  ;;  %v861_v1 = vpop.permute.xlu1 %860  ;;  %5465 = vmatprep.mubr.msk.f32.mxu1 %vm288_vm0, %v1810_v15  ;;  %1038 = vst.msk [vmem:[#allocation2 + $0x218] sm:$0xff] %vm288_vm0, %v1002_v8  ;;  %1044 = vst.msk [vmem:[#allocation2 + $0x2a8] sm:$0xff] %vm288_vm0, %v1008_v51  ;;  %v1295_v8 = vld [vmem:[%s5762_s26 + $0xfc] sm:$0xff] }
 0x12d   : > { %955 = vst.msk [vmem:[#allocation2 + $0x120] sm:$0xff] %vm942_vm6, %v859_v55  ;;  %956 = vst.msk [vmem:[#allocation2 + $0x138] sm:$0xff] %vm942_vm6, %v861_v1  ;;  %v1720_v55 = vld [vmem:[%s5762_s26 + $0xc6] sm:$0xff]  ;;  %v1503_v1 = vld [vmem:[%s5762_s26 + $0xbd] sm:$0xff] }
 0x12e   : > { %1574 = vrot.lane.b32.xlu1 %v1493_v40, %s5709_s29  ;;  %1358 = vrot.lane.b32.xlu0 %v6385_v49, %s5708_s28  ;;  %v1713_v49 = vld [vmem:[%s5762_s26 + $0x8e] sm:$0xff]  ;;  %v1001_v40 = vld [vmem:[%s5762_s26 + $0xbb] sm:$0xff]  ;;  %1756 = vst.msk [vmem:[#allocation2 + $0x1f0] sm:$0xff] %vm288_vm0, %v1720_v55  ;;  %1045 = vst.msk [vmem:[#allocation2 + $0x2c0] sm:$0xff] %vm288_vm0, %v1009_v3 }
 0x12f   : > { %1749 = vst.msk [vmem:[#allocation2 + $0x148] sm:$0xff] %vm288_vm0, %v1713_v49  ;;  %1037 = vst.msk [vmem:[#allocation2 + $0x200] sm:$0xff] %vm288_vm0, %v1001_v40 }
 0x130   : > { %v863_v52 = vpop.permute.xlu0 %862  ;;  %v865_v7 = vpop.permute.xlu1 %864 }
 0x131   : > { %957 = vst.msk [vmem:[#allocation2 + $0x150] sm:$0xff] %vm942_vm6, %v863_v52  ;;  %958 = vst.msk [vmem:[#allocation2 + $0x168] sm:$0xff] %vm942_vm6, %v865_v7  ;;  %v1288_v7 = vld [vmem:[%s5762_s26 + $0xc4] sm:$0xff] }
 0x132   : > { %1576 = vrot.lane.b32.xlu1 %v1494_v2, %s5709_s29  ;;  %1360 = vrot.lane.b32.xlu0 %v6413_v60, %s5708_s28  ;;  %v1287_v2 = vld [vmem:[%s5762_s26 + $0xbc] sm:$0xff] }
 0x134   : > { %v867_v10 = vpop.permute.xlu0 %866  ;;  %v869_v11 = vpop.permute.xlu1 %868 }
 0x135   : > { %959 = vst.msk [vmem:[#allocation2 + $0x180] sm:$0xff] %vm942_vm6, %v867_v10  ;;  %960 = vst.msk [vmem:[#allocation2 + $0x198] sm:$0xff] %vm942_vm6, %v869_v11  ;;  %v1834_v10 = vld [vmem:[#allocation2 + $0x1f0] sm:$0xff]  ;;  %v1504_v11 = vld [vmem:[%s5762_s26 + $0xc5] sm:$0xff] }
 0x136   : > { %1578 = vrot.lane.b32.xlu1 %v1495_v9, %s5709_s29  ;;  %1362 = vrot.lane.b32.xlu0 %v6410_v59, %s5708_s28  ;;  %v1813_v20 = vld [vmem:[#allocation2 + $0x148] sm:$0xff] }
 0x137   : > { %v1497_v59 = vld [vmem:[%s5762_s26 + $0x8d] sm:$0xff]  ;;  %5466 = vmatmul.mubr.msk.f32.gmra.mrb[12].mxu1 %vm288_vm0, %v1813_v20 }
 0x138   : > { %v871_v60 = vpop.permute.xlu0 %870  ;;  %v873_v18 = vpop.permute.xlu1 %872  ;;  %5468 = vmatprep.mubr.msk.f32.mxu1 %vm288_vm0, %v1816_v27  ;;  %v1289_v20 = vld [vmem:[%s5762_s26 + $0xcc] sm:$0xff] }
 0x139   : > { %961 = vst.msk [vmem:[#allocation2 + $0x1b0] sm:$0xff] %vm942_vm6, %v871_v60  ;;  %962 = vst.msk [vmem:[#allocation2 + $0x1c8] sm:$0xff] %vm942_vm6, %v873_v18  ;;  %v1003_v60 = vld [vmem:[%s5762_s26 + $0xcb] sm:$0xff]  ;;  %v1722_v18 = vld [vmem:[%s5762_s26 + $0xd6] sm:$0xff] }
 0x13a   : > { %1580 = vrot.lane.b32.xlu1 %v1496_v14, %s5709_s29  ;;  %1364 = vrot.lane.b32.xlu0 %v6439_v5, %s5708_s28  ;;  %v1498_v5 = vld [vmem:[%s5762_s26 + $0x95] sm:$0xff]  ;;  %v1837_v14 = vld [vmem:[#allocation2 + $0x208] sm:$0xff]  ;;  %1039 = vst.msk [vmem:[#allocation2 + $0x230] sm:$0xff] %vm288_vm0, %v1003_v60  ;;  %1758 = vst.msk [vmem:[#allocation2 + $0x220] sm:$0xff] %vm288_vm0, %v1722_v18 }
 0x13b   : > { %5469 = vmatmul.mubr.msk.f32.gmra.mrb[14].mxu1 %vm288_vm0, %v1819_v29 }
 0x13c   : > { %v875_v21 = vpop.permute.xlu0 %874  ;;  %v877_v22 = vpop.permute.xlu1 %876 }
 0x13d   : > { %963 = vst.msk [vmem:[#allocation2 + $0x1e0] sm:$0xff] %vm942_vm6, %v875_v21  ;;  %964 = vst.msk [vmem:[#allocation2 + $0x1f8] sm:$0xff] %vm942_vm6, %v877_v22 }
 0x13e   : > { %1582 = vrot.lane.b32.xlu1 %v1497_v59, %s5709_s29  ;;  %1366 = vrot.lane.b32.xlu0 %v6436_v4, %s5708_s28  ;;  %v1716_v4 = vld [vmem:[%s5762_s26 + $0xa6] sm:$0xff]  ;;  %v1723_v59 = vld [vmem:[%s5762_s26 + $0xde] sm:$0xff] }
 0x13f   : > { %1752 = vst.msk [vmem:[#allocation2 + $0x190] sm:$0xff] %vm288_vm0, %v1716_v4  ;;  %1759 = vst.msk [vmem:[#allocation2 + $0x238] sm:$0xff] %vm288_vm0, %v1723_v59  ;;  %v1781_v59 = vld [vmem:[#allocation2 + $0x48] sm:$0xff] }
 0x140   : > { %v879_v13 = vpop.permute.xlu0 %878  ;;  %v881_v28 = vpop.permute.xlu1 %880 }
 0x141   : > { %965 = vst.msk [vmem:[#allocation2 + $0x210] sm:$0xff] %vm942_vm6, %v879_v13  ;;  %966 = vst.msk [vmem:[#allocation2 + $0x228] sm:$0xff] %vm942_vm6, %v881_v28  ;;  %v1840_v13 = vld [vmem:[#allocation2 + $0x220] sm:$0xff]  ;;  %v1506_v28 = vld [vmem:[%s5762_s26 + $0xd5] sm:$0xff] }
 0x142   : > { %1584 = vrot.lane.b32.xlu1 %v1498_v5, %s5709_s29  ;;  %1368 = vrot.lane.b32.xlu0 %v1282_v26, %s5708_s28  ;;  %v1004_v5 = vld [vmem:[%s5762_s26 + $0xd3] sm:$0xff] }
 0x143   : > { %1040 = vst.msk [vmem:[#allocation2 + $0x248] sm:$0xff] %vm288_vm0, %v1004_v5 }
 0x144   : > { %v883_v36 = vpop.permute.xlu0 %882  ;;  %v885_v37 = vpop.permute.xlu1 %884 }
 0x145   : > { %967 = vst.msk [vmem:[#allocation2 + $0x240] sm:$0xff] %vm942_vm6, %v883_v36  ;;  %968 = vst.msk [vmem:[#allocation2 + $0x258] sm:$0xff] %vm942_vm6, %v885_v37  ;;  %v1725_v36 = vld [vmem:[%s5762_s26 + $0xee] sm:$0xff] }
 0x146   : > { %1586 = vrot.lane.b32.xlu1 %v1499_v31, %s5709_s29  ;;  %1370 = vrot.lane.b32.xlu0 %v1283_v12, %s5708_s28  ;;  %v1822_v43 = vld [vmem:[#allocation2 + $0x190] sm:$0xff]  ;;  %v1843_v29 = vld [vmem:[#allocation2 + $0x238] sm:$0xff]  ;;  %1761 = vst.msk [vmem:[#allocation2 + $0x268] sm:$0xff] %vm288_vm0, %v1725_v36 }
 0x147   : > { %5471 = vmatprep.mubr.msk.f32.mxu1 %vm288_vm0, %v1822_v43  ;;  %v1005_v31 = vld [vmem:[%s5762_s26 + $0xdb] sm:$0xff] }
 0x148   : > { %v887_v24 = vpop.permute.xlu0 %886  ;;  %v889_v42 = vpop.permute.xlu1 %888  ;;  %5472 = vmatmul.mubr.msk.f32.gmra.mrb[16].mxu1 %vm288_vm0, %v1825_v44  ;;  %1041 = vst.msk [vmem:[#allocation2 + $0x260] sm:$0xff] %vm288_vm0, %v1005_v31  ;;  %v1508_v44 = vld [vmem:[%s5762_s26 + $0xe5] sm:$0xff]  ;;  %v1787_v36 = vld [vmem:[#allocation2 + $0x78] sm:$0xff] }
 0x149   : > { %969 = vst.msk [vmem:[#allocation2 + $0x270] sm:$0xff] %vm942_vm6, %v887_v24  ;;  %970 = vst.msk [vmem:[#allocation2 + $0x288] sm:$0xff] %vm942_vm6, %v889_v42  ;;  %5474 = vmatprep.mubr.msk.f32.mxu1 %vm288_vm0, %v1828_v61  ;;  %v1006_v24 = vld [vmem:[%s5762_s26 + $0xe3] sm:$0xff] }
 0x14a   : > { %1372 = vrot.lane.b32.xlu1 %v1284_v38, %s5708_s28  ;;  %1156 = vrot.lane.b32.xlu0 %v1282_v26, %s5707_s27  ;;  %1042 = vst.msk [vmem:[#allocation2 + $0x278] sm:$0xff] %vm288_vm0, %v1006_v24 }
 0x14c   : > { %v891_v45 = vpop.permute.xlu0 %890  ;;  %v893_v48 = vpop.permute.xlu1 %892  ;;  %5475 = vmatmul.mubr.msk.f32.gmra.mrb[18].mxu1 %vm288_vm0, %v1831_v62 }
 0x14d   : > { %971 = vst.msk [vmem:[#allocation2 + $0x2a0] sm:$0xff] %vm942_vm6, %v891_v45  ;;  %972 = vst.msk [vmem:[#allocation2 + $0x2b8] sm:$0xff] %vm942_vm6, %v893_v48  ;;  %5477 = vmatprep.mubr.msk.f32.mxu1 %vm288_vm0, %v1834_v10  ;;  %v1849_v45 = vld [vmem:[#allocation2 + $0x268] sm:$0xff] }
 0x14e   : > { %1158 = vrot.lane.b32.xlu1 %v1283_v12, %s5707_s27  ;;  %1588 = vrot.lane.b32.xlu0 %v1500_v23, %s5709_s29  ;;  %v1724_v12 = vld [vmem:[%s5762_s26 + $0xe6] sm:$0xff] }
 0x14f   : > { %1760 = vst.msk [vmem:[#allocation2 + $0x250] sm:$0xff] %vm288_vm0, %v1724_v12 }
 0x150   : > { %v895_v32 = vpop.permute.xlu0 %894  ;;  %v897_v56 = vpop.permute.xlu1 %896  ;;  %5478 = vmatmul.mubr.msk.f32.gmra.mrb[20].mxu1 %vm288_vm0, %v1837_v14  ;;  %v1010_v14 = vld [vmem:[%s5762_s26 + $0x103] sm:$0xff] }
 0x151   : > { %973 = vst.msk [vmem:[#allocation2 + $0x2d0] sm:$0xff] %vm942_vm6, %v895_v32  ;;  %974 = vst.msk [vmem:[#allocation2 + $0x2e8] sm:$0xff] %vm942_vm6, %v897_v56  ;;  %5480 = vmatprep.mubr.msk.f32.mxu1 %vm288_vm0, %v1840_v13  ;;  %v1727_v32 = vld [vmem:[%s5762_s26 + $0xfe] sm:$0xff]  ;;  %v1513_v13 = vld [vmem:[%s5762_s26 + $0x10d] sm:$0xff] }
 0x152   : > { %1590 = vrot.lane.b32.xlu1 %v1501_v53, %s5709_s29  ;;  %1374 = vrot.lane.b32.xlu0 %v1285_v54, %s5708_s28  ;;  %v1726_v53 = vld [vmem:[%s5762_s26 + $0xf6] sm:$0xff]  ;;  %1763 = vst.msk [vmem:[#allocation2 + $0x298] sm:$0xff] %vm288_vm0, %v1727_v32  ;;  %1046 = vst.msk [vmem:[#allocation2 + $0x2d8] sm:$0xff] %vm288_vm0, %v1010_v14 }
 0x153   : > { %1762 = vst.msk [vmem:[#allocation2 + $0x280] sm:$0xff] %vm288_vm0, %v1726_v53  ;;  %v1515_v53 = vld [vmem:[%s5762_s26 + $0x11d] sm:$0xff] }
 0x154   : > { %v899_v57 = vpop.permute.xlu0 %898  ;;  %v901_v58 = vpop.permute.xlu1 %900  ;;  %5481 = vmatmul.mubr.msk.f32.gmra.mrb[22].mxu1 %vm288_vm0, %v1843_v29  ;;  %v1784_v29 = vld [vmem:[#allocation2 + $0x60] sm:$0xff] }
 0x155   : > { %975 = vst.msk [vmem:[#allocation2 + $0x300] sm:$0xff] %vm942_vm6, %v899_v57  ;;  %976 = vst.msk [vmem:[#allocation2 + $0x318] sm:$0xff] %vm942_vm6, %v901_v58  ;;  %v1294_v57 = vld [vmem:[%s5762_s26 + $0xf4] sm:$0xff]  ;;  %v1299_v32 = vld [vmem:[%s5762_s26 + $0x11c] sm:$0xff] }
 0x156   : > { %1376 = vrot.lane.b32.xlu1 %v1286_v50, %s5708_s28  ;;  %1160 = vrot.lane.b32.xlu0 %v1284_v38, %s5707_s27  ;;  %v1846_v23 = vld [vmem:[#allocation2 + $0x250] sm:$0xff] }
 0x157   : > { %5483 = vmatprep.mubr.msk.f32.mxu1 %vm288_vm0, %v1846_v23  ;;  %v1514_v23 = vld [vmem:[%s5762_s26 + $0x115] sm:$0xff] }
 0x158   : > { %v903_v63 = vpop.permute.xlu0 %902  ;;  %v905_v0 = vpop.permute.xlu1 %904  ;;  %5484 = vmatmul.mubr.msk.f32.gmra.mrb[24].mxu1 %vm288_vm0, %v1849_v45 }
 0x159   : > { %977 = vst.msk [vmem:[#allocation2 + $0x330] sm:$0xff] %vm942_vm6, %v903_v63  ;;  %v1772_v63 = vld [vmem:[#allocation2] sm:$0xff]  ;;  %v1855_v40 = vld [vmem:[#allocation2 + $0x298] sm:$0xff] }
 0x15a   : > { %979 = vst.msk [vmem:[#allocation2 + $0x348] sm:$0x3f] %vm978_vm7, %v905_v0  ;;  %1162 = vrot.lane.b32.xlu1 %v1285_v54, %s5707_s27  ;;  %1592 = vrot.lane.b32.xlu0 %v1502_v41, %s5709_s29  ;;  %v1509_v54 = vld [vmem:[%s5762_s26 + $0xed] sm:$0xff]  ;;  %v1852_v62 = vld [vmem:[#allocation2 + $0x280] sm:$0xff]  ;;  %v1510_v0 = vld [vmem:[%s5762_s26 + $0xf5] sm:$0xff] }
 0x15b   : > { %5486 = vmatprep.mubr.msk.f32.mxu1 %vm288_vm0, %v1852_v62 }
 0x15c   : > { %v1125_v6 = vpop.permute.xlu0 %1124  ;;  %v1127_v52 = vpop.permute.xlu1 %1126  ;;  %5487 = vmatmul.mubr.msk.f32.gmra.mrb[26].mxu1 %vm288_vm0, %v1855_v40 }
 0x15d   : > { %1232 = vst.msk [vmem:[#allocation2 + $0x8] sm:$0xff] %vm506_vm2, %v1125_v6  ;;  %1233 = vst.msk [vmem:[#allocation2 + $0x20] sm:$0xff] %vm506_vm2, %v1127_v52  ;;  %v1511_v6 = vld [vmem:[%s5762_s26 + $0xfd] sm:$0xff]  ;;  %v1728_v52 = vld [vmem:[%s5762_s26 + $0x106] sm:$0xff] }
 0x15e   : > { %1594 = vrot.lane.b32.xlu1 %v1503_v1, %s5709_s29  ;;  %1378 = vrot.lane.b32.xlu0 %v1287_v2, %s5708_s28  ;;  %1764 = vst.msk [vmem:[#allocation2 + $0x2b0] sm:$0xff] %vm288_vm0, %v1728_v52 }
 0x160   : > { %v1129_v49 = vpop.permute.xlu0 %1128  ;;  %v1131_v9 = vpop.permute.xlu1 %1130 }
 0x161   : > { %1234 = vst.msk [vmem:[#allocation2 + $0x38] sm:$0xff] %vm506_vm2, %v1129_v49  ;;  %1235 = vst.msk [vmem:[#allocation2 + $0x50] sm:$0xff] %vm506_vm2, %v1131_v9  ;;  %v1729_v49 = vld [vmem:[%s5762_s26 + $0x10e] sm:$0xff] }
 0x162   : > { %1380 = vrot.lane.b32.xlu1 %v1288_v7, %s5708_s28  ;;  %1164 = vrot.lane.b32.xlu0 %v1286_v50, %s5707_s27  ;;  %1765 = vst.msk [vmem:[#allocation2 + $0x2c8] sm:$0xff] %vm288_vm0, %v1729_v49  ;;  %v1734_v49 = vld [vmem:[%s5762_s26 + $0x136] sm:$0xff] }
 0x163   : > { %1770 = vst.msk [vmem:[#allocation2 + $0x340] sm:$0xff] %vm288_vm0, %v1734_v49  ;;  %v2570_v49 = vld [vmem:[%s8329_s1 + $0x68] sm:$0xff] }
 0x164   : > { %v1133_v15 = vpop.permute.xlu0 %1132  ;;  %v1135_v17 = vpop.permute.xlu1 %1134 }
 0x165   : > { %1236 = vst.msk [vmem:[#allocation2 + $0x68] sm:$0xff] %vm506_vm2, %v1133_v15  ;;  %1237 = vst.msk [vmem:[#allocation2 + $0x80] sm:$0xff] %vm506_vm2, %v1135_v17  ;;  %v1778_v15 = vld [vmem:[#allocation2 + $0x30] sm:$0xff]  ;;  %v1296_v17 = vld [vmem:[%s5762_s26 + $0x104] sm:$0xff] }
 0x166   : > { %1166 = vrot.lane.b32.xlu1 %v1287_v2, %s5707_s27  ;;  %1596 = vrot.lane.b32.xlu0 %v1504_v11, %s5709_s29 }
 0x168   : > { %v1137_v21 = vpop.permute.xlu0 %1136  ;;  %v1139_v22 = vpop.permute.xlu1 %1138 }
 0x169   : > { %1238 = vst.msk [vmem:[#allocation2 + $0x98] sm:$0xff] %vm506_vm2, %v1137_v21  ;;  %1239 = vst.msk [vmem:[#allocation2 + $0xb0] sm:$0xff] %vm506_vm2, %v1139_v22  ;;  %v1512_v21 = vld [vmem:[%s5762_s26 + $0x105] sm:$0xff] }
 0x16a   : > { %1598 = vrot.lane.b32.xlu1 %v1505_v19, %s5709_s29  ;;  %1382 = vrot.lane.b32.xlu0 %v1289_v20, %s5708_s28  ;;  %v1861_v22 = vld [vmem:[#allocation2 + $0x2c8] sm:$0xff] }
 0x16c   : > { %v1141_v26 = vpop.permute.xlu0 %1140  ;;  %v1143_v27 = vpop.permute.xlu1 %1142 }
 0x16d   : > { %1240 = vst.msk [vmem:[#allocation2 + $0xc8] sm:$0xff] %vm506_vm2, %v1141_v26  ;;  %1241 = vst.msk [vmem:[#allocation2 + $0xe0] sm:$0xff] %vm506_vm2, %v1143_v27  ;;  %v1011_v27 = vld [vmem:[%s5762_s26 + $0x10b] sm:$0xff] }
 0x16e   : > { %1384 = vrot.lane.b32.xlu1 %v1290_v25, %s5708_s28  ;;  %1168 = vrot.lane.b32.xlu0 %v1288_v7, %s5707_s27  ;;  %v1775_v7 = vld [vmem:[#allocation2 + $0x18] sm:$0xff]  ;;  %1047 = vst.msk [vmem:[#allocation2 + $0x2f0] sm:$0xff] %vm288_vm0, %v1011_v27 }
 0x170   : > { %v1145_v30 = vpop.permute.xlu0 %1144  ;;  %v1147_v4 = vpop.permute.xlu1 %1146 }
 0x171   : > { %1242 = vst.msk [vmem:[#allocation2 + $0xf8] sm:$0xff] %vm506_vm2, %v1145_v30  ;;  %1243 = vst.msk [vmem:[#allocation2 + $0x110] sm:$0xff] %vm506_vm2, %v1147_v4  ;;  %v1297_v30 = vld [vmem:[%s5762_s26 + $0x10c] sm:$0xff]  ;;  %v1731_v4 = vld [vmem:[%s5762_s26 + $0x11e] sm:$0xff] }
 0x172   : > { %1170 = vrot.lane.b32.xlu1 %v1289_v20, %s5707_s27  ;;  %1600 = vrot.lane.b32.xlu0 %v1506_v28, %s5709_s29  ;;  %v1858_v20 = vld [vmem:[#allocation2 + $0x2b0] sm:$0xff]  ;;  %1767 = vst.msk [vmem:[#allocation2 + $0x2f8] sm:$0xff] %vm288_vm0, %v1731_v4  ;;  %v1519_v4 = vld [vmem:[%s5762_s26 + $0x13d] sm:$0x3f] }
 0x173   : > { %5489 = vmatprep.mubr.msk.f32.mxu1 %vm288_vm0, %v1858_v20  ;;  %v1730_v28 = vld [vmem:[%s5762_s26 + $0x116] sm:$0xff] }
 0x174   : > { %v1149_v37 = vpop.permute.xlu0 %1148  ;;  %v1151_v38 = vpop.permute.xlu1 %1150  ;;  %5490 = vmatmul.mubr.msk.f32.gmra.mrb[28].mxu1 %vm288_vm0, %v1861_v22  ;;  %1766 = vst.msk [vmem:[#allocation2 + $0x2e0] sm:$0xff] %vm288_vm0, %v1730_v28  ;;  %v1876_v22 = vld [vmem:[#allocation2 + $0x340] sm:$0xff] }
 0x175   : > { %1244 = vst.msk [vmem:[#allocation2 + $0x128] sm:$0xff] %vm506_vm2, %v1149_v37  ;;  %1245 = vst.msk [vmem:[#allocation2 + $0x140] sm:$0xff] %vm506_vm2, %v1151_v38  ;;  %v1298_v37 = vld [vmem:[%s5762_s26 + $0x114] sm:$0xff] }
 0x176   : > { %1602 = vrot.lane.b32.xlu1 %v1507_v34, %s5709_s29  ;;  %1386 = vrot.lane.b32.xlu0 %v1291_v35, %s5708_s28 }
 0x178   : > { %v1153_v42 = vpop.permute.xlu0 %1152  ;;  %v1155_v43 = vpop.permute.xlu1 %1154 }
 0x179   : > { %1246 = vst.msk [vmem:[#allocation2 + $0x158] sm:$0xff] %vm506_vm2, %v1153_v42  ;;  %1247 = vst.msk [vmem:[#allocation2 + $0x170] sm:$0xff] %vm506_vm2, %v1155_v43  ;;  %v1790_v43 = vld [vmem:[#allocation2 + $0x90] sm:$0xff] }
 0x17a   : > { %1388 = vrot.lane.b32.xlu1 %v1292_v39, %s5708_s28  ;;  %1172 = vrot.lane.b32.xlu0 %v1290_v25, %s5707_s27 }
 0x17b   : > { %v1864_v42 = vld [vmem:[#allocation2 + $0x2e0] sm:$0xff] }
 0x17c   : > { %v1341_v48 = vpop.permute.xlu0 %1340  ;;  %v1557_v46 = vpop.permute.xlu1 %1556  ;;  %5492 = vmatprep.mubr.msk.f32.mxu1 %vm288_vm0, %v1864_v42 }
 0x17d   : > { %1448 = vst.msk [vmem:[#allocation2 + $0x8] sm:$0xff] %vm724_vm4, %v1341_v48 }
 0x17e   : > { %1664 = vst.msk [vmem:[#allocation2 + $0x8] sm:$0xff] %vm942_vm6, %v1557_v46  ;;  %1174 = vrot.lane.b32.xlu1 %v1291_v35, %s5707_s27  ;;  %1604 = vrot.lane.b32.xlu0 %v1508_v44, %s5709_s29  ;;  %v1012_v35 = vld [vmem:[%s5762_s26 + $0x113] sm:$0xff] }
 0x17f   : > { %1048 = vst.msk [vmem:[#allocation2 + $0x308] sm:$0xff] %vm288_vm0, %v1012_v35  ;;  %v1867_v44 = vld [vmem:[#allocation2 + $0x2f8] sm:$0xff] }
 0x180   : > { %v1343_v56 = vpop.permute.xlu0 %1342  ;;  %v1559_v50 = vpop.permute.xlu1 %1558  ;;  %5493 = vmatmul.mubr.msk.f32.gmra.mrb[30].mxu1 %vm288_vm0, %v1867_v44  ;;  %v1817_v44 = vld [vmem:[#allocation2 + $0x168] sm:$0xff] }
 0x181   : > { %1449 = vst.msk [vmem:[#allocation2 + $0x20] sm:$0xff] %vm724_vm4, %v1343_v56  ;;  %v1733_v56 = vld [vmem:[%s5762_s26 + $0x12e] sm:$0xff] }
 0x182   : > { %1665 = vst.msk [vmem:[#allocation2 + $0x20] sm:$0xff] %vm942_vm6, %v1559_v50  ;;  %1606 = vrot.lane.b32.xlu1 %v1509_v54, %s5709_s29  ;;  %1390 = vrot.lane.b32.xlu0 %v1293_v33, %s5708_s28  ;;  %v1732_v54 = vld [vmem:[%s5762_s26 + $0x126] sm:$0xff] }
 0x183   : > { %1768 = vst.msk [vmem:[#allocation2 + $0x310] sm:$0xff] %vm288_vm0, %v1732_v54  ;;  %1769 = vst.msk [vmem:[#allocation2 + $0x328] sm:$0xff] %vm288_vm0, %v1733_v56  ;;  %v2562_v54 = vld [vmem:[%s8329_s1 + $0x28] sm:$0xff] }
 0x184   : > { %v1345_v58 = vpop.permute.xlu0 %1344  ;;  %v1561_v61 = vpop.permute.xlu1 %1560 }
 0x185   : > { %1450 = vst.msk [vmem:[#allocation2 + $0x38] sm:$0xff] %vm724_vm4, %v1345_v58  ;;  %v1773_v41 = vld [vmem:[#allocation2 + $0x8] sm:$0xff] }
 0x186   : > { %1666 = vst.msk [vmem:[#allocation2 + $0x38] sm:$0xff] %vm942_vm6, %v1561_v61  ;;  %1392 = vrot.lane.b32.xlu1 %v1294_v57, %s5708_s28  ;;  %1176 = vrot.lane.b32.xlu0 %v1292_v39, %s5707_s27  ;;  %v1014_v58 = vld [vmem:[%s5762_s26 + $0x123] sm:$0xff] }
 0x187   : > { %2095 = vmatprep.mubr.f32.mxu0 %v1773_v41  ;;  %v1796_v61 = vld [vmem:[#allocation2 + $0xc0] sm:$0xff]  ;;  %1050 = vst.msk [vmem:[#allocation2 + $0x338] sm:$0xff] %vm288_vm0, %v1014_v58 }
 0x188   : > { %2096 = vmatmul.mubr.f32.vlgmr.msra.gmra.mrb[0].mxu0 %v1772_v63  ;;  %v1347_v55 = vpop.permute.xlu0 %1346  ;;  %v1563_v1 = vpop.permute.xlu1 %1562  ;;  %v1300_v41 = vld [vmem:[%s5762_s26 + $0x124] sm:$0xff] }
 0x189   : > { %1451 = vst.msk [vmem:[#allocation2 + $0x50] sm:$0xff] %vm724_vm4, %v1347_v55  ;;  %v1776_v2 = vld [vmem:[#allocation2 + $0x20] sm:$0xff]  ;;  %v1799_v55 = vld [vmem:[#allocation2 + $0xd8] sm:$0xff] }
 0x18a   : > { %1667 = vst.msk [vmem:[#allocation2 + $0x50] sm:$0xff] %vm942_vm6, %v1563_v1  ;;  %1178 = vrot.lane.b32.xlu1 %v1293_v33, %s5707_s27  ;;  %1608 = vrot.lane.b32.xlu0 %v1510_v0, %s5709_s29  ;;  %v1793_v33 = vld [vmem:[#allocation2 + $0xa8] sm:$0xff]  ;;  %v1870_v40 = vld [vmem:[#allocation2 + $0x310] sm:$0xff] }
 0x18b   : > { %2100 = vmatprep.mubr.f32.mxu0 %v1776_v2  ;;  %v1516_v1 = vld [vmem:[%s5762_s26 + $0x125] sm:$0xff]  ;;  %5495 = vmatprep.mubr.msk.f32.mxu1 %vm288_vm0, %v1870_v40 }
 0x18c   : > { %2101 = vmatmul.mubr.f32.gmra.mrb[2].mxu0 %v1775_v7  ;;  %v1349_v9 = vpop.permute.xlu0 %1348  ;;  %v1565_v10 = vpop.permute.xlu1 %1564  ;;  %v1873_v2 = vld [vmem:[#allocation2 + $0x328] sm:$0xff] }
 0x18d   : > { %1452 = vst.msk [vmem:[#allocation2 + $0x68] sm:$0xff] %vm724_vm4, %v1349_v9  ;;  %v1779_v11 = vld [vmem:[#allocation2 + $0x38] sm:$0xff]  ;;  %5496 = vmatmul.mubr.msk.f32.gmra.mrb[32].mxu1 %vm288_vm0, %v1873_v2  ;;  %v1015_v7 = vld [vmem:[%s5762_s26 + $0x12b] sm:$0x3f] }
 0x18e   : > { %1668 = vst.msk [vmem:[#allocation2 + $0x68] sm:$0xff] %vm942_vm6, %v1565_v10  ;;  %1610 = vrot.lane.b32.xlu1 %v1511_v6, %s5709_s29  ;;  %1394 = vrot.lane.b32.xlu0 %v1295_v8, %s5708_s28  ;;  %v1517_v9 = vld [vmem:[%s5762_s26 + $0x12d] sm:$0xff]  ;;  %v2568_v2 = vld [vmem:[%s8329_s1 + $0x58] sm:$0xff] }
 0x18f   : > { %2105 = vmatprep.mubr.f32.mxu0 %v1779_v11  ;;  %1051 = vst.msk [vmem:[#allocation2 + $0x350] sm:$0x3f] %vm324_vm1, %v1015_v7  ;;  %v1301_v10 = vld [vmem:[%s5762_s26 + $0x12c] sm:$0xff]  ;;  %v1735_v11 = vld [vmem:[%s5762_s26 + $0x13e] sm:$0x3f]  ;;  %5498 = vmatprep.mubr.msk.f32.mxu1 %vm288_vm0, %v1876_v22 }
 0x190   : > { %2106 = vmatmul.mubr.f32.gmra.mrb[4].mxu0 %v1778_v15  ;;  %v1351_v60 = vpop.permute.xlu0 %1350  ;;  %v1567_v18 = vpop.permute.xlu1 %1566  ;;  %1771 = vst.msk [vmem:[#allocation2 + $0x358] sm:$0x3f] %vm324_vm1, %v1735_v11  ;;  %v1826_v7 = vld [vmem:[#allocation2 + $0x1b0] sm:$0xff] }
 0x191   : > { %1453 = vst.msk [vmem:[#allocation2 + $0x80] sm:$0xff] %vm724_vm4, %v1351_v60  ;;  %v1782_v19 = vld [vmem:[#allocation2 + $0x50] sm:$0xff]  ;;  %v1805_v60 = vld [vmem:[#allocation2 + $0x108] sm:$0xff] }
 0x192   : > { %1669 = vst.msk [vmem:[#allocation2 + $0x80] sm:$0xff] %vm942_vm6, %v1567_v18  ;;  %1396 = vrot.lane.b32.xlu1 %v1296_v17, %s5708_s28  ;;  %1180 = vrot.lane.b32.xlu0 %v1294_v57, %s5707_s27  ;;  %v1302_v18 = vld [vmem:[%s5762_s26 + $0x134] sm:$0xff] }
 0x193   : > { %2110 = vmatprep.mubr.f32.mxu0 %v1782_v19 }
 0x194   : > { %2111 = vmatmul.mubr.f32.gmra.mrb[6].mxu0 %v1781_v59  ;;  %v1353_v25 = vpop.permute.xlu0 %1352  ;;  %v1569_v5 = vpop.permute.xlu1 %1568 }
 0x195   : > { %1454 = vst.msk [vmem:[#allocation2 + $0x98] sm:$0xff] %vm724_vm4, %v1353_v25  ;;  %v1785_v26 = vld [vmem:[#allocation2 + $0x68] sm:$0xff] }
 0x196   : > { %1670 = vst.msk [vmem:[#allocation2 + $0x98] sm:$0xff] %vm942_vm6, %v1569_v5  ;;  %1182 = vrot.lane.b32.xlu1 %v1295_v8, %s5707_s27  ;;  %1612 = vrot.lane.b32.xlu0 %v1512_v21, %s5709_s29  ;;  %v1802_v8 = vld [vmem:[#allocation2 + $0xf0] sm:$0xff]  ;;  %v1808_v21 = vld [vmem:[#allocation2 + $0x120] sm:$0xff] }
 0x197   : > { %2115 = vmatprep.mubr.f32.mxu0 %v1785_v26  ;;  %v1087_v25 = vld [vmem:[%s5762_s26 + $0x12c] sm:$0x3f]  ;;  %v1518_v5 = vld [vmem:[%s5762_s26 + $0x135] sm:$0xff]  ;;  %v5712_v26 = vmov 0.0  }
 0x198   : > { %2116 = vmatmul.mubr.f32.gmra.mrb[8].mxu0 %v1784_v29  ;;  %v1355_v31 = vpop.permute.xlu0 %1354  ;;  %v1571_v12 = vpop.permute.xlu1 %1570  ;;  %2849 = vst.msk [vmem:[#allocation3 + $0x131] sm:$0xff] %vm288_vm0, %v5712_v26  ;;  %2850 = vst.msk [vmem:[#allocation3 + $0x139] sm:$0xff] %vm288_vm0, %v5712_v26  ;;  %v1879_v27 = vld [vmem:[#allocation2 + $0x358] sm:$0x3f] }
 0x199   : > { %1455 = vst.msk [vmem:[#allocation2 + $0xb0] sm:$0xff] %vm724_vm4, %v1355_v31  ;;  %v1788_v34 = vld [vmem:[#allocation2 + $0x80] sm:$0xff]  ;;  %5499 = vmatmul.mubr.msk.f32.gmra.mrb[34].mxu1 %vm288_vm0, %v1879_v27  ;;  %v2575_v27 = vld [vmem:[%s8329_s1 + $0x90] sm:$0xff] }
 0x19a   : > { %1671 = vst.msk [vmem:[#allocation2 + $0xb0] sm:$0xff] %vm942_vm6, %v1571_v12  ;;  %1614 = vrot.lane.b32.xlu1 %v1513_v13, %s5709_s29  ;;  %1398 = vrot.lane.b32.xlu0 %v1297_v30, %s5708_s28  ;;  %v1303_v31 = vld [vmem:[%s5762_s26 + $0x13c] sm:$0x3f] }
 0x19b   : > { %2120 = vmatprep.mubr.f32.mxu0 %v1788_v34  ;;  %2809 = vst.msk [vmem:[#allocation3] sm:$0xff] %vm288_vm0, %v5712_v26  ;;  %2810 = vst.msk [vmem:[#allocation3 + $0x8] sm:$0xff] %vm288_vm0, %v5712_v26 }
 0x19c   : > { %2121 = vmatmul.mubr.f32.gmra.mrb[10].mxu0 %v1787_v36  ;;  %v1357_v38 = vpop.permute.xlu0 %1356  ;;  %v1573_v39 = vpop.permute.xlu1 %1572  ;;  %2851 = vst.msk [vmem:[#allocation3 + $0x141] sm:$0x7] %vm2811_vm8, %v5712_v26  ;;  %2812 = vst.msk [vmem:[#allocation3 + $0x10] sm:$0x7] %vm2811_vm8, %v5712_v26  ;;  %v1832_v26 = vld [vmem:[#allocation2 + $0x1e0] sm:$0xff] }
 0x19d   : > { %1456 = vst.msk [vmem:[#allocation2 + $0xc8] sm:$0xff] %vm724_vm4, %v1357_v38  ;;  %v1791_v24 = vld [vmem:[#allocation2 + $0x98] sm:$0xff]  ;;  %v1814_v38 = vld [vmem:[#allocation2 + $0x150] sm:$0xff] }
 0x19e   : > { %1672 = vst.msk [vmem:[#allocation2 + $0xc8] sm:$0xff] %vm942_vm6, %v1573_v39  ;;  %1400 = vrot.lane.b32.xlu1 %v1298_v37, %s5708_s28  ;;  %1184 = vrot.lane.b32.xlu0 %v1296_v17, %s5707_s27  ;;  %v2558_v39 = vld [vmem:[%s8329_s1 + $0x8] sm:$0xff] }
 0x19f   : > { %2125 = vmatprep.mubr.f32.mxu0 %v1791_v24  ;;  %v4326_v36 = vld [vmem:[#allocation3 + $0x136] sm:$0xff]  ;;  %v2557_v24 = vld [vmem:[%s8329_s1] sm:$0xff] }
 0x1a0   : > { %2126 = vmatmul.mubr.f32.gmra.mrb[12].mxu0 %v1790_v43  ;;  %v1359_v45 = vpop.permute.xlu0 %1358  ;;  %v1575_v48 = vpop.permute.xlu1 %1574  ;;  %4362 = vst.msk [vmem:[#allocation2 + $0x340] sm:$0xff] %vm288_vm0, %v4326_v36 }
 0x1a1   : > { %1457 = vst.msk [vmem:[#allocation2 + $0xe0] sm:$0xff] %vm724_vm4, %v1359_v45  ;;  %v1794_v46 = vld [vmem:[#allocation2 + $0xb0] sm:$0xff] }
 0x1a2   : > { %1673 = vst.msk [vmem:[#allocation2 + $0xe0] sm:$0xff] %vm942_vm6, %v1575_v48  ;;  %1186 = vrot.lane.b32.xlu1 %v1297_v30, %s5707_s27  ;;  %1616 = vrot.lane.b32.xlu0 %v1514_v23, %s5709_s29  ;;  %v1811_v30 = vld [vmem:[#allocation2 + $0x138] sm:$0xff]  ;;  %v2559_v45 = vld [vmem:[%s8329_s1 + $0x10] sm:$0xff] }
 0x1a3   : > { %2130 = vmatprep.mubr.f32.mxu0 %v1794_v46  ;;  %v2560_v48 = vld [vmem:[%s8329_s1 + $0x18] sm:$0xff] }
 0x1a4   : > { %2131 = vmatmul.mubr.f32.gmra.mrb[14].mxu0 %v1793_v33  ;;  %v1361_v50 = vpop.permute.xlu0 %1360  ;;  %v1577_v51 = vpop.permute.xlu1 %1576 }
 0x1a5   : > { %1458 = vst.msk [vmem:[#allocation2 + $0xf8] sm:$0xff] %vm724_vm4, %v1361_v50  ;;  %v1797_v57 = vld [vmem:[#allocation2 + $0xc8] sm:$0xff]  ;;  %v1820_v50 = vld [vmem:[#allocation2 + $0x180] sm:$0xff] }
 0x1a6   : > { %1674 = vst.msk [vmem:[#allocation2 + $0xf8] sm:$0xff] %vm942_vm6, %v1577_v51  ;;  %1618 = vrot.lane.b32.xlu1 %v1515_v53, %s5709_s29  ;;  %1402 = vrot.lane.b32.xlu0 %v1299_v32, %s5708_s28  ;;  %v2561_v53 = vld [vmem:[%s8329_s1 + $0x20] sm:$0xff]  ;;  %v2563_v51 = vld [vmem:[%s8329_s1 + $0x30] sm:$0xff] }
 0x1a7   : > { %2135 = vmatprep.mubr.f32.mxu0 %v1797_v57  ;;  %v2564_v57 = vld [vmem:[%s8329_s1 + $0x38] sm:$0xff] }
 0x1a8   : > { %2136 = vmatmul.mubr.f32.gmra.mrb[16].mxu0 %v1796_v61  ;;  %v1363_v62 = vpop.permute.xlu0 %1362  ;;  %v1579_v63 = vpop.permute.xlu1 %1578 }
 0x1a9   : > { %1459 = vst.msk [vmem:[#allocation2 + $0x110] sm:$0xff] %vm724_vm4, %v1363_v62  ;;  %v1800_v0 = vld [vmem:[#allocation2 + $0xe0] sm:$0xff]  ;;  %v1823_v62 = vld [vmem:[#allocation2 + $0x198] sm:$0xff] }
 0x1aa   : > { %1675 = vst.msk [vmem:[#allocation2 + $0x110] sm:$0xff] %vm942_vm6, %v1579_v63  ;;  %1404 = vrot.lane.b32.xlu1 %v1300_v41, %s5708_s28  ;;  %1188 = vrot.lane.b32.xlu0 %v1298_v37, %s5707_s27  ;;  %v4327_v37 = vld [vmem:[#allocation3 + $0x13e] sm:$0x3f] }
 0x1ab   : > { %2140 = vmatprep.mubr.f32.mxu0 %v1800_v0  ;;  %4363 = vst.msk [vmem:[#allocation2 + $0x358] sm:$0x3f] %vm324_vm1, %v4327_v37  ;;  %v2565_v63 = vld [vmem:[%s8329_s1 + $0x40] sm:$0xff]  ;;  %v2566_v0 = vld [vmem:[%s8329_s1 + $0x48] sm:$0xff] }
 0x1ac   : > { %2141 = vmatmul.mubr.f32.gmra.mrb[18].mxu0 %v1799_v55  ;;  %v1365_v3 = vpop.permute.xlu0 %1364  ;;  %v1581_v6 = vpop.permute.xlu1 %1580 }
 0x1ad   : > { %1460 = vst.msk [vmem:[#allocation2 + $0x128] sm:$0xff] %vm724_vm4, %v1365_v3  ;;  %v1803_v52 = vld [vmem:[#allocation2 + $0xf8] sm:$0xff] }
 0x1ae   : > { %1676 = vst.msk [vmem:[#allocation2 + $0x128] sm:$0xff] %vm942_vm6, %v1581_v6  ;;  %1190 = vrot.lane.b32.xlu1 %v1299_v32, %s5707_s27  ;;  %1620 = vrot.lane.b32.xlu0 %v1516_v1, %s5709_s29  ;;  %v2567_v1 = vld [vmem:[%s8329_s1 + $0x50] sm:$0xff] }
 0x1af   : > { %2145 = vmatprep.mubr.f32.mxu0 %v1803_v52 }
 0x1b0   : > { %2146 = vmatmul.mubr.f32.gmra.mrb[20].mxu0 %v1802_v8  ;;  %v1367_v14 = vpop.permute.xlu0 %1366  ;;  %v1583_v15 = vpop.permute.xlu1 %1582  ;;  %v2569_v8 = vld [vmem:[%s8329_s1 + $0x60] sm:$0xff] }
 0x1b1   : > { %1461 = vst.msk [vmem:[#allocation2 + $0x140] sm:$0xff] %vm724_vm4, %v1367_v14  ;;  %v1806_v17 = vld [vmem:[#allocation2 + $0x110] sm:$0xff]  ;;  %v1829_v14 = vld [vmem:[#allocation2 + $0x1c8] sm:$0xff] }
 0x1b2   : > { %1677 = vst.msk [vmem:[#allocation2 + $0x140] sm:$0xff] %vm942_vm6, %v1583_v15  ;;  %1622 = vrot.lane.b32.xlu1 %v1517_v9, %s5709_s29  ;;  %1406 = vrot.lane.b32.xlu0 %v1301_v10, %s5708_s28  ;;  %v2571_v15 = vld [vmem:[%s8329_s1 + $0x70] sm:$0xff] }
 0x1b3   : > { %2150 = vmatprep.mubr.f32.mxu0 %v1806_v17  ;;  %v2572_v17 = vld [vmem:[%s8329_s1 + $0x78] sm:$0xff] }
 0x1b4   : > { %2151 = vmatmul.mubr.f32.gmra.mrb[22].mxu0 %v1805_v60  ;;  %v1369_v19 = vpop.permute.xlu0 %1368  ;;  %v1585_v20 = vpop.permute.xlu1 %1584 }
 0x1b5   : > { %1462 = vst.msk [vmem:[#allocation2 + $0x158] sm:$0xff] %vm724_vm4, %v1369_v19  ;;  %v1809_v59 = vld [vmem:[#allocation2 + $0x128] sm:$0xff] }
 0x1b6   : > { %1678 = vst.msk [vmem:[#allocation2 + $0x158] sm:$0xff] %vm942_vm6, %v1585_v20  ;;  %1408 = vrot.lane.b32.xlu1 %v1302_v18, %s5708_s28  ;;  %1192 = vrot.lane.b32.xlu0 %v1300_v41, %s5707_s27  ;;  %v2573_v20 = vld [vmem:[%s8329_s1 + $0x80] sm:$0xff] }
 0x1b7   : > { %2155 = vmatprep.mubr.f32.mxu0 %v1809_v59  ;;  %v2574_v59 = vld [vmem:[%s8329_s1 + $0x88] sm:$0xff] }
 0x1b8   : > { %2156 = vmatmul.mubr.f32.gmra.mrb[24].mxu0 %v1808_v21  ;;  %v1371_v13 = vpop.permute.xlu0 %1370  ;;  %v1587_v28 = vpop.permute.xlu1 %1586 }
 0x1b9   : > { %1463 = vst.msk [vmem:[#allocation2 + $0x170] sm:$0xff] %vm724_vm4, %v1371_v13  ;;  %v1812_v29 = vld [vmem:[#allocation2 + $0x140] sm:$0xff]  ;;  %v2576_v13 = vld [vmem:[%s8329_s1 + $0x98] sm:$0xff] }
 0x1ba   : > { %1679 = vst.msk [vmem:[#allocation2 + $0x170] sm:$0xff] %vm942_vm6, %v1587_v28  ;;  %1194 = vrot.lane.b32.xlu1 %v1087_v25, %s5707_s27  ;;  %1624 = vrot.lane.b32.xlu0 %v1518_v5, %s5709_s29 }
 0x1bb   : > { %2160 = vmatprep.mubr.f32.mxu0 %v1812_v29 }
 0x1bc   : > { %2161 = vmatmul.mubr.f32.gmra.mrb[26].mxu0 %v1811_v30  ;;  %v1157_v12 = vpop.permute.xlu0 %1156  ;;  %v1373_v34 = vpop.permute.xlu1 %1372 }
 0x1bd   : > { %1248 = vst.msk [vmem:[#allocation2 + $0x188] sm:$0xff] %vm506_vm2, %v1157_v12  ;;  %v1815_v35 = vld [vmem:[#allocation2 + $0x158] sm:$0xff] }
 0x1be   : > { %1464 = vst.msk [vmem:[#allocation2 + $0x188] sm:$0xff] %vm724_vm4, %v1373_v34  ;;  %1626 = vrot.lane.b32.xlu1 %v1519_v4, %s5709_s29  ;;  %1410 = vrot.lane.b32.xlu0 %v1303_v31, %s5708_s28  ;;  %v1835_v12 = vld [vmem:[#allocation2 + $0x1f8] sm:$0xff]  ;;  %v2577_v34 = vld [vmem:[%s8329_s1 + $0xa0] sm:$0xff] }
 0x1bf   : > { %2165 = vmatprep.mubr.f32.mxu0 %v1815_v35  ;;  %v2578_v35 = vld [vmem:[%s8329_s1 + $0xa8] sm:$0xff] }
 0x1c0   : > { %2166 = vmatmul.mubr.f32.gmra.mrb[28].mxu0 %v1814_v38  ;;  %v1589_v42 = vpop.permute.xlu0 %1588  ;;  %v1159_v43 = vpop.permute.xlu1 %1158  ;;  %v2579_v38 = vld [vmem:[%s8329_s1 + $0xb0] sm:$0xff] }
 0x1c1   : > { %1680 = vst.msk [vmem:[#allocation2 + $0x188] sm:$0xff] %vm942_vm6, %v1589_v42  ;;  %v1818_v23 = vld [vmem:[#allocation2 + $0x170] sm:$0xff] }
 0x1c2   : > { %1249 = vst.msk [vmem:[#allocation2 + $0x1a0] sm:$0xff] %vm506_vm2, %v1159_v43  ;;  %2600 = vperm.xlu1 %5696, %v2558_v39   ;;  %2595 = vperm.xlu0 %5695, %v2557_v24   ;;  %v2580_v39 = vld [vmem:[%s8329_s1 + $0xb8] sm:$0xff] }
 0x1c3   : > { %2170 = vmatprep.mubr.f32.mxu0 %v1818_v23 }
 0x1c4   : > { %2171 = vmatmul.mubr.f32.gmra.mrb[30].mxu0 %v1817_v44  ;;  %v1375_v46 = vpop.permute.xlu0 %1374  ;;  %v1591_v47 = vpop.permute.xlu1 %1590  ;;  %v1838_v44 = vld [vmem:[#allocation2 + $0x210] sm:$0xff] }
 0x1c5   : > { %1465 = vst.msk [vmem:[#allocation2 + $0x1a0] sm:$0xff] %vm724_vm4, %v1375_v46  ;;  %v6923_v19 = vpop.f32.mrb[0].mxu1  ;;  %v2582_v46 = vld [vmem:[%s8329_s1 + $0xc8] sm:$0xff] }
 0x1c6   : > { %1681 = vst.msk [vmem:[#allocation2 + $0x1a0] sm:$0xff] %vm942_vm6, %v1591_v47  ;;  %2605 = vperm.xlu1 %5696, %v2559_v45   ;;  %2610 = vperm.xlu0 %5695, %v2560_v48   ;;  %v6931_v21 = vpop.f32.mrb[1].mxu1  ;;  %v2581_v48 = vld [vmem:[%s8329_s1 + $0xc0] sm:$0xff] }
 0x1c8   : > { %v1161_v33 = vpop.permute.xlu0 %1160  ;;  %v1377_v32 = vpop.permute.xlu1 %1376  ;;  %v1821_v56 = vld [vmem:[#allocation2 + $0x188] sm:$0xff] }
 0x1c9   : > { %1250 = vst.msk [vmem:[#allocation2 + $0x1b8] sm:$0xff] %vm506_vm2, %v1161_v33  ;;  %2175 = vmatprep.mubr.f32.mxu0 %v1821_v56  ;;  %v1841_v33 = vld [vmem:[#allocation2 + $0x228] sm:$0xff]  ;;  %v2584_v56 = vld [vmem:[%s8329_s1 + $0xd8] sm:$0xff] }
 0x1ca   : > { %1466 = vst.msk [vmem:[#allocation2 + $0x1b8] sm:$0xff] %vm724_vm4, %v1377_v32  ;;  %2615 = vperm.xlu1 %5696, %v2561_v53   ;;  %2620 = vperm.xlu0 %5695, %v2562_v54   ;;  %v2583_v32 = vld [vmem:[%s8329_s1 + $0xd0] sm:$0xff] }
 0x1cb   : > { %2176 = vmatmul.mubr.f32.gmra.mrb[32].mxu0 %v1820_v50  ;;  %v6943_v4 = vpop.f32.mrb[2].mxu1 }
 0x1cc   : > { %v1593_v58 = vpop.permute.xlu0 %1592  ;;  %v1163_v61 = vpop.permute.xlu1 %1162 }
 0x1cd   : > { %1682 = vst.msk [vmem:[#allocation2 + $0x1b8] sm:$0xff] %vm942_vm6, %v1593_v58  ;;  %v1824_v41 = vld [vmem:[#allocation2 + $0x1a0] sm:$0xff]  ;;  %v6945_v31 = vpop.f32.mrb[3].mxu1 }
 0x1ce   : > { %1251 = vst.msk [vmem:[#allocation2 + $0x1d0] sm:$0xff] %vm506_vm2, %v1163_v61  ;;  %2625 = vperm.xlu1 %5696, %v2563_v51   ;;  %2630 = vperm.xlu0 %5695, %v2564_v57   ;;  %v2585_v61 = vld [vmem:[%s8329_s1 + $0xe0] sm:$0xff] }
 0x1cf   : > { %2180 = vmatprep.mubr.f32.mxu0 %v1824_v41  ;;  %v2586_v41 = vld [vmem:[%s8329_s1 + $0xe8] sm:$0xff] }
 0x1d0   : > { %2181 = vmatmul.mubr.f32.gmra.mrb[34].mxu0 %v1823_v62  ;;  %v1379_v40 = vpop.permute.xlu0 %1378  ;;  %v1595_v55 = vpop.permute.xlu1 %1594 }
 0x1d1   : > { %1467 = vst.msk [vmem:[#allocation2 + $0x1d0] sm:$0xff] %vm724_vm4, %v1379_v40  ;;  %v4504_v40 = vld [vmem:[%s8332_s4 + $0x100] sm:$0xff] }
 0x1d2   : > { %1683 = vst.msk [vmem:[#allocation2 + $0x1d0] sm:$0xff] %vm942_vm6, %v1595_v55  ;;  %2635 = vperm.xlu1 %5696, %v2565_v63   ;;  %2640 = vperm.xlu0 %5695, %v2566_v0   ;;  %v4505_v55 = vld [vmem:[%s8332_s4 + $0x108] sm:$0xff] }
 0x1d4   : > { %v1165_v3 = vpop.permute.xlu0 %1164  ;;  %v1381_v6 = vpop.permute.xlu1 %1380  ;;  %v1827_v52 = vld [vmem:[#allocation2 + $0x1b8] sm:$0xff] }
 0x1d5   : > { %1252 = vst.msk [vmem:[#allocation2 + $0x1e8] sm:$0xff] %vm506_vm2, %v1165_v3  ;;  %2185 = vmatprep.mubr.f32.mxu0 %v1827_v52  ;;  %v2587_v3 = vld [vmem:[%s8329_s1 + $0xf0] sm:$0xff] }
 0x1d6   : > { %1468 = vst.msk [vmem:[#allocation2 + $0x1e8] sm:$0xff] %vm724_vm4, %v1381_v6  ;;  %2645 = vperm.xlu1 %5696, %v2567_v1   ;;  %2650 = vperm.xlu0 %5695, %v2568_v2   ;;  %v1844_v1 = vld [vmem:[#allocation2 + $0x240] sm:$0xff]  ;;  %v7001_v2 = vpack.c.bf16 %v4505_v55, %v4504_v40 }
 0x1d7   : > { %2186 = vmatmul.mubr.f32.gmra.mrb[36].mxu0 %v1826_v7 }
 0x1d8   : > { %v1597_v9 = vpop.permute.xlu0 %1596  ;;  %v1167_v10 = vpop.permute.xlu1 %1166  ;;  %5668 = vmatprep.subr.bf16.mxu0 %v7001_v2 }
 0x1d9   : > { %1684 = vst.msk [vmem:[#allocation2 + $0x1e8] sm:$0xff] %vm942_vm6, %v1597_v9  ;;  %v1830_v11 = vld [vmem:[#allocation2 + $0x1d0] sm:$0xff]  ;;  %5670 = vmatpush3.bf16.msra.mxu0 %v7001_v2  ;;  %v1847_v9 = vld [vmem:[#allocation2 + $0x258] sm:$0xff] }
 0x1da   : > { %1253 = vst.msk [vmem:[#allocation2 + $0x200] sm:$0xff] %vm506_vm2, %v1167_v10  ;;  %2655 = vperm.xlu1 %5696, %v2569_v8   ;;  %2660 = vperm.xlu0 %5695, %v2570_v49   ;;  %v4506_v8 = vld [vmem:[%s8332_s4 + $0x110] sm:$0xff]  ;;  %v4507_v49 = vld [vmem:[%s8332_s4 + $0x118] sm:$0xff] }
 0x1db   : > { %2190 = vmatprep.mubr.f32.mxu0 %v1830_v11  ;;  %v7018_v11 = vpack.c.bf16 %v4507_v49, %v4506_v8 }
 0x1dc   : > { %2191 = vmatmul.mubr.f32.gmra.mrb[38].mxu0 %v1829_v14  ;;  %v1383_v60 = vpop.permute.xlu0 %1382  ;;  %v1599_v18 = vpop.permute.xlu1 %1598  ;;  %v2924_v14 = vld [vmem:[#allocation3 + $0x1] sm:$0xff] }
 0x1dd   : > { %1469 = vst.msk [vmem:[#allocation2 + $0x200] sm:$0xff] %vm724_vm4, %v1383_v60  ;;  %5672 = vmatprep.subr.bf16.mxu0 %v7018_v11 }
 0x1de   : > { %1685 = vst.msk [vmem:[#allocation2 + $0x200] sm:$0xff] %vm942_vm6, %v1599_v18  ;;  %2665 = vperm.xlu1 %5696, %v2571_v15   ;;  %2670 = vperm.xlu0 %5695, %v2572_v17   ;;  %v3140_v18 = vld [vmem:[#allocation3 + $0x2] sm:$0xff] }
 0x1df   : > { %5674 = vmatpush3.bf16.msra.mxu0 %v7018_v11 }
 0x1e0   : > { %v1169_v22 = vpop.permute.xlu0 %1168  ;;  %v1385_v25 = vpop.permute.xlu1 %1384  ;;  %v1833_v5 = vld [vmem:[#allocation2 + $0x1e8] sm:$0xff] }
 0x1e1   : > { %1254 = vst.msk [vmem:[#allocation2 + $0x218] sm:$0xff] %vm506_vm2, %v1169_v22  ;;  %2195 = vmatprep.mubr.f32.mxu0 %v1833_v5 }
 0x1e2   : > { %1470 = vst.msk [vmem:[#allocation2 + $0x218] sm:$0xff] %vm724_vm4, %v1385_v25  ;;  %2675 = vperm.xlu1 %5696, %v2573_v20   ;;  %2680 = vperm.xlu0 %5695, %v2574_v59   ;;  %v1850_v25 = vld [vmem:[#allocation2 + $0x270] sm:$0xff] }
 0x1e3   : > { %2196 = vmatmul.mubr.f32.gmra.mrb[40].mxu0 %v1832_v26 }
 0x1e4   : > { %v1601_v28 = vpop.permute.xlu0 %1600  ;;  %v1171_v29 = vpop.permute.xlu1 %1170 }
 0x1e5   : > { %1686 = vst.msk [vmem:[#allocation2 + $0x218] sm:$0xff] %vm942_vm6, %v1601_v28  ;;  %v1836_v30 = vld [vmem:[#allocation2 + $0x200] sm:$0xff] }
 0x1e6   : > { %1255 = vst.msk [vmem:[#allocation2 + $0x230] sm:$0xff] %vm506_vm2, %v1171_v29  ;;  %2685 = vperm.xlu1 %5696, %v2575_v27   ;;  %2690 = vperm.xlu0 %5695, %v2576_v13   ;;  %v1853_v29 = vld [vmem:[#allocation2 + $0x288] sm:$0xff] }
 0x1e7   : > { %2200 = vmatprep.mubr.f32.mxu0 %v1836_v30  ;;  %v6962_v23 = vpop.f32.mrb[4].mxu1 }
 0x1e8   : > { %2201 = vmatmul.mubr.f32.gmra.mrb[42].mxu0 %v1835_v12  ;;  %v1387_v36 = vpop.permute.xlu0 %1386  ;;  %v1603_v37 = vpop.permute.xlu1 %1602 }
 0x1e9   : > { %1471 = vst.msk [vmem:[#allocation2 + $0x230] sm:$0xff] %vm724_vm4, %v1387_v36  ;;  %v6965_v45 = vpop.f32.mrb[5].mxu1 }
 0x1ea   : > { %1687 = vst.msk [vmem:[#allocation2 + $0x230] sm:$0xff] %vm942_vm6, %v1603_v37  ;;  %2695 = vperm.xlu1 %5696, %v2577_v34   ;;  %2700 = vperm.xlu0 %5695, %v2578_v35  }
 0x1ec   : > { %v1173_v24 = vpop.permute.xlu0 %1172  ;;  %v1389_v42 = vpop.permute.xlu1 %1388  ;;  %v1839_v43 = vld [vmem:[#allocation2 + $0x218] sm:$0xff] }
 0x1ed   : > { %1256 = vst.msk [vmem:[#allocation2 + $0x248] sm:$0xff] %vm506_vm2, %v1173_v24  ;;  %2205 = vmatprep.mubr.f32.mxu0 %v1839_v43 }
 0x1ee   : > { %1472 = vst.msk [vmem:[#allocation2 + $0x248] sm:$0xff] %vm724_vm4, %v1389_v42  ;;  %2705 = vperm.xlu1 %5696, %v2579_v38   ;;  %2710 = vperm.xlu0 %5695, %v2580_v39   ;;  %v6982_v57 = vpop.f32.mrb[6].mxu1  ;;  %v1856_v39 = vld [vmem:[#allocation2 + $0x2a0] sm:$0xff] }
 0x1ef   : > { %2206 = vmatmul.mubr.f32.gmra.mrb[44].mxu0 %v1838_v44  ;;  %v6985_v58 = vpop.f32.mrb[7].mxu1 }
 0x1f0   : > { %v1605_v47 = vpop.permute.xlu0 %1604  ;;  %v1175_v53 = vpop.permute.xlu1 %1174 }
 0x1f1   : > { %1688 = vst.msk [vmem:[#allocation2 + $0x248] sm:$0xff] %vm942_vm6, %v1605_v47  ;;  %v1842_v54 = vld [vmem:[#allocation2 + $0x230] sm:$0xff] }
 0x1f2   : > { %1257 = vst.msk [vmem:[#allocation2 + $0x260] sm:$0xff] %vm506_vm2, %v1175_v53  ;;  %2715 = vperm.xlu1 %5696, %v2581_v48   ;;  %2720 = vperm.xlu0 %5695, %v2582_v46   ;;  %v1859_v48 = vld [vmem:[#allocation2 + $0x2b8] sm:$0xff] }
 0x1f3   : > { %2210 = vmatprep.mubr.f32.mxu0 %v1842_v54 }
 0x1f4   : > { %2211 = vmatmul.mubr.f32.gmra.mrb[46].mxu0 %v1841_v33  ;;  %v1391_v50 = vpop.permute.xlu0 %1390  ;;  %v1607_v51 = vpop.permute.xlu1 %1606 }
 0x1f5   : > { %1473 = vst.msk [vmem:[#allocation2 + $0x260] sm:$0xff] %vm724_vm4, %v1391_v50 }
 0x1f6   : > { %1689 = vst.msk [vmem:[#allocation2 + $0x260] sm:$0xff] %vm942_vm6, %v1607_v51  ;;  %2725 = vperm.xlu1 %5696, %v2583_v32   ;;  %2730 = vperm.xlu0 %5695, %v2584_v56   ;;  %v1862_v56 = vld [vmem:[#allocation2 + $0x2d0] sm:$0xff] }
 0x1f8   : > { %v1177_v62 = vpop.permute.xlu0 %1176  ;;  %v1393_v63 = vpop.permute.xlu1 %1392  ;;  %v1845_v0 = vld [vmem:[#allocation2 + $0x248] sm:$0xff] }
 0x1f9   : > { %1258 = vst.msk [vmem:[#allocation2 + $0x278] sm:$0xff] %vm506_vm2, %v1177_v62  ;;  %2215 = vmatprep.mubr.f32.mxu0 %v1845_v0  ;;  %v1865_v62 = vld [vmem:[#allocation2 + $0x2e8] sm:$0xff] }
 0x1fa   : > { %1474 = vst.msk [vmem:[#allocation2 + $0x278] sm:$0xff] %vm724_vm4, %v1393_v63  ;;  %2735 = vperm.xlu1 %5696, %v2585_v61   ;;  %2740 = vperm.xlu0 %5695, %v2586_v41   ;;  %v7016_v10 = vpop.f32.mrb[8].mxu1 }
 0x1fb   : > { %2216 = vmatmul.mubr.f32.gmra.mrb[48].mxu0 %v1844_v1  ;;  %v7020_v15 = vpop.f32.mrb[9].mxu1 }
 0x1fc   : > { %v1609_v6 = vpop.permute.xlu0 %1608  ;;  %v1179_v52 = vpop.permute.xlu1 %1178 }
 0x1fd   : > { %1690 = vst.msk [vmem:[#allocation2 + $0x278] sm:$0xff] %vm942_vm6, %v1609_v6  ;;  %v1848_v7 = vld [vmem:[#allocation2 + $0x260] sm:$0xff] }
 0x1fe   : > { %1259 = vst.msk [vmem:[#allocation2 + $0x290] sm:$0xff] %vm506_vm2, %v1179_v52  ;;  %2745 = vperm.xlu1 %5696, %v2587_v3   ;;  %2220 = vmatprep.mubr.f32.mxu0 %v1848_v7  ;;  %v7028_v5 = vpop.f32.mrb[10].mxu1  ;;  %v1868_v6 = vld [vmem:[#allocation2 + $0x300] sm:$0xff] }
 0x1ff   : > { %2221 = vmatmul.mubr.f32.gmra.mrb[50].mxu0 %v1847_v9  ;;  %v7032_v26 = vpop.f32.mrb[11].mxu1  ;;  %v1871_v9 = vld [vmem:[#allocation2 + $0x318] sm:$0xff] }
 0x200   : > { %v1395_v17 = vpop.permute.xlu0 %1394  ;;  %v1611_v60 = vpop.permute.xlu1 %1610 }
 0x201   : > { %1475 = vst.msk [vmem:[#allocation2 + $0x290] sm:$0xff] %vm724_vm4, %v1395_v17 }
 0x202   : > { %1691 = vst.msk [vmem:[#allocation2 + $0x290] sm:$0xff] %vm942_vm6, %v1611_v60  ;;  %2996 = vrot.lane.b32.xlu1 %v2924_v14, %s5707_s27 }
 0x204   : > { %v1181_v20 = vpop.permute.xlu0 %1180  ;;  %v1397_v59 = vpop.permute.xlu1 %1396  ;;  %v1851_v22 = vld [vmem:[#allocation2 + $0x278] sm:$0xff] }
 0x205   : > { %1260 = vst.msk [vmem:[#allocation2 + $0x2a8] sm:$0xff] %vm506_vm2, %v1181_v20  ;;  %2225 = vmatprep.mubr.f32.mxu0 %v1851_v22  ;;  %v1874_v20 = vld [vmem:[#allocation2 + $0x330] sm:$0xff]  ;;  %v4473_v22 = vld [vmem:[%s8332_s4 + $0x8] sm:$0xff] }
 0x206   : > { %1476 = vst.msk [vmem:[#allocation2 + $0x2a8] sm:$0xff] %vm724_vm4, %v1397_v59  ;;  %2226 = vmatmul.mubr.f32.gmra.mrb[52].mxu0 %v1850_v25  ;;  %3212 = vrot.lane.b32.xlu1 %v3140_v18, %s5708_s28  ;;  %v4472_v59 = vld [vmem:[%s8332_s4] sm:$0xff] }
 0x208   : > { %v1613_v27 = vpop.permute.xlu0 %1612  ;;  %v1183_v13 = vpop.permute.xlu1 %1182 }
 0x209   : > { %1692 = vst.msk [vmem:[#allocation2 + $0x2a8] sm:$0xff] %vm942_vm6, %v1613_v27  ;;  %v1854_v28 = vld [vmem:[#allocation2 + $0x290] sm:$0xff]  ;;  %v5620_v27 = vpack.c.bf16 %v4473_v22, %v4472_v59  ;;  %v7163_v22 = vld [vmem:[%s8331_s3] ss:$0 sm:$0xff] }
 0x20a   : > { %1261 = vst.msk [vmem:[#allocation2 + $0x2c0] sm:$0xff] %vm506_vm2, %v1183_v13  ;;  %2230 = vmatprep.mubr.f32.mxu0 %v1854_v28  ;;  %v7038_v34 = vpop.f32.mrb[12].mxu1 }
 0x20b   : > { %2231 = vmatmul.mubr.f32.gmra.mrb[54].mxu0 %v1853_v29  ;;  %v7040_v35 = vpop.f32.mrb[13].mxu1  ;;  %v1877_v29 = vld [vmem:[#allocation2 + $0x348] sm:$0x3f]  ;;  %5621 = vmatpush1.bf16.msra.mxu1 %v5620_v27 }
 0x20c   : > { %v1399_v30 = vpop.permute.xlu0 %1398  ;;  %v1615_v12 = vpop.permute.xlu1 %1614  ;;  %5622 = vmatprep.subr.bf16.mxu1 %v5710_v16 }
 0x20d   : > { %1477 = vst.msk [vmem:[#allocation2 + $0x2c0] sm:$0xff] %vm724_vm4, %v1399_v30  ;;  %v4474_v30 = vld [vmem:[%s8332_s4 + $0x10] sm:$0xff] }
 0x20e   : > { %1693 = vst.msk [vmem:[#allocation2 + $0x2c0] sm:$0xff] %vm942_vm6, %v1615_v12  ;;  %v7046_v44 = vpop.f32.mrb[14].mxu1  ;;  %v4475_v12 = vld [vmem:[%s8332_s4 + $0x18] sm:$0xff] }
 0x20f   : > { %v7048_v46 = vpop.f32.mrb[15].mxu1 }
 0x210   : > { %v1185_v36 = vpop.permute.xlu0 %1184  ;;  %v1401_v37 = vpop.permute.xlu1 %1400  ;;  %v1857_v38 = vld [vmem:[#allocation2 + $0x2a8] sm:$0xff] }
 0x211   : > { %1262 = vst.msk [vmem:[#allocation2 + $0x2d8] sm:$0xff] %vm506_vm2, %v1185_v36  ;;  %2235 = vmatprep.mubr.f32.mxu0 %v1857_v38  ;;  %v5623_v36 = vpack.c.bf16 %v4475_v12, %v4474_v30  ;;  %v4477_v38 = vld [vmem:[%s8332_s4 + $0x28] sm:$0xff] }
 0x212   : > { %1478 = vst.msk [vmem:[#allocation2 + $0x2d8] sm:$0xff] %vm724_vm4, %v1401_v37  ;;  %2236 = vmatmul.mubr.f32.gmra.mrb[56].mxu0 %v1856_v39  ;;  %v4476_v37 = vld [vmem:[%s8332_s4 + $0x20] sm:$0xff] }
 0x213   : > { %5624 = vmatpush1.bf16.msra.mxu1 %v5623_v36  ;;  %v5626_v39 = vpack.c.bf16 %v4477_v38, %v4476_v37  ;;  %v2852_v36 = vld [vmem:[#allocation3] sm:$0xff] }
 0x214   : > { %v1617_v24 = vpop.permute.xlu0 %1616  ;;  %v1187_v42 = vpop.permute.xlu1 %1186  ;;  %5625 = vmatprep.subr.bf16.mxu1 %v5710_v16  ;;  %2888 = vst.msk [vmem:[#allocation2] sm:$0xff] %vm288_vm0, %v2852_v36  ;;  %v4497_v36 = vld [vmem:[%s8332_s4 + $0xc8] sm:$0xff] }
 0x215   : > { %1694 = vst.msk [vmem:[#allocation2 + $0x2d8] sm:$0xff] %vm942_vm6, %v1617_v24  ;;  %v1860_v43 = vld [vmem:[#allocation2 + $0x2c0] sm:$0xff] }
 0x216   : > { %1263 = vst.msk [vmem:[#allocation2 + $0x2f0] sm:$0xff] %vm506_vm2, %v1187_v42  ;;  %2240 = vmatprep.mubr.f32.mxu0 %v1860_v43  ;;  %v4478_v42 = vld [vmem:[%s8332_s4 + $0x30] sm:$0xff]  ;;  %v4479_v43 = vld [vmem:[%s8332_s4 + $0x38] sm:$0xff] }
 0x217   : > { %2241 = vmatmul.mubr.f32.gmra.mrb[58].mxu0 %v1859_v48  ;;  %5627 = vmatpush1.bf16.msra.mxu1 %v5626_v39 }
 0x218   : > { %v1403_v47 = vpop.permute.xlu0 %1402  ;;  %v1619_v53 = vpop.permute.xlu1 %1618  ;;  %5628 = vmatprep.subr.bf16.mxu1 %v5710_v16 }
 0x219   : > { %1479 = vst.msk [vmem:[#allocation2 + $0x2f0] sm:$0xff] %vm724_vm4, %v1403_v47  ;;  %v5629_v47 = vpack.c.bf16 %v4479_v43, %v4478_v42 }
 0x21a   : > { %1695 = vst.msk [vmem:[#allocation2 + $0x2f0] sm:$0xff] %vm942_vm6, %v1619_v53 }
 0x21b   : > { %v7056_v41 = vpop.f32.mrb[16].mxu1  ;;  %5630 = vmatpush1.bf16.msra.mxu1 %v5629_v47 }
 0x21c   : > { %v1189_v54 = vpop.permute.xlu0 %1188  ;;  %v1405_v33 = vpop.permute.xlu1 %1404  ;;  %v1863_v32 = vld [vmem:[#allocation2 + $0x2d8] sm:$0xff]  ;;  %5631 = vmatprep.subr.bf16.mxu1 %v5710_v16 }
 0x21d   : > { %1264 = vst.msk [vmem:[#allocation2 + $0x308] sm:$0xff] %vm506_vm2, %v1189_v54  ;;  %2245 = vmatprep.mubr.f32.mxu0 %v1863_v32  ;;  %v7058_v63 = vpop.f32.mrb[17].mxu1  ;;  %v4481_v32 = vld [vmem:[%s8332_s4 + $0x48] sm:$0xff] }
 0x21e   : > { %1480 = vst.msk [vmem:[#allocation2 + $0x308] sm:$0xff] %vm724_vm4, %v1405_v33  ;;  %2246 = vmatmul.mubr.f32.gmra.mrb[60].mxu0 %v1862_v56  ;;  %v4480_v33 = vld [vmem:[%s8332_s4 + $0x40] sm:$0xff] }
 0x21f   : > { %v7066_v49 = vpop.f32.mrb[18].mxu1  ;;  %v5632_v56 = vpack.c.bf16 %v4481_v32, %v4480_v33  ;;  %v4492_v33 = vld [vmem:[%s8332_s4 + $0xa0] sm:$0xff]  ;;  %v4493_v32 = vld [vmem:[%s8332_s4 + $0xa8] sm:$0xff] }
 0x220   : > { %v1621_v50 = vpop.permute.xlu0 %1620  ;;  %v1191_v51 = vpop.permute.xlu1 %1190 }
 0x221   : > { %1696 = vst.msk [vmem:[#allocation2 + $0x308] sm:$0xff] %vm942_vm6, %v1621_v50  ;;  %v1866_v61 = vld [vmem:[#allocation2 + $0x2f0] sm:$0xff]  ;;  %v7068_v14 = vpop.f32.mrb[19].mxu1  ;;  %5633 = vmatpush1.bf16.msra.mxu1 %v5632_v56 }
 0x222   : > { %1265 = vst.msk [vmem:[#allocation2 + $0x320] sm:$0xff] %vm506_vm2, %v1191_v51  ;;  %2250 = vmatprep.mubr.f32.mxu0 %v1866_v61  ;;  %5634 = vmatprep.subr.bf16.mxu1 %v5710_v16  ;;  %v4482_v51 = vld [vmem:[%s8332_s4 + $0x50] sm:$0xff]  ;;  %v4483_v61 = vld [vmem:[%s8332_s4 + $0x58] sm:$0xff] }
 0x223   : > { %2251 = vmatmul.mubr.f32.gmra.mrb[62].mxu0 %v1865_v62  ;;  %v7078_v25 = vpop.f32.mrb[20].mxu1  ;;  %v5635_v62 = vpack.c.bf16 %v4483_v61, %v4482_v51 }
 0x224   : > { %v1407_v0 = vpop.permute.xlu0 %1406  ;;  %v1623_v40 = vpop.permute.xlu1 %1622 }
 0x225   : > { %1481 = vst.msk [vmem:[#allocation2 + $0x320] sm:$0xff] %vm724_vm4, %v1407_v0  ;;  %v7080_v28 = vpop.f32.mrb[21].mxu1  ;;  %5636 = vmatpush1.bf16.msra.mxu1 %v5635_v62  ;;  %v5650_v62 = vpack.c.bf16 %v4493_v32, %v4492_v33 }
 0x226   : > { %1697 = vst.msk [vmem:[#allocation2 + $0x320] sm:$0xff] %vm942_vm6, %v1623_v40  ;;  %5637 = vmatprep.subr.bf16.mxu1 %v5710_v16  ;;  %v4484_v40 = vld [vmem:[%s8332_s4 + $0x60] sm:$0xff] }
 0x227   : > { %v7105_v48 = vpop.f32.mrb[22].mxu1 }
 0x228   : > { %v1193_v55 = vpop.permute.xlu0 %1192  ;;  %v1409_v1 = vpop.permute.xlu1 %1408  ;;  %v1869_v3 = vld [vmem:[#allocation2 + $0x308] sm:$0xff] }
 0x229   : > { %1266 = vst.msk [vmem:[#allocation2 + $0x338] sm:$0xff] %vm506_vm2, %v1193_v55  ;;  %2255 = vmatprep.mubr.f32.mxu0 %v1869_v3  ;;  %v7109_v54 = vpop.f32.mrb[23].mxu1  ;;  %v4485_v55 = vld [vmem:[%s8332_s4 + $0x68] sm:$0xff] }
 0x22a   : > { %1482 = vst.msk [vmem:[#allocation2 + $0x338] sm:$0xff] %vm724_vm4, %v1409_v1  ;;  %2256 = vmatmul.mubr.f32.gmra.mrb[64].mxu0 %v1868_v6  ;;  %v5638_v3 = vpack.c.bf16 %v4485_v55, %v4484_v40 }
 0x22b   : > { %v7136_v1 = vpop.f32.mrb[24].mxu1 }
 0x22c   : > { %v1625_v52 = vpop.permute.xlu0 %1624  ;;  %v1195_v7 = vpop.permute.xlu1 %1194  ;;  %5639 = vmatpush1.bf16.msra.mxu1 %v5638_v3 }
 0x22d   : > { %1698 = vst.msk [vmem:[#allocation2 + $0x338] sm:$0xff] %vm942_vm6, %v1625_v52  ;;  %v1872_v8 = vld [vmem:[#allocation2 + $0x320] sm:$0xff]  ;;  %v7140_v52 = vpop.f32.mrb[25].mxu1  ;;  %5640 = vmatprep.subr.bf16.mxu1 %v5710_v16 }
 0x22e   : > { %1267 = vst.msk [vmem:[#allocation2 + $0x350] sm:$0x3f] %vm542_vm3, %v1195_v7  ;;  %2260 = vmatprep.mubr.f32.mxu0 %v1872_v8  ;;  %v4486_v7 = vld [vmem:[%s8332_s4 + $0x70] sm:$0xff]  ;;  %v4487_v8 = vld [vmem:[%s8332_s4 + $0x78] sm:$0xff] }
 0x22f   : > { %2261 = vmatmul.mubr.f32.gmra.mrb[66].mxu0 %v1871_v9  ;;  %v5641_v9 = vpack.c.bf16 %v4487_v8, %v4486_v7  ;;  %v7173_v37 = vpop.f32.mrb[26].mxu1  ;;  %v4494_v8 = vld [vmem:[%s8332_s4 + $0xb0] sm:$0xff] }
 0x230   : > { %v1411_v17 = vpop.permute.xlu0 %1410  ;;  %v1627_v60 = vpop.permute.xlu1 %1626 }
 0x231   : > { %1483 = vst.msk [vmem:[#allocation2 + $0x350] sm:$0x3f] %vm760_vm5, %v1411_v17  ;;  %5642 = vmatpush1.bf16.msra.mxu1 %v5641_v9  ;;  %v7179_v43 = vpop.f32.mrb[27].mxu1  ;;  %v4495_v9 = vld [vmem:[%s8332_s4 + $0xb8] sm:$0xff] }
 0x232   : > { %1699 = vst.msk [vmem:[#allocation2 + $0x350] sm:$0x3f] %vm978_vm7, %v1627_v60  ;;  %5643 = vmatprep.subr.bf16.mxu1 %v5710_v16  ;;  %v4488_v60 = vld [vmem:[%s8332_s4 + $0x80] sm:$0xff] }
 0x234   : > { %v1875_v18 = vld [vmem:[#allocation2 + $0x338] sm:$0xff] }
 0x235   : > { %2265 = vmatprep.mubr.f32.mxu0 %v1875_v18  ;;  %v4489_v18 = vld [vmem:[%s8332_s4 + $0x88] sm:$0xff] }
 0x236   : > { %2266 = vmatmul.mubr.f32.gmra.mrb[68].mxu0 %v1874_v20  ;;  %v5644_v20 = vpack.c.bf16 %v4489_v18, %v4488_v60 }
 0x238   : > { %5645 = vmatpush1.bf16.msra.mxu1 %v5644_v20 }
 0x239   : > { %v1878_v13 = vld [vmem:[#allocation2 + $0x350] sm:$0x3f]  ;;  %5646 = vmatprep.subr.bf16.mxu1 %v5710_v16 }
 0x23a   : > { %2270 = vmatprep.mubr.f32.mxu0 %v1878_v13  ;;  %v4490_v13 = vld [vmem:[%s8332_s4 + $0x90] sm:$0xff] }
 0x23b   : > { %2271 = vmatmul.mubr.f32.gmra.mrb[70].mxu0 %v1877_v29  ;;  %v4491_v29 = vld [vmem:[%s8332_s4 + $0x98] sm:$0xff] }
 0x23c   : > { %v5647_v38 = vpack.c.bf16 %v4491_v29, %v4490_v13 }
 0x23e   : > { %5648 = vmatpush1.bf16.msra.mxu1 %v5647_v38 }
 0x23f   : > { %5649 = vmatprep.subr.bf16.mxu1 %v5710_v16 }
 0x241   : > { %v7096_v24 = vpop.permute.xlu1 %2600 }
 0x242   : > { %5651 = vmatpush1.bf16.msra.mxu1 %v5650_v62 }
 0x243   : > { %5652 = vmatprep.subr.bf16.mxu1 %v5710_v16 }
 0x245   : > { %v7107_v53 = vpop.permute.xlu1 %2605 }
 0x249   : > { %v7118_v50 = vpop.permute.xlu1 %2615 }
 0x24d   : > { %v7127_v0 = vpop.permute.xlu1 %2625 }
 0x251   : > { %v7138_v6 = vpop.permute.xlu1 %2635 }
 0x255   : > { %v7149_v17 = vpop.permute.xlu1 %2645 }
 0x259   : > { %v7158_v59 = vpop.permute.xlu1 %2655 }
 0x25b   : > { %v2097_v27 = vpop.f32.mrb[0].mxu0 }
 0x25c   : > { %v2098_v30 = vadd.f32 %v7163_v22, %v2097_v27  ;;  %v2099_v12 = vpop.f32.mrb[1].mxu0  ;;  %v5653_v27 = vpack.c.bf16 %v4495_v9, %v4494_v8 }
 0x25d   : > { %v7175_v39 = vpop.permute.xlu1 %2665  ;;  %v4496_v12 = vld [vmem:[%s8332_s4 + $0xc0] sm:$0xff] }
 0x25e   : > { %v2343_v42 = vadd.f32 %v6931_v21, %v2098_v30  ;;  %v2596_v21 = vpop.permute.xlu0 %2595  ;;  %5654 = vmatpush1.bf16.msra.mxu1 %v5653_v27  ;;  %v5656_v33 = vpack.c.bf16 %v4497_v36, %v4496_v12 }
 0x25f   : > { %v2102_v47 = vpop.f32.mrb[2].mxu0  ;;  %5655 = vmatprep.subr.bf16.mxu1 %v5710_v16 }
 0x260   : > { %v2521_v56 = vmax.f32 %v2343_v42, 0.0  ;;  %v2103_v51 = vadd.f32 %v7163_v22, %v2102_v47  ;;  %v2104_v61 = vpop.f32.mrb[3].mxu0  ;;  %v2853_v47 = vld [vmem:[#allocation3 + $0x8] sm:$0xff] }
 0x261   : > { %v7189_v40 = vpop.permute.xlu1 %2675  ;;  %2889 = vst.msk [vmem:[#allocation2 + $0x18] sm:$0xff] %vm288_vm0, %v2853_v47 }
 0x262   : > { %v2773_v55 = vmul.f32 %v2596_v21, %v2521_v56  ;;  %v2348_v3 = vadd.f32 %v6923_v19, %v2103_v51  ;;  %5657 = vmatpush1.bf16.msra.mxu1 %v5656_v33 }
 0x263   : > { %v2107_v7 = vpop.f32.mrb[4].mxu0  ;;  %5658 = vmatprep.subr.bf16.mxu1 %v5710_v16 }
 0x264   : > { %2813 = vst.msk [vmem:[#allocation3 + $0x13] sm:$0xff] %vm288_vm0, %v2773_v55  ;;  %v2522_v60 = vmax.f32 %v2348_v3, 0.0  ;;  %v2108_v18 = vadd.f32 %v7163_v22, %v2107_v7  ;;  %v2109_v20 = vpop.f32.mrb[5].mxu0 }
 0x265   : > { %v7201_v19 = vpop.permute.xlu1 %2685  ;;  %v2925_v20 = vld [vmem:[#allocation3 + $0x9] sm:$0xff] }
 0x266   : > { %v2774_v13 = vmul.f32 %v7096_v24, %v2522_v60  ;;  %v2353_v29 = vadd.f32 %v6945_v31, %v2108_v18  ;;  %v7214_v31 = vpop.f32.mrb[28].mxu1  ;;  %v2611_v60 = vpop.permute.xlu0 %2610 }
 0x267   : > { %v2112_v30 = vpop.f32.mrb[6].mxu0  ;;  %v7221_v61 = vpop.f32.mrb[29].mxu1 }
 0x268   : > { %2814 = vst.msk [vmem:[#allocation3 + $0x1b] sm:$0xff] %vm288_vm0, %v2774_v13  ;;  %v2523_v38 = vmax.f32 %v2353_v29, 0.0  ;;  %v2113_v42 = vadd.f32 %v7163_v22, %v2112_v30  ;;  %v2114_v24 = vpop.f32.mrb[7].mxu0 }
 0x269   : > { %v7216_v32 = vpop.permute.xlu1 %2695  ;;  %v4500_v24 = vld [vmem:[%s8332_s4 + $0xe0] sm:$0xff] }
 0x26a   : > { %v2775_v56 = vmul.f32 %v7107_v53, %v2523_v38  ;;  %v2358_v51 = vadd.f32 %v6943_v4, %v2113_v42  ;;  %v4498_v4 = vld [vmem:[%s8332_s4 + $0xd0] sm:$0xff]  ;;  %v4499_v53 = vld [vmem:[%s8332_s4 + $0xd8] sm:$0xff] }
 0x26b   : > { %v2117_v62 = vpop.f32.mrb[8].mxu0  ;;  %v7223_v21 = vld [vmem:[#allocation3 + $0x12] sm:$0xff]  ;;  %v5659_v27 = vpack.c.bf16 %v4499_v53, %v4498_v4 }
 0x26c   : > { %v3572_v55 = vld [vmem:[#allocation3 + $0x13] sm:$0xff]  ;;  %2815 = vst.msk [vmem:[#allocation3 + $0x23] sm:$0xff] %vm288_vm0, %v2775_v56  ;;  %v2524_v3 = vmax.f32 %v2358_v51, 0.0  ;;  %v2118_v7 = vadd.f32 %v7163_v22, %v2117_v62  ;;  %v2119_v8 = vpop.f32.mrb[9].mxu0  ;;  %3428 = vrot.lane.b32.xlu1 %v7223_v21, %s5709_s29  ;;  %v4501_v56 = vld [vmem:[%s8332_s4 + $0xe8] sm:$0xff] }
 0x26d   : > { %3608 = vst.msk [vmem:[#allocation2 + $0x8] sm:$0xff] %vm288_vm0, %v3572_v55  ;;  %v2854_v9 = vld [vmem:[#allocation3 + $0x10] sm:$0xff]  ;;  %v7237_v18 = vpop.permute.xlu1 %2705  ;;  %5660 = vmatpush1.bf16.msra.mxu1 %v5659_v27 }
 0x26e   : > { %2890 = vst.msk [vmem:[#allocation2 + $0x30] sm:$0xff] %vm288_vm0, %v2854_v9  ;;  %v2776_v13 = vmul.f32 %v2611_v60, %v2524_v3  ;;  %v2363_v29 = vadd.f32 %v6965_v45, %v2118_v7  ;;  %v3141_v45 = vld [vmem:[#allocation3 + $0xa] sm:$0xff]  ;;  %5661 = vmatprep.subr.bf16.mxu1 %v5710_v16  ;;  %v5662_v3 = vpack.c.bf16 %v4501_v56, %v4500_v24  ;;  %v7261_v9 = vpop.f32.mrb[30].mxu1  ;;  %v2621_v60 = vpop.permute.xlu0 %2620 }
 0x26f   : > { %v2122_v30 = vpop.f32.mrb[10].mxu0  ;;  %v3644_v12 = vld [vmem:[#allocation3 + $0x14] sm:$0xff] }
 0x270   : > { %2816 = vst.msk [vmem:[#allocation3 + $0x2b] sm:$0xff] %vm288_vm0, %v2776_v13  ;;  %v2525_v36 = vmax.f32 %v2363_v29, 0.0  ;;  %v2123_v38 = vadd.f32 %v7163_v22, %v2122_v30  ;;  %v2124_v42 = vpop.f32.mrb[11].mxu0  ;;  %3716 = vrot.lane.b32.xlu0 %v3644_v12, %s5707_s27  ;;  %2998 = vrot.lane.b32.xlu1 %v2925_v20, %s5707_s27  ;;  %v3573_v47 = vld [vmem:[#allocation3 + $0x1b] sm:$0xff] }
 0x271   : > { %v7248_v33 = vpop.permute.xlu1 %2715  ;;  %3609 = vst.msk [vmem:[#allocation2 + $0x20] sm:$0xff] %vm288_vm0, %v3573_v47  ;;  %v2855_v51 = vld [vmem:[#allocation3 + $0x18] sm:$0xff]  ;;  %5663 = vmatpush1.bf16.msra.mxu1 %v5662_v3 }
 0x272   : > { %v2777_v62 = vmul.f32 %v7118_v50, %v2525_v36  ;;  %v2368_v55 = vadd.f32 %v6962_v23, %v2123_v38  ;;  %2891 = vst.msk [vmem:[#allocation2 + $0x48] sm:$0xff] %vm288_vm0, %v2855_v51  ;;  %v4502_v50 = vld [vmem:[%s8332_s4 + $0xf0] sm:$0xff]  ;;  %v4503_v23 = vld [vmem:[%s8332_s4 + $0xf8] sm:$0xff]  ;;  %5664 = vmatprep.subr.bf16.mxu1 %v5710_v16  ;;  %v7273_v36 = vpop.f32.mrb[31].mxu1 }
 0x273   : > { %v2127_v7 = vpop.f32.mrb[12].mxu0  ;;  %v5665_v27 = vpack.c.bf16 %v4503_v23, %v4502_v50  ;;  %v3574_v13 = vld [vmem:[#allocation3 + $0x23] sm:$0xff]  ;;  %v7279_v47 = vld [vmem:[#allocation3 + $0x1a] sm:$0xff] }
 0x274   : > { %2817 = vst.msk [vmem:[#allocation3 + $0x33] sm:$0xff] %vm288_vm0, %v2777_v62  ;;  %v2526_v8 = vmax.f32 %v2368_v55, 0.0  ;;  %v2128_v4 = vadd.f32 %v7163_v22, %v2127_v7  ;;  %v2129_v53 = vpop.f32.mrb[13].mxu0  ;;  %3214 = vrot.lane.b32.xlu1 %v3141_v45, %s5708_s28  ;;  %v2856_v29 = vld [vmem:[#allocation3 + $0x20] sm:$0xff]  ;;  %3610 = vst.msk [vmem:[#allocation2 + $0x38] sm:$0xff] %vm288_vm0, %v3574_v13 }
 0x275   : > { %v7269_v20 = vpop.permute.xlu1 %2725  ;;  %2892 = vst.msk [vmem:[#allocation2 + $0x60] sm:$0xff] %vm288_vm0, %v2856_v29  ;;  %5666 = vmatpush1.bf16.msra.mxu1 %v5665_v27  ;;  %v2926_v53 = vld [vmem:[#allocation3 + $0x11] sm:$0xff] }
 0x276   : > { %v2778_v30 = vmul.f32 %v2621_v60, %v2526_v8  ;;  %v2373_v12 = vadd.f32 %v6985_v58, %v2128_v4  ;;  %5675 = vmatprep.subr.bf16.mxu1 %v7001_v2 }
 0x277   : > { %v4292_v38 = vld [vmem:[#allocation3 + $0x26] sm:$0xff]  ;;  %v2132_v42 = vpop.f32.mrb[14].mxu0 }
 0x278   : > { %v7277_v24 = vld [vmem:[#allocation3 + $0x24] sm:$0xff]  ;;  %4328 = vst.msk [vmem:[#allocation2 + $0x10] sm:$0xff] %vm288_vm0, %v4292_v38  ;;  %2818 = vst.msk [vmem:[#allocation3 + $0x3b] sm:$0xff] %vm288_vm0, %v2778_v30  ;;  %v2527_v16 = vmax.f32 %v2373_v12, 0.0  ;;  %v2133_v45 = vadd.f32 %v7163_v22, %v2132_v42  ;;  %v2134_v58 = vpop.f32.mrb[15].mxu0  ;;  %3430 = vrot.lane.b32.xlu1 %v7279_v47, %s5709_s29 }
 0x279   : > { %3932 = vrot.lane.b32.xlu0 %v7277_v24, %s5708_s28  ;;  %v3575_v56 = vld [vmem:[#allocation3 + $0x2b] sm:$0xff]  ;;  %v7288_v51 = vpop.permute.xlu1 %2735 }
 0x27a   : > { %3611 = vst.msk [vmem:[#allocation2 + $0x50] sm:$0xff] %vm288_vm0, %v3575_v56  ;;  %v2857_v62 = vld [vmem:[#allocation3 + $0x28] sm:$0xff]  ;;  %v2779_v55 = vmul.f32 %v7127_v0, %v2527_v16  ;;  %v2378_v3 = vadd.f32 %v6982_v57, %v2133_v45  ;;  %v2631_v0 = vpop.permute.xlu0 %2630  ;;  %v3645_v16 = vld [vmem:[#allocation3 + $0x1c] sm:$0xff] }
 0x27b   : > { %2893 = vst.msk [vmem:[#allocation2 + $0x78] sm:$0xff] %vm288_vm0, %v2857_v62  ;;  %v4293_v7 = vld [vmem:[#allocation3 + $0x2e] sm:$0xff]  ;;  %v2137_v8 = vpop.f32.mrb[16].mxu0  ;;  %v4076_v4 = vld [vmem:[#allocation3 + $0x25] sm:$0xff]  ;;  %v7312_v62 = vpop.f32.mrb[32].mxu1 }
 0x27c   : > { %4329 = vst.msk [vmem:[#allocation2 + $0x28] sm:$0xff] %vm288_vm0, %v4293_v7  ;;  %2819 = vst.msk [vmem:[#allocation3 + $0x43] sm:$0xff] %vm288_vm0, %v2779_v55  ;;  %v2528_v50 = vmax.f32 %v2378_v3, 0.0  ;;  %v2138_v23 = vadd.f32 %v7163_v22, %v2137_v8  ;;  %v2139_v60 = vpop.f32.mrb[17].mxu0  ;;  %3000 = vrot.lane.b32.xlu1 %v2926_v53, %s5707_s27  ;;  %v3576_v57 = vld [vmem:[#allocation3 + $0x33] sm:$0xff] }
 0x27d   : > { %4148 = vrot.lane.b32.xlu0 %v4076_v4, %s5709_s29  ;;  %v7300_v27 = vpop.permute.xlu1 %2745  ;;  %3612 = vst.msk [vmem:[#allocation2 + $0x68] sm:$0xff] %vm288_vm0, %v3576_v57  ;;  %v2858_v13 = vld [vmem:[#allocation3 + $0x30] sm:$0xff]  ;;  %v7317_v4 = vpop.f32.mrb[33].mxu1  ;;  %v7329_v57 = vld [vmem:[#allocation3 + $0x22] sm:$0xff] }
 0x27e   : > { %v2780_v29 = vmul.f32 %v2631_v0, %v2528_v50  ;;  %v2383_v30 = vadd.f32 %v7020_v15, %v2138_v23  ;;  %2894 = vst.msk [vmem:[#allocation2 + $0x90] sm:$0xff] %vm288_vm0, %v2858_v13  ;;  %v7321_v23 = vld [vmem:[#allocation3 + $0x2c] sm:$0xff]  ;;  %v2641_v0 = vpop.permute.xlu0 %2640 }
 0x27f   : > { %v4294_v12 = vld [vmem:[#allocation3 + $0x36] sm:$0xff]  ;;  %v2142_v38 = vpop.f32.mrb[18].mxu0 }
 0x280   : > { %v4366_v42 = vld [vmem:[#allocation2 + $0x10] sm:$0xff]  ;;  %4330 = vst.msk [vmem:[#allocation2 + $0x40] sm:$0xff] %vm288_vm0, %v4294_v12  ;;  %2820 = vst.msk [vmem:[#allocation3 + $0x4b] sm:$0xff] %vm288_vm0, %v2780_v29  ;;  %v2529_v45 = vmax.f32 %v2383_v30, 0.0  ;;  %v2143_v58 = vadd.f32 %v7163_v22, %v2142_v38  ;;  %v2144_v56 = vpop.f32.mrb[19].mxu0  ;;  %3216 = vrot.lane.b32.xlu1 %v7223_v21, %s5708_s28  ;;  %v3577_v55 = vld [vmem:[#allocation3 + $0x3b] sm:$0xff] }
 0x281   : > { %5509 = vmatprep.mubr.msk.f32.mxu0 %vm288_vm0, %v4366_v42  ;;  %3718 = vrot.lane.b32.xlu0 %v3645_v16, %s5707_s27  ;;  %v2997_v15 = vpop.permute.xlu1 %2996  ;;  %v2859_v3 = vld [vmem:[#allocation3 + $0x38] sm:$0xff]  ;;  %3613 = vst.msk [vmem:[#allocation2 + $0x80] sm:$0xff] %vm288_vm0, %v3577_v55 }
 0x282   : > { %v2781_v7 = vmul.f32 %v7138_v6, %v2529_v45  ;;  %v2388_v8 = vadd.f32 %v7016_v10, %v2143_v58  ;;  %3104 = vst.msk [vmem:[#allocation2] sm:$0xff] %vm506_vm2, %v2997_v15  ;;  %v4077_v58 = vld [vmem:[#allocation3 + $0x2d] sm:$0xff] }
 0x283   : > { %2895 = vst.msk [vmem:[#allocation2 + $0xa8] sm:$0xff] %vm288_vm0, %v2859_v3  ;;  %v4295_v53 = vld [vmem:[#allocation3 + $0x3e] sm:$0xff]  ;;  %v2147_v50 = vpop.f32.mrb[20].mxu0  ;;  %v4369_v21 = vld [vmem:[#allocation2 + $0x28] sm:$0xff] }
 0x284   : > { %4331 = vst.msk [vmem:[#allocation2 + $0x58] sm:$0xff] %vm288_vm0, %v4295_v53  ;;  %2821 = vst.msk [vmem:[#allocation3 + $0x53] sm:$0xff] %vm288_vm0, %v2781_v7  ;;  %v2530_v6 = vmax.f32 %v2388_v8, 0.0  ;;  %v2148_v10 = vadd.f32 %v7163_v22, %v2147_v50  ;;  %v2149_v60 = vpop.f32.mrb[21].mxu0  ;;  %5510 = vmatmul.mubr.msk.f32.vlgmr.msra.gmra.mrb[72].mxu0 %vm288_vm0, %v4369_v21  ;;  %3432 = vrot.lane.b32.xlu1 %v7329_v57, %s5709_s29  ;;  %v3578_v29 = vld [vmem:[#allocation3 + $0x43] sm:$0xff] }
 0x285   : > { %3934 = vrot.lane.b32.xlu0 %v7321_v23, %s5708_s28  ;;  %v3213_v13 = vpop.permute.xlu1 %3212  ;;  %v2860_v30 = vld [vmem:[#allocation3 + $0x40] sm:$0xff]  ;;  %3614 = vst.msk [vmem:[#allocation2 + $0x98] sm:$0xff] %vm288_vm0, %v3578_v29 }
 0x286   : > { %v2782_v12 = vmul.f32 %v2641_v0, %v2530_v6  ;;  %v2393_v38 = vadd.f32 %v7032_v26, %v2148_v10  ;;  %3320 = vst.msk [vmem:[#allocation2] sm:$0xff] %vm724_vm4, %v3213_v13  ;;  %v2927_v26 = vld [vmem:[#allocation3 + $0x19] sm:$0xff] }
 0x287   : > { %2896 = vst.msk [vmem:[#allocation2 + $0xc0] sm:$0xff] %vm288_vm0, %v2860_v30  ;;  %v4296_v42 = vld [vmem:[#allocation3 + $0x46] sm:$0xff]  ;;  %v2152_v16 = vpop.f32.mrb[22].mxu0 }
 0x288   : > { %v4372_v45 = vld [vmem:[#allocation2 + $0x40] sm:$0xff]  ;;  %4332 = vst.msk [vmem:[#allocation2 + $0x70] sm:$0xff] %vm288_vm0, %v4296_v42  ;;  %2822 = vst.msk [vmem:[#allocation3 + $0x5b] sm:$0xff] %vm288_vm0, %v2782_v12  ;;  %v2531_v56 = vmax.f32 %v2393_v38, 0.0  ;;  %v2153_v15 = vadd.f32 %v7163_v22, %v2152_v16  ;;  %v2154_v55 = vpop.f32.mrb[23].mxu0  ;;  %3002 = vrot.lane.b32.xlu1 %v2927_v26, %s5707_s27  ;;  %v3579_v3 = vld [vmem:[#allocation3 + $0x4b] sm:$0xff] }
 0x289   : > { %5512 = vmatprep.mubr.msk.f32.mxu0 %vm288_vm0, %v4372_v45  ;;  %4150 = vrot.lane.b32.xlu0 %v4077_v58, %s5709_s29  ;;  %v2861_v7 = vld [vmem:[#allocation3 + $0x48] sm:$0xff]  ;;  %3615 = vst.msk [vmem:[#allocation2 + $0xb0] sm:$0xff] %vm288_vm0, %v3579_v3  ;;  %v7362_v45 = vld [vmem:[#allocation3 + $0x34] sm:$0xff] }
 0x28a   : > { %v2783_v8 = vmul.f32 %v7149_v17, %v2531_v56  ;;  %v2398_v53 = vadd.f32 %v7028_v5, %v2153_v15  ;;  %2897 = vst.msk [vmem:[#allocation2 + $0xd8] sm:$0xff] %vm288_vm0, %v2861_v7  ;;  %v7353_v5 = vpop.f32.mrb[34].mxu1  ;;  %v2651_v17 = vpop.permute.xlu0 %2650 }
 0x28b   : > { %v4297_v50 = vld [vmem:[#allocation3 + $0x4e] sm:$0xff]  ;;  %v2157_v21 = vpop.f32.mrb[24].mxu0  ;;  %v4375_v6 = vld [vmem:[#allocation2 + $0x58] sm:$0xff]  ;;  %v7357_v13 = vpop.f32.mrb[35].mxu1 }
 0x28c   : > { %4333 = vst.msk [vmem:[#allocation2 + $0x88] sm:$0xff] %vm288_vm0, %v4297_v50  ;;  %2823 = vst.msk [vmem:[#allocation3 + $0x63] sm:$0xff] %vm288_vm0, %v2783_v8  ;;  %v2532_v10 = vmax.f32 %v2398_v53, 0.0  ;;  %v2158_v60 = vadd.f32 %v7163_v22, %v2157_v21  ;;  %v2159_v0 = vpop.f32.mrb[25].mxu0  ;;  %5513 = vmatmul.mubr.msk.f32.gmra.mrb[74].mxu0 %vm288_vm0, %v4375_v6  ;;  %3218 = vrot.lane.b32.xlu1 %v7279_v47, %s5708_s28  ;;  %v3580_v29 = vld [vmem:[#allocation3 + $0x53] sm:$0xff] }
 0x28d   : > { %3720 = vrot.lane.b32.xlu0 %v7277_v24, %s5707_s27  ;;  %v2862_v30 = vld [vmem:[#allocation3 + $0x50] sm:$0xff]  ;;  %3616 = vst.msk [vmem:[#allocation2 + $0xc8] sm:$0xff] %vm288_vm0, %v3580_v29 }
 0x28e   : > { %v2784_v12 = vmul.f32 %v2651_v17, %v2532_v10  ;;  %v2403_v38 = vadd.f32 %v7040_v35, %v2158_v60  ;;  %2898 = vst.msk [vmem:[#allocation2 + $0xf0] sm:$0xff] %vm288_vm0, %v2862_v30  ;;  %v7370_v35 = vld [vmem:[#allocation3 + $0x2a] sm:$0xff]  ;;  %v4078_v50 = vld [vmem:[#allocation3 + $0x35] sm:$0xff] }
 0x28f   : > { %v4298_v42 = vld [vmem:[#allocation3 + $0x56] sm:$0xff]  ;;  %v2162_v16 = vpop.f32.mrb[26].mxu0 }
 0x290   : > { %v4378_v24 = vld [vmem:[#allocation2 + $0x70] sm:$0xff]  ;;  %4334 = vst.msk [vmem:[#allocation2 + $0xa0] sm:$0xff] %vm288_vm0, %v4298_v42  ;;  %2824 = vst.msk [vmem:[#allocation3 + $0x6b] sm:$0xff] %vm288_vm0, %v2784_v12  ;;  %v2533_v47 = vmax.f32 %v2403_v38, 0.0  ;;  %v2163_v58 = vadd.f32 %v7163_v22, %v2162_v16  ;;  %v2164_v56 = vpop.f32.mrb[27].mxu0  ;;  %3434 = vrot.lane.b32.xlu1 %v7370_v35, %s5709_s29  ;;  %v3581_v15 = vld [vmem:[#allocation3 + $0x5b] sm:$0xff] }
 0x291   : > { %5515 = vmatprep.mubr.msk.f32.mxu0 %vm288_vm0, %v4378_v24  ;;  %3936 = vrot.lane.b32.xlu0 %v7362_v45, %s5708_s28  ;;  %v2863_v55 = vld [vmem:[#allocation3 + $0x58] sm:$0xff]  ;;  %3617 = vst.msk [vmem:[#allocation2 + $0xe0] sm:$0xff] %vm288_vm0, %v3581_v15 }
 0x292   : > { %v2785_v26 = vmul.f32 %v7158_v59, %v2533_v47  ;;  %v2408_v3 = vadd.f32 %v7038_v34, %v2163_v58  ;;  %2899 = vst.msk [vmem:[#allocation2 + $0x108] sm:$0xff] %vm288_vm0, %v2863_v55  ;;  %v2928_v34 = vld [vmem:[#allocation3 + $0x21] sm:$0xff]  ;;  %v2661_v59 = vpop.permute.xlu0 %2660 }
 0x293   : > { %v4299_v7 = vld [vmem:[#allocation3 + $0x5e] sm:$0xff]  ;;  %v2167_v8 = vpop.f32.mrb[28].mxu0  ;;  %v4381_v53 = vld [vmem:[#allocation2 + $0x88] sm:$0xff] }
 0x294   : > { %4335 = vst.msk [vmem:[#allocation2 + $0xb8] sm:$0xff] %vm288_vm0, %v4299_v7  ;;  %2825 = vst.msk [vmem:[#allocation3 + $0x73] sm:$0xff] %vm288_vm0, %v2785_v26  ;;  %v2534_v21 = vmax.f32 %v2408_v3, 0.0  ;;  %v2168_v6 = vadd.f32 %v7163_v22, %v2167_v8  ;;  %v2169_v10 = vpop.f32.mrb[29].mxu0  ;;  %5516 = vmatmul.mubr.msk.f32.gmra.mrb[76].mxu0 %vm288_vm0, %v4381_v53  ;;  %3004 = vrot.lane.b32.xlu1 %v2928_v34, %s5707_s27  ;;  %v3582_v60 = vld [vmem:[#allocation3 + $0x63] sm:$0xff] }
 0x295   : > { %4152 = vrot.lane.b32.xlu0 %v4078_v50, %s5709_s29  ;;  %v2864_v0 = vld [vmem:[#allocation3 + $0x60] sm:$0xff]  ;;  %3618 = vst.msk [vmem:[#allocation2 + $0xf8] sm:$0xff] %vm288_vm0, %v3582_v60  ;;  %v2929_v34 = vld [vmem:[#allocation3 + $0x29] sm:$0xff] }
 0x296   : > { %v2786_v17 = vmul.f32 %v2661_v59, %v2534_v21  ;;  %v2413_v29 = vadd.f32 %v7048_v46, %v2168_v6  ;;  %2900 = vst.msk [vmem:[#allocation2 + $0x120] sm:$0xff] %vm288_vm0, %v2864_v0  ;;  %v7399_v26 = vld [vmem:[#allocation3 + $0x3c] sm:$0xff] }
 0x297   : > { %v4300_v30 = vld [vmem:[#allocation3 + $0x66] sm:$0xff]  ;;  %v2172_v12 = vpop.f32.mrb[30].mxu0  ;;  %v4079_v10 = vld [vmem:[#allocation3 + $0x3d] sm:$0xff] }
 0x298   : > { %v4384_v38 = vld [vmem:[#allocation2 + $0xa0] sm:$0xff]  ;;  %4336 = vst.msk [vmem:[#allocation2 + $0xd0] sm:$0xff] %vm288_vm0, %v4300_v30  ;;  %2826 = vst.msk [vmem:[#allocation3 + $0x7b] sm:$0xff] %vm288_vm0, %v2786_v17  ;;  %v2535_v42 = vmax.f32 %v2413_v29, 0.0  ;;  %v2173_v16 = vadd.f32 %v7163_v22, %v2172_v12  ;;  %v2174_v24 = vpop.f32.mrb[31].mxu0  ;;  %3220 = vrot.lane.b32.xlu1 %v7329_v57, %s5708_s28  ;;  %v3583_v46 = vld [vmem:[#allocation3 + $0x6b] sm:$0xff] }
 0x299   : > { %5518 = vmatprep.mubr.msk.f32.mxu0 %vm288_vm0, %v4384_v38  ;;  %3722 = vrot.lane.b32.xlu0 %v7321_v23, %s5707_s27  ;;  %v2865_v47 = vld [vmem:[#allocation3 + $0x68] sm:$0xff]  ;;  %3619 = vst.msk [vmem:[#allocation2 + $0x110] sm:$0xff] %vm288_vm0, %v3583_v46 }
 0x29a   : > { %v2787_v58 = vmul.f32 %v7175_v39, %v2535_v42  ;;  %v2418_v56 = vadd.f32 %v7046_v44, %v2173_v16  ;;  %2901 = vst.msk [vmem:[#allocation2 + $0x138] sm:$0xff] %vm288_vm0, %v2865_v47  ;;  %v7406_v39 = vld [vmem:[#allocation3 + $0x32] sm:$0xff]  ;;  %v2671_v44 = vpop.permute.xlu0 %2670 }
 0x29b   : > { %v4301_v15 = vld [vmem:[#allocation3 + $0x6e] sm:$0xff]  ;;  %v4387_v55 = vld [vmem:[#allocation2 + $0xb8] sm:$0xff] }
 0x29c   : > { %4337 = vst.msk [vmem:[#allocation2 + $0xe8] sm:$0xff] %vm288_vm0, %v4301_v15  ;;  %2827 = vst.msk [vmem:[#allocation3 + $0x83] sm:$0xff] %vm288_vm0, %v2787_v58  ;;  %v2536_v23 = vmax.f32 %v2418_v56, 0.0  ;;  %5519 = vmatmul.mubr.msk.f32.gmra.mrb[78].mxu0 %vm288_vm0, %v4387_v55  ;;  %3436 = vrot.lane.b32.xlu1 %v7406_v39, %s5709_s29  ;;  %v3584_v57 = vld [vmem:[#allocation3 + $0x73] sm:$0xff]  ;;  %v7433_v56 = vld [vmem:[#allocation3 + $0x44] sm:$0xff] }
 0x29d   : > { %3938 = vrot.lane.b32.xlu0 %v7399_v26, %s5708_s28  ;;  %v2866_v3 = vld [vmem:[#allocation3 + $0x70] sm:$0xff]  ;;  %3620 = vst.msk [vmem:[#allocation2 + $0x128] sm:$0xff] %vm288_vm0, %v3584_v57 }
 0x29e   : > { %v2788_v7 = vmul.f32 %v2671_v44, %v2536_v23  ;;  %v2177_v8 = vpop.f32.mrb[32].mxu0  ;;  %2902 = vst.msk [vmem:[#allocation2 + $0x150] sm:$0xff] %vm288_vm0, %v2866_v3 }
 0x29f   : > { %v4302_v53 = vld [vmem:[#allocation3 + $0x76] sm:$0xff]  ;;  %v2178_v50 = vadd.f32 %v7163_v22, %v2177_v8  ;;  %v2179_v21 = vpop.f32.mrb[33].mxu0 }
 0x2a0   : > { %v4390_v6 = vld [vmem:[#allocation2 + $0xd0] sm:$0xff]  ;;  %4338 = vst.msk [vmem:[#allocation2 + $0x100] sm:$0xff] %vm288_vm0, %v4302_v53  ;;  %2828 = vst.msk [vmem:[#allocation3 + $0x8b] sm:$0xff] %vm288_vm0, %v2788_v7  ;;  %3006 = vrot.lane.b32.xlu1 %v2929_v34, %s5707_s27  ;;  %v3585_v60 = vld [vmem:[#allocation3 + $0x7b] sm:$0xff] }
 0x2a1   : > { %5521 = vmatprep.mubr.msk.f32.mxu0 %vm288_vm0, %v4390_v6  ;;  %4154 = vrot.lane.b32.xlu0 %v4079_v10, %s5709_s29  ;;  %v2423_v59 = vadd.f32 %v7058_v63, %v2178_v50  ;;  %v2867_v0 = vld [vmem:[#allocation3 + $0x78] sm:$0xff]  ;;  %3621 = vst.msk [vmem:[#allocation2 + $0x140] sm:$0xff] %vm288_vm0, %v3585_v60  ;;  %v4080_v7 = vld [vmem:[#allocation3 + $0x45] sm:$0xff] }
 0x2a2   : > { %2903 = vst.msk [vmem:[#allocation2 + $0x168] sm:$0xff] %vm288_vm0, %v2867_v0  ;;  %v2930_v8 = vld [vmem:[#allocation3 + $0x31] sm:$0xff] }
 0x2a3   : > { %v4303_v17 = vld [vmem:[#allocation3 + $0x7e] sm:$0xff]  ;;  %v2537_v29 = vmax.f32 %v2423_v59, 0.0  ;;  %v2182_v30 = vpop.f32.mrb[34].mxu0  ;;  %v4393_v12 = vld [vmem:[#allocation2 + $0xe8] sm:$0xff] }
 0x2a4   : > { %4339 = vst.msk [vmem:[#allocation2 + $0x118] sm:$0xff] %vm288_vm0, %v4303_v17  ;;  %v2183_v38 = vadd.f32 %v7163_v22, %v2182_v30  ;;  %v2184_v42 = vpop.f32.mrb[35].mxu0  ;;  %5522 = vmatmul.mubr.msk.f32.gmra.mrb[80].mxu0 %vm288_vm0, %v4393_v12  ;;  %3222 = vrot.lane.b32.xlu1 %v7370_v35, %s5708_s28  ;;  %v3586_v16 = vld [vmem:[#allocation3 + $0x83] sm:$0xff]  ;;  %v7463_v30 = vld [vmem:[#allocation3 + $0x4c] sm:$0xff] }
 0x2a5   : > { %3724 = vrot.lane.b32.xlu0 %v7362_v45, %s5707_s27  ;;  %v2789_v63 = vmul.f32 %v7189_v40, %v2537_v29  ;;  %v2868_v24 = vld [vmem:[#allocation3 + $0x80] sm:$0xff]  ;;  %3622 = vst.msk [vmem:[#allocation2 + $0x158] sm:$0xff] %vm288_vm0, %v3586_v16 }
 0x2a6   : > { %v2428_v46 = vadd.f32 %v7056_v41, %v2183_v38  ;;  %2904 = vst.msk [vmem:[#allocation2 + $0x180] sm:$0xff] %vm288_vm0, %v2868_v24  ;;  %v7439_v45 = vld [vmem:[#allocation3 + $0x3a] sm:$0xff]  ;;  %v2681_v41 = vpop.permute.xlu0 %2680 }
 0x2a7   : > { %v4304_v47 = vld [vmem:[#allocation3 + $0x86] sm:$0xff]  ;;  %2829 = vst.msk [vmem:[#allocation3 + $0x93] sm:$0xff] %vm288_vm0, %v2789_v63 }
 0x2a8   : > { %v4396_v58 = vld [vmem:[#allocation2 + $0x100] sm:$0xff]  ;;  %4340 = vst.msk [vmem:[#allocation2 + $0x130] sm:$0xff] %vm288_vm0, %v4304_v47  ;;  %v2538_v40 = vmax.f32 %v2428_v46, 0.0  ;;  %3438 = vrot.lane.b32.xlu1 %v7439_v45, %s5709_s29  ;;  %v3587_v35 = vld [vmem:[#allocation3 + $0x8b] sm:$0xff] }
 0x2a9   : > { %5524 = vmatprep.mubr.msk.f32.mxu0 %vm288_vm0, %v4396_v58  ;;  %3940 = vrot.lane.b32.xlu0 %v7433_v56, %s5708_s28  ;;  %v2869_v15 = vld [vmem:[#allocation3 + $0x88] sm:$0xff]  ;;  %3623 = vst.msk [vmem:[#allocation2 + $0x170] sm:$0xff] %vm288_vm0, %v3587_v35  ;;  %v2931_v47 = vld [vmem:[#allocation3 + $0x39] sm:$0xff] }
 0x2aa   : > { %v2790_v55 = vmul.f32 %v2681_v41, %v2538_v40  ;;  %v2187_v23 = vpop.f32.mrb[36].mxu0  ;;  %2905 = vst.msk [vmem:[#allocation2 + $0x198] sm:$0xff] %vm288_vm0, %v2869_v15  ;;  %v2691_v12 = vpop.permute.xlu0 %2690  ;;  %v4081_v46 = vld [vmem:[#allocation3 + $0x4d] sm:$0xff] }
 0x2ab   : > { %v2188_v44 = vadd.f32 %v7163_v22, %v2187_v23  ;;  %v2189_v57 = vpop.f32.mrb[37].mxu0  ;;  %v4399_v3 = vld [vmem:[#allocation2 + $0x118] sm:$0xff] }
 0x2ac   : > { %2830 = vst.msk [vmem:[#allocation3 + $0x9b] sm:$0xff] %vm288_vm0, %v2790_v55  ;;  %5525 = vmatmul.mubr.msk.f32.gmra.mrb[82].mxu0 %vm288_vm0, %v4399_v3  ;;  %3008 = vrot.lane.b32.xlu1 %v2930_v8, %s5707_s27  ;;  %v7492_v8 = vld [vmem:[#allocation3 + $0x54] sm:$0xff] }
 0x2ad   : > { %4156 = vrot.lane.b32.xlu0 %v4080_v7, %s5709_s29  ;;  %v2433_v53 = vadd.f32 %v7068_v14, %v2188_v44 }
 0x2ae   : > { %v4305_v50 = vld [vmem:[#allocation3 + $0x8e] sm:$0xff] }
 0x2af   : > { %4341 = vst.msk [vmem:[#allocation2 + $0x148] sm:$0xff] %vm288_vm0, %v4305_v50  ;;  %v2539_v21 = vmax.f32 %v2433_v53, 0.0  ;;  %v2192_v6 = vpop.f32.mrb[38].mxu0  ;;  %v4402_v10 = vld [vmem:[#allocation2 + $0x130] sm:$0xff]  ;;  %v2701_v53 = vpop.permute.xlu0 %2700 }
 0x2b0   : > { %v2193_v34 = vadd.f32 %v7163_v22, %v2192_v6  ;;  %v2194_v59 = vpop.f32.mrb[39].mxu0  ;;  %5527 = vmatprep.mubr.msk.f32.mxu0 %vm288_vm0, %v4402_v10  ;;  %v3588_v60 = vld [vmem:[#allocation3 + $0x93] sm:$0xff]  ;;  %3224 = vrot.lane.b32.xlu1 %v7406_v39, %s5708_s28 }
 0x2b1   : > { %3726 = vrot.lane.b32.xlu0 %v7399_v26, %s5707_s27  ;;  %v2870_v0 = vld [vmem:[#allocation3 + $0x90] sm:$0xff]  ;;  %v2791_v14 = vmul.f32 %v7201_v19, %v2539_v21  ;;  %3624 = vst.msk [vmem:[#allocation2 + $0x188] sm:$0xff] %vm288_vm0, %v3588_v60  ;;  %v7468_v19 = vld [vmem:[#allocation3 + $0x42] sm:$0xff] }
 0x2b2   : > { %2906 = vst.msk [vmem:[#allocation2 + $0x1b0] sm:$0xff] %vm288_vm0, %v2870_v0  ;;  %v2438_v17 = vadd.f32 %v7066_v49, %v2193_v34  ;;  %v4082_v59 = vld [vmem:[#allocation3 + $0x55] sm:$0xff]  ;;  %v2932_v60 = vld [vmem:[#allocation3 + $0x41] sm:$0xff] }
 0x2b3   : > { %v4306_v29 = vld [vmem:[#allocation3 + $0x96] sm:$0xff]  ;;  %2831 = vst.msk [vmem:[#allocation3 + $0xa3] sm:$0xff] %vm288_vm0, %v2791_v14 }
 0x2b4   : > { %4342 = vst.msk [vmem:[#allocation2 + $0x160] sm:$0xff] %vm288_vm0, %v4306_v29  ;;  %v2540_v26 = vmax.f32 %v2438_v17, 0.0  ;;  %v3589_v39 = vld [vmem:[#allocation3 + $0x9b] sm:$0xff]  ;;  %3440 = vrot.lane.b32.xlu1 %v7468_v19, %s5709_s29 }
 0x2b5   : > { %3942 = vrot.lane.b32.xlu0 %v7463_v30, %s5708_s28  ;;  %3625 = vst.msk [vmem:[#allocation2 + $0x1a0] sm:$0xff] %vm288_vm0, %v3589_v39  ;;  %v2871_v49 = vld [vmem:[#allocation3 + $0x98] sm:$0xff] }
 0x2b6   : > { %v2792_v38 = vmul.f32 %v2691_v12, %v2540_v26  ;;  %v2197_v42 = vpop.f32.mrb[40].mxu0  ;;  %v4405_v63 = vld [vmem:[#allocation2 + $0x148] sm:$0xff]  ;;  %2907 = vst.msk [vmem:[#allocation2 + $0x1c8] sm:$0xff] %vm288_vm0, %v2871_v49 }
 0x2b7   : > { %v2198_v16 = vadd.f32 %v7163_v22, %v2197_v42  ;;  %v2199_v24 = vpop.f32.mrb[41].mxu0  ;;  %5528 = vmatmul.mubr.msk.f32.gmra.mrb[84].mxu0 %vm288_vm0, %v4405_v63  ;;  %v2711_v63 = vpop.permute.xlu0 %2710 }
 0x2b8   : > { %2832 = vst.msk [vmem:[#allocation3 + $0xab] sm:$0xff] %vm288_vm0, %v2792_v38  ;;  %3010 = vrot.lane.b32.xlu1 %v2931_v47, %s5707_s27  ;;  %v7521_v24 = vld [vmem:[#allocation3 + $0x5c] sm:$0xff] }
 0x2b9   : > { %4158 = vrot.lane.b32.xlu0 %v4081_v46, %s5709_s29  ;;  %v2443_v58 = vadd.f32 %v7080_v28, %v2198_v16 }
 0x2ba   : > { %v4307_v40 = vld [vmem:[#allocation3 + $0x9e] sm:$0xff] }
 0x2bb   : > { %4343 = vst.msk [vmem:[#allocation2 + $0x178] sm:$0xff] %vm288_vm0, %v4307_v40  ;;  %v2541_v41 = vmax.f32 %v2443_v58, 0.0  ;;  %v2202_v35 = vpop.f32.mrb[42].mxu0  ;;  %v4408_v15 = vld [vmem:[#allocation2 + $0x160] sm:$0xff] }
 0x2bc   : > { %v2203_v55 = vadd.f32 %v7163_v22, %v2202_v35  ;;  %v2204_v23 = vpop.f32.mrb[43].mxu0  ;;  %5530 = vmatprep.mubr.msk.f32.mxu0 %vm288_vm0, %v4408_v15  ;;  %v3590_v44 = vld [vmem:[#allocation3 + $0xa3] sm:$0xff]  ;;  %3226 = vrot.lane.b32.xlu1 %v7439_v45, %s5708_s28 }
 0x2bd   : > { %3728 = vrot.lane.b32.xlu0 %v7433_v56, %s5707_s27  ;;  %v2872_v57 = vld [vmem:[#allocation3 + $0xa0] sm:$0xff]  ;;  %v2793_v28 = vmul.f32 %v7216_v32, %v2541_v41  ;;  %3626 = vst.msk [vmem:[#allocation2 + $0x1b8] sm:$0xff] %vm288_vm0, %v3590_v44  ;;  %v7497_v32 = vld [vmem:[#allocation3 + $0x4a] sm:$0xff] }
 0x2be   : > { %2908 = vst.msk [vmem:[#allocation2 + $0x1e0] sm:$0xff] %vm288_vm0, %v2872_v57  ;;  %v2448_v3 = vadd.f32 %v7078_v25, %v2203_v55  ;;  %v4083_v35 = vld [vmem:[#allocation3 + $0x5d] sm:$0xff]  ;;  %v2933_v15 = vld [vmem:[#allocation3 + $0x49] sm:$0xff]  ;;  %v2721_v55 = vpop.permute.xlu0 %2720 }
 0x2bf   : > { %v4308_v7 = vld [vmem:[#allocation3 + $0xa6] sm:$0xff]  ;;  %2833 = vst.msk [vmem:[#allocation3 + $0xb3] sm:$0xff] %vm288_vm0, %v2793_v28  ;;  %v2588_v28 = vld [vmem:[%s8329_s1 + $0xf8] sm:$0xff] }
 0x2c0   : > { %4344 = vst.msk [vmem:[#allocation2 + $0x190] sm:$0xff] %vm288_vm0, %v4308_v7  ;;  %v2542_v56 = vmax.f32 %v2448_v3, 0.0  ;;  %v3591_v45 = vld [vmem:[#allocation3 + $0xab] sm:$0xff]  ;;  %3442 = vrot.lane.b32.xlu1 %v7497_v32, %s5709_s29 }
 0x2c1   : > { %3944 = vrot.lane.b32.xlu0 %v7492_v8, %s5708_s28  ;;  %3627 = vst.msk [vmem:[#allocation2 + $0x1d0] sm:$0xff] %vm288_vm0, %v3591_v45  ;;  %v2873_v25 = vld [vmem:[#allocation3 + $0xa8] sm:$0xff] }
 0x2c2   : > { %v2794_v50 = vmul.f32 %v2701_v53, %v2542_v56  ;;  %v2207_v21 = vpop.f32.mrb[44].mxu0  ;;  %v4411_v6 = vld [vmem:[#allocation2 + $0x178] sm:$0xff]  ;;  %2909 = vst.msk [vmem:[#allocation2 + $0x1f8] sm:$0xff] %vm288_vm0, %v2873_v25 }
 0x2c3   : > { %v2208_v10 = vadd.f32 %v7163_v22, %v2207_v21  ;;  %v2209_v34 = vpop.f32.mrb[45].mxu0  ;;  %5531 = vmatmul.mubr.msk.f32.gmra.mrb[86].mxu0 %vm288_vm0, %v4411_v6  ;;  %v2731_v21 = vpop.permute.xlu0 %2730 }
 0x2c4   : > { %2834 = vst.msk [vmem:[#allocation3 + $0xbb] sm:$0xff] %vm288_vm0, %v2794_v50  ;;  %3012 = vrot.lane.b32.xlu1 %v2932_v60, %s5707_s27  ;;  %v7558_v60 = vld [vmem:[%s8331_s3] ss:$0 sm:$0xff] }
 0x2c5   : > { %4160 = vrot.lane.b32.xlu0 %v4082_v59, %s5709_s29  ;;  %v2453_v0 = vadd.f32 %v7109_v54, %v2208_v10  ;;  %v3868_v10 = vld [vmem:[#allocation3 + $0x64] sm:$0xff] }
 0x2c6   : > { %v4309_v14 = vld [vmem:[#allocation3 + $0xae] sm:$0xff] }
 0x2c7   : > { %4345 = vst.msk [vmem:[#allocation2 + $0x1a8] sm:$0xff] %vm288_vm0, %v4309_v14  ;;  %v2543_v17 = vmax.f32 %v2453_v0, 0.0  ;;  %v2212_v29 = vpop.f32.mrb[46].mxu0  ;;  %v4414_v26 = vld [vmem:[#allocation2 + $0x190] sm:$0xff] }
 0x2c8   : > { %v2213_v39 = vadd.f32 %v7163_v22, %v2212_v29  ;;  %v2214_v12 = vpop.f32.mrb[47].mxu0  ;;  %5533 = vmatprep.mubr.msk.f32.mxu0 %vm288_vm0, %v4414_v26  ;;  %v3592_v49 = vld [vmem:[#allocation3 + $0xb3] sm:$0xff]  ;;  %3228 = vrot.lane.b32.xlu1 %v7468_v19, %s5708_s28  ;;  %v4084_v29 = vld [vmem:[#allocation3 + $0x65] sm:$0xff] }
 0x2c9   : > { %3730 = vrot.lane.b32.xlu0 %v7463_v30, %s5707_s27  ;;  %v2874_v38 = vld [vmem:[#allocation3 + $0xb0] sm:$0xff]  ;;  %v2795_v54 = vmul.f32 %v7237_v18, %v2543_v17  ;;  %3628 = vst.msk [vmem:[#allocation2 + $0x1e8] sm:$0xff] %vm288_vm0, %v3592_v49 }
 0x2ca   : > { %2910 = vst.msk [vmem:[#allocation2 + $0x210] sm:$0xff] %vm288_vm0, %v2874_v38  ;;  %v2458_v42 = vadd.f32 %v7105_v48, %v2213_v39  ;;  %v7526_v18 = vld [vmem:[#allocation3 + $0x52] sm:$0xff]  ;;  %v7566_v39 = vpop.permute.xlu0 %2740 }
 0x2cb   : > { %v4310_v16 = vld [vmem:[#allocation3 + $0xb6] sm:$0xff]  ;;  %2835 = vst.msk [vmem:[#allocation3 + $0xc3] sm:$0xff] %vm288_vm0, %v2795_v54 }
 0x2cc   : > { %4346 = vst.msk [vmem:[#allocation2 + $0x1c0] sm:$0xff] %vm288_vm0, %v4310_v16  ;;  %v2544_v30 = vmax.f32 %v2458_v42, 0.0  ;;  %v3593_v19 = vld [vmem:[#allocation3 + $0xbb] sm:$0xff]  ;;  %3444 = vrot.lane.b32.xlu1 %v7526_v18, %s5709_s29 }
 0x2cd   : > { %3946 = vrot.lane.b32.xlu0 %v7521_v24, %s5708_s28  ;;  %3629 = vst.msk [vmem:[#allocation2 + $0x200] sm:$0xff] %vm288_vm0, %v3593_v19  ;;  %v2875_v48 = vld [vmem:[#allocation3 + $0xb8] sm:$0xff] }
 0x2ce   : > { %v2796_v46 = vmul.f32 %v2711_v63, %v2544_v30  ;;  %v2217_v47 = vpop.f32.mrb[48].mxu0  ;;  %v4417_v58 = vld [vmem:[#allocation2 + $0x1a8] sm:$0xff]  ;;  %2911 = vst.msk [vmem:[#allocation2 + $0x228] sm:$0xff] %vm288_vm0, %v2875_v48  ;;  %v7576_v30 = vld [vmem:[#allocation3 + $0x74] sm:$0xff] }
 0x2cf   : > { %v2218_v40 = vadd.f32 %v7163_v22, %v2217_v47  ;;  %v2219_v41 = vpop.f32.mrb[49].mxu0  ;;  %5534 = vmatmul.mubr.msk.f32.gmra.mrb[88].mxu0 %vm288_vm0, %v4417_v58 }
 0x2d0   : > { %2836 = vst.msk [vmem:[#allocation3 + $0xcb] sm:$0xff] %vm288_vm0, %v2796_v46  ;;  %3014 = vrot.lane.b32.xlu1 %v2933_v15, %s5707_s27 }
 0x2d1   : > { %4162 = vrot.lane.b32.xlu0 %v4083_v35, %s5709_s29  ;;  %v2463_v23 = vadd.f32 %v7140_v52, %v2218_v40 }
 0x2d2   : > { %v4311_v44 = vld [vmem:[#allocation3 + $0xbe] sm:$0xff]  ;;  %v2222_v57 = vpop.f32.mrb[50].mxu0 }
 0x2d3   : > { %4347 = vst.msk [vmem:[#allocation2 + $0x1d8] sm:$0xff] %vm288_vm0, %v4311_v44  ;;  %v2545_v3 = vmax.f32 %v2463_v23, 0.0  ;;  %v2223_v7 = vadd.f32 %v7163_v22, %v2222_v57  ;;  %v2224_v56 = vpop.f32.mrb[51].mxu0  ;;  %v4420_v45 = vld [vmem:[#allocation2 + $0x1c0] sm:$0xff] }
 0x2d4   : > { %5536 = vmatprep.mubr.msk.f32.mxu0 %vm288_vm0, %v4420_v45  ;;  %v3594_v52 = vld [vmem:[#allocation3 + $0xc3] sm:$0xff]  ;;  %2750 = vperm.xlu1 %5696, %v2588_v28  }
 0x2d5   : > { %3732 = vrot.lane.b32.xlu0 %v7492_v8, %s5707_s27  ;;  %v2876_v53 = vld [vmem:[#allocation3 + $0xc0] sm:$0xff]  ;;  %v2797_v25 = vmul.f32 %v7248_v33, %v2545_v3  ;;  %v2468_v50 = vadd.f32 %v7136_v1, %v2223_v7  ;;  %3630 = vst.msk [vmem:[#allocation2 + $0x218] sm:$0xff] %vm288_vm0, %v3594_v52  ;;  %v4085_v8 = vld [vmem:[#allocation3 + $0x6d] sm:$0xff] }
 0x2d6   : > { %2912 = vst.msk [vmem:[#allocation2 + $0x240] sm:$0xff] %vm288_vm0, %v2876_v53  ;;  %v7609_v53 = vld [vmem:[#allocation3 + $0x5a] sm:$0xff] }
 0x2d7   : > { %v4312_v22 = vld [vmem:[#allocation3 + $0xc6] sm:$0xff]  ;;  %2837 = vst.msk [vmem:[#allocation3 + $0xd3] sm:$0xff] %vm288_vm0, %v2797_v25  ;;  %v2546_v6 = vmax.f32 %v2468_v50, 0.0 }
 0x2d8   : > { %4348 = vst.msk [vmem:[#allocation2 + $0x1f0] sm:$0xff] %vm288_vm0, %v4312_v22  ;;  %v3595_v34 = vld [vmem:[#allocation3 + $0xcb] sm:$0xff]  ;;  %4166 = vrot.lane.b32.xlu1 %v4085_v8, %s5709_s29  ;;  %v2935_v22 = vld [vmem:[#allocation3 + $0x59] sm:$0xff] }
 0x2d9   : > { %3948 = vrot.lane.b32.xlu0 %v3868_v10, %s5708_s28  ;;  %v2798_v33 = vmul.f32 %v2721_v55, %v2546_v6  ;;  %v2227_v1 = vpop.f32.mrb[52].mxu0  ;;  %3631 = vst.msk [vmem:[#allocation2 + $0x230] sm:$0xff] %vm288_vm0, %v3595_v34  ;;  %v2877_v59 = vld [vmem:[#allocation3 + $0xc8] sm:$0xff] }
 0x2da   : > { %v2228_v0 = vadd.f32 %v7558_v60, %v2227_v1  ;;  %v2229_v14 = vpop.f32.mrb[53].mxu0  ;;  %v4423_v17 = vld [vmem:[#allocation2 + $0x1d8] sm:$0xff]  ;;  %2913 = vst.msk [vmem:[#allocation2 + $0x258] sm:$0xff] %vm288_vm0, %v2877_v59 }
 0x2db   : > { %2838 = vst.msk [vmem:[#allocation3 + $0xdb] sm:$0xff] %vm288_vm0, %v2798_v33  ;;  %5537 = vmatmul.mubr.msk.f32.gmra.mrb[90].mxu0 %vm288_vm0, %v4423_v17  ;;  %v2934_v33 = vld [vmem:[#allocation3 + $0x51] sm:$0xff]  ;;  %v2589_v14 = vld [vmem:[%s8329_s1 + $0x100] sm:$0xff] }
 0x2dc   : > { %v2473_v26 = vadd.f32 %v7179_v43, %v2228_v0  ;;  %3736 = vrot.lane.b32.xlu1 %v3868_v10, %s5707_s27 }
 0x2dd   : > { %4164 = vrot.lane.b32.xlu0 %v4084_v29, %s5709_s29 }
 0x2de   : > { %v4313_v12 = vld [vmem:[#allocation3 + $0xce] sm:$0xff]  ;;  %v2547_v49 = vmax.f32 %v2473_v26, 0.0  ;;  %v3429_v38 = vpop.permute.xlu1 %3428  ;;  %v2232_v54 = vpop.f32.mrb[54].mxu0 }
 0x2df   : > { %4349 = vst.msk [vmem:[#allocation2 + $0x208] sm:$0xff] %vm288_vm0, %v4313_v12  ;;  %v2233_v42 = vadd.f32 %v7558_v60, %v2232_v54  ;;  %v2234_v63 = vpop.f32.mrb[55].mxu0  ;;  %v4426_v16 = vld [vmem:[#allocation2 + $0x1f0] sm:$0xff]  ;;  %v4087_v54 = vld [vmem:[#allocation3 + $0x7d] sm:$0xff] }
 0x2e0   : > { %3536 = vst.msk [vmem:[#allocation2] sm:$0xff] %vm942_vm6, %v3429_v38  ;;  %v2799_v43 = vmul.f32 %v7269_v20, %v2547_v49  ;;  %5539 = vmatprep.mubr.msk.f32.mxu0 %vm288_vm0, %v4426_v16  ;;  %v3596_v19 = vld [vmem:[#allocation3 + $0xd3] sm:$0xff]  ;;  %3952 = vrot.lane.b32.xlu1 %v7576_v30, %s5708_s28 }
 0x2e1   : > { %3734 = vrot.lane.b32.xlu0 %v7521_v24, %s5707_s27  ;;  %v2878_v48 = vld [vmem:[#allocation3 + $0xd0] sm:$0xff]  ;;  %v2478_v46 = vadd.f32 %v7173_v37, %v2233_v42  ;;  %3632 = vst.msk [vmem:[#allocation2 + $0x248] sm:$0xff] %vm288_vm0, %v3596_v19 }
 0x2e2   : > { %2914 = vst.msk [vmem:[#allocation2 + $0x270] sm:$0xff] %vm288_vm0, %v2878_v48  ;;  %v4314_v47 = vld [vmem:[#allocation3 + $0xd6] sm:$0xff]  ;;  %2839 = vst.msk [vmem:[#allocation3 + $0xe3] sm:$0xff] %vm288_vm0, %v2799_v43  ;;  %v3717_v20 = vpop.permute.xlu0 %3716  ;;  %v2999_v58 = vpop.permute.xlu1 %2998  ;;  %v7587_v37 = vld [vmem:[#allocation3 + $0x6c] sm:$0xff] }
 0x2e3   : > { %4350 = vst.msk [vmem:[#allocation2 + $0x220] sm:$0xff] %vm288_vm0, %v4314_v47  ;;  %v2548_v24 = vmax.f32 %v2478_v46, 0.0  ;;  %v3597_v40 = vld [vmem:[#allocation3 + $0xdb] sm:$0xff] }
 0x2e4   : > { %3824 = vst.msk [vmem:[#allocation2 + $0x8] sm:$0xff] %vm506_vm2, %v3717_v20  ;;  %3105 = vst.msk [vmem:[#allocation2 + $0x18] sm:$0xff] %vm506_vm2, %v2999_v58  ;;  %v2879_v41 = vld [vmem:[#allocation3 + $0xd8] sm:$0xff]  ;;  %3232 = vrot.lane.b32.xlu1 %v7526_v18, %s5708_s28  ;;  %v7602_v18 = vld [vmem:[#allocation3 + $0x62] sm:$0xff] }
 0x2e5   : > { %3950 = vrot.lane.b32.xlu0 %v7587_v37, %s5708_s28  ;;  %3633 = vst.msk [vmem:[#allocation2 + $0x260] sm:$0xff] %vm288_vm0, %v3597_v40  ;;  %v2800_v35 = vmul.f32 %v2731_v21, %v2548_v24  ;;  %v2237_v15 = vpop.f32.mrb[56].mxu0  ;;  %2915 = vst.msk [vmem:[#allocation2 + $0x288] sm:$0xff] %vm288_vm0, %v2879_v41  ;;  %v4086_v19 = vld [vmem:[#allocation3 + $0x75] sm:$0xff] }
 0x2e6   : > { %v2238_v55 = vadd.f32 %v7558_v60, %v2237_v15  ;;  %v3215_v23 = vpop.permute.xlu1 %3214  ;;  %v2239_v44 = vpop.f32.mrb[57].mxu0  ;;  %v4429_v57 = vld [vmem:[#allocation2 + $0x208] sm:$0xff] }
 0x2e7   : > { %2840 = vst.msk [vmem:[#allocation3 + $0xeb] sm:$0xff] %vm288_vm0, %v2800_v35  ;;  %5540 = vmatmul.mubr.msk.f32.gmra.mrb[92].mxu0 %vm288_vm0, %v4429_v57  ;;  %v7669_v57 = vld [vmem:[#allocation3 + $0x7c] sm:$0xff] }
 0x2e8   : > { %3321 = vst.msk [vmem:[#allocation2 + $0x18] sm:$0xff] %vm724_vm4, %v3215_v23  ;;  %v2483_v28 = vadd.f32 %v7221_v61, %v2238_v55  ;;  %3448 = vrot.lane.b32.xlu1 %v7602_v18, %s5709_s29 }
 0x2e9   : > { %3230 = vrot.lane.b32.xlu0 %v7497_v32, %s5708_s28  ;;  %v4315_v3 = vld [vmem:[#allocation3 + $0xde] sm:$0xff] }
 0x2ea   : > { %4351 = vst.msk [vmem:[#allocation2 + $0x238] sm:$0xff] %vm288_vm0, %v4315_v3  ;;  %v2549_v7 = vmax.f32 %v2483_v28, 0.0  ;;  %v3431_v45 = vpop.permute.xlu1 %3430  ;;  %v3598_v52 = vld [vmem:[#allocation3 + $0xe3] sm:$0xff]  ;;  %v2242_v61 = vpop.f32.mrb[58].mxu0 }
 0x2eb   : > { %v3933_v56 = vpop.permute.xlu0 %3932  ;;  %3537 = vst.msk [vmem:[#allocation2 + $0x18] sm:$0xff] %vm942_vm6, %v3431_v45  ;;  %v2880_v32 = vld [vmem:[#allocation3 + $0xe0] sm:$0xff]  ;;  %v2243_v50 = vadd.f32 %v7558_v60, %v2242_v61  ;;  %v2244_v21 = vpop.f32.mrb[59].mxu0 }
 0x2ec   : > { %4040 = vst.msk [vmem:[#allocation2 + $0x8] sm:$0xff] %vm724_vm4, %v3933_v56  ;;  %v2801_v25 = vmul.f32 %v7288_v51, %v2549_v7  ;;  %3018 = vrot.lane.b32.xlu1 %v2935_v22, %s5707_s27  ;;  %v2590_v51 = vld [vmem:[%s8329_s1 + $0x108] sm:$0xff] }
 0x2ed   : > { %3634 = vst.msk [vmem:[#allocation2 + $0x278] sm:$0xff] %vm288_vm0, %v3598_v52  ;;  %3446 = vrot.lane.b32.xlu0 %v7609_v53, %s5709_s29  ;;  %2916 = vst.msk [vmem:[#allocation2 + $0x2a0] sm:$0xff] %vm288_vm0, %v2880_v32  ;;  %v2488_v10 = vadd.f32 %v7214_v31, %v2243_v50 }
 0x2ee   : > { %v4316_v6 = vld [vmem:[#allocation3 + $0xe6] sm:$0xff]  ;;  %2841 = vst.msk [vmem:[#allocation3 + $0xf3] sm:$0xff] %vm288_vm0, %v2801_v25  ;;  %v3001_v34 = vpop.permute.xlu1 %3000 }
 0x2ef   : > { %v4149_v8 = vpop.permute.xlu0 %4148  ;;  %4352 = vst.msk [vmem:[#allocation2 + $0x250] sm:$0xff] %vm288_vm0, %v4316_v6  ;;  %v3599_v1 = vld [vmem:[#allocation3 + $0xeb] sm:$0xff]  ;;  %v2550_v59 = vmax.f32 %v2488_v10, 0.0 }
 0x2f0   : > { %4256 = vst.msk [vmem:[#allocation2 + $0x8] sm:$0xff] %vm942_vm6, %v4149_v8  ;;  %v2881_v31 = vld [vmem:[#allocation3 + $0xe8] sm:$0xff]  ;;  %2760 = vperm.xlu1 %5696, %v2590_v51   ;;  %v2592_v51 = vld [vmem:[%s8329_s1 + $0x118] sm:$0x3f] }
 0x2f1   : > { %3106 = vst.msk [vmem:[#allocation2 + $0x30] sm:$0xff] %vm506_vm2, %v3001_v34  ;;  %3016 = vrot.lane.b32.xlu0 %v2934_v33, %s5707_s27  ;;  %v2247_v0 = vpop.f32.mrb[60].mxu0  ;;  %v2802_v17 = vmul.f32 %v7566_v39, %v2550_v59  ;;  %v7695_v6 = vld [vmem:[#allocation3 + $0x6a] sm:$0xff] }
 0x2f2   : > { %3635 = vst.msk [vmem:[#allocation2 + $0x290] sm:$0xff] %vm288_vm0, %v3599_v1  ;;  %2917 = vst.msk [vmem:[#allocation2 + $0x2b8] sm:$0xff] %vm288_vm0, %v2881_v31  ;;  %v2248_v29 = vadd.f32 %v7558_v60, %v2247_v0  ;;  %v2249_v12 = vpop.f32.mrb[61].mxu0  ;;  %v3217_v49 = vpop.permute.xlu1 %3216  ;;  %v4367_v61 = vld [vmem:[#allocation2 + $0x18] sm:$0xff]  ;;  %v2936_v1 = vld [vmem:[#allocation3 + $0x61] sm:$0xff] }
 0x2f3   : > { %v3719_v26 = vpop.permute.xlu0 %3718  ;;  %2842 = vst.msk [vmem:[#allocation3 + $0xfb] sm:$0xff] %vm288_vm0, %v2802_v17  ;;  %v2591_v31 = vld [vmem:[%s8329_s1 + $0x110] sm:$0xff] }
 0x2f4   : > { %3825 = vst.msk [vmem:[#allocation2 + $0x20] sm:$0xff] %vm506_vm2, %v3719_v26  ;;  %v2493_v38 = vadd.f32 %v7273_v36, %v2248_v29  ;;  %4170 = vrot.lane.b32.xlu1 %v4087_v54, %s5709_s29  ;;  %v4364_v36 = vld [vmem:[#allocation2] sm:$0xff] }
 0x2f5   : > { %3322 = vst.msk [vmem:[#allocation2 + $0x30] sm:$0xff] %vm724_vm4, %v3217_v49  ;;  %2755 = vperm.xlu0 %5695, %v2589_v14   ;;  %v4317_v42 = vld [vmem:[#allocation3 + $0xee] sm:$0xff] }
 0x2f6   : > { %4353 = vst.msk [vmem:[#allocation2 + $0x268] sm:$0xff] %vm288_vm0, %v4317_v42  ;;  %v2551_v39 = vmax.f32 %v2493_v38, 0.0  ;;  %v2252_v16 = vpop.f32.mrb[62].mxu0  ;;  %v3433_v48 = vpop.permute.xlu1 %3432  ;;  %v3600_v20 = vld [vmem:[#allocation3 + $0xf3] sm:$0xff] }
 0x2f7   : > { %v3935_v63 = vpop.permute.xlu0 %3934  ;;  %v4365_v43 = vld [vmem:[#allocation2 + $0x8] sm:$0xff]  ;;  %v2253_v46 = vadd.f32 %v7558_v60, %v2252_v16  ;;  %v2254_v47 = vpop.f32.mrb[63].mxu0  ;;  %v2882_v58 = vld [vmem:[#allocation3 + $0xf0] sm:$0xff]  ;;  %3538 = vst.msk [vmem:[#allocation2 + $0x30] sm:$0xff] %vm942_vm6, %v3433_v48 }
 0x2f8   : > { %4041 = vst.msk [vmem:[#allocation2 + $0x20] sm:$0xff] %vm724_vm4, %v3935_v63  ;;  %4687 = vmatprep.mubr.f32.mxu1 %v4365_v43  ;;  %v2803_v24 = vmul.f32 %v7300_v27, %v2551_v39  ;;  %3740 = vrot.lane.b32.xlu1 %v7576_v30, %s5707_s27  ;;  %v4088_v39 = vld [vmem:[#allocation3 + $0x85] sm:$0xff]  ;;  %v4090_v47 = vld [vmem:[#allocation3 + $0x95] sm:$0xff] }
 0x2f9   : > { %4168 = vrot.lane.b32.xlu0 %v4086_v19, %s5709_s29  ;;  %4688 = vmatmul.mubr.f32.vlgmr.msra.gmra.mrb[36].mxu1 %v4364_v36  ;;  %3636 = vst.msk [vmem:[#allocation2 + $0x2a8] sm:$0xff] %vm288_vm0, %v3600_v20  ;;  %2918 = vst.msk [vmem:[#allocation2 + $0x2d0] sm:$0xff] %vm288_vm0, %v2882_v58  ;;  %v7648_v40 = vadd.f32 %v7261_v9, %v2253_v46  ;;  %v7660_v9 = vld [vmem:[#allocation3 + $0x84] sm:$0xff]  ;;  %v3873_v48 = vld [vmem:[#allocation3 + $0x8c] sm:$0xff] }
 0x2fa   : > { %5677 = vmatpush3.bf16.msra.mxu1 %v7001_v2  ;;  %2843 = vst.msk [vmem:[#allocation3 + $0x103] sm:$0xff] %vm288_vm0, %v2803_v24  ;;  %v4318_v41 = vld [vmem:[#allocation3 + $0xf6] sm:$0xff]  ;;  %v3003_v35 = vpop.permute.xlu1 %3002 }
 0x2fb   : > { %v4151_v27 = vpop.permute.xlu0 %4150  ;;  %5676 = vmatprep.subr.bf16.mxu1 %v7018_v11  ;;  %4354 = vst.msk [vmem:[#allocation2 + $0x280] sm:$0xff] %vm288_vm0, %v4318_v41  ;;  %v3601_v30 = vld [vmem:[#allocation3 + $0xfb] sm:$0xff] }
 0x2fc   : > { %4257 = vst.msk [vmem:[#allocation2 + $0x20] sm:$0xff] %vm942_vm6, %v4151_v27  ;;  %3956 = vrot.lane.b32.xlu1 %v7660_v9, %s5708_s28  ;;  %v2883_v15 = vld [vmem:[#allocation3 + $0xf8] sm:$0xff] }
 0x2fd   : > { %3107 = vst.msk [vmem:[#allocation2 + $0x48] sm:$0xff] %vm506_vm2, %v3003_v35  ;;  %3738 = vrot.lane.b32.xlu0 %v7587_v37, %s5707_s27  ;;  %v2257_v2 = vpop.f32.mrb[64].mxu0  ;;  %v3369_v27 = vld [vmem:[#allocation3 + $0x7a] sm:$0xff] }
 0x2fe   : > { %3637 = vst.msk [vmem:[#allocation2 + $0x2c0] sm:$0xff] %vm288_vm0, %v3601_v30  ;;  %5678 = vmatpush3.bf16.msra.mxu1 %v7018_v11  ;;  %v2258_v55 = vadd.f32 %v7558_v60, %v2257_v2  ;;  %v2259_v44 = vpop.f32.mrb[65].mxu0  ;;  %2919 = vst.msk [vmem:[#allocation2 + $0x2e8] sm:$0xff] %vm288_vm0, %v2883_v15  ;;  %v3219_v37 = vpop.permute.xlu1 %3218  ;;  %v4370_v49 = vld [vmem:[#allocation2 + $0x30] sm:$0xff]  ;;  %v3875_v41 = vld [vmem:[#allocation3 + $0x9c] sm:$0xff] }
 0x2ff   : > { %v3721_v23 = vpop.permute.xlu0 %3720  ;;  %3323 = vst.msk [vmem:[#allocation2 + $0x48] sm:$0xff] %vm724_vm4, %v3219_v37  ;;  %v2938_v2 = vld [vmem:[#allocation3 + $0x71] sm:$0xff] }
 0x300   : > { %3826 = vst.msk [vmem:[#allocation2 + $0x38] sm:$0xff] %vm506_vm2, %v3721_v23  ;;  %v7673_v28 = vadd.f32 %v7317_v4, %v2258_v55  ;;  %3236 = vrot.lane.b32.xlu1 %v7602_v18, %s5708_s28  ;;  %v7685_v18 = vld [vmem:[#allocation3 + $0x72] sm:$0xff]  ;;  %v4091_v55 = vld [vmem:[#allocation3 + $0x9d] sm:$0xff] }
 0x301   : > { %3954 = vrot.lane.b32.xlu0 %v7669_v57, %s5708_s28  ;;  %v4319_v11 = vld [vmem:[#allocation3 + $0xfe] sm:$0xff] }
 0x302   : > { %4355 = vst.msk [vmem:[#allocation2 + $0x298] sm:$0xff] %vm288_vm0, %v4319_v11  ;;  %v2262_v7 = vpop.f32.mrb[66].mxu0  ;;  %v3435_v45 = vpop.permute.xlu1 %3434  ;;  %v3602_v32 = vld [vmem:[#allocation3 + $0x103] sm:$0xff] }
 0x303   : > { %v3937_v3 = vpop.permute.xlu0 %3936  ;;  %v4368_v56 = vld [vmem:[#allocation2 + $0x20] sm:$0xff]  ;;  %v2263_v52 = vadd.f32 %v7558_v60, %v2262_v7  ;;  %v2264_v4 = vpop.f32.mrb[67].mxu0  ;;  %3539 = vst.msk [vmem:[#allocation2 + $0x48] sm:$0xff] %vm942_vm6, %v3435_v45 }
 0x304   : > { %4042 = vst.msk [vmem:[#allocation2 + $0x38] sm:$0xff] %vm724_vm4, %v3937_v3  ;;  %4692 = vmatprep.mubr.f32.mxu1 %v4368_v56  ;;  %v2884_v25 = vld [vmem:[#allocation3 + $0x100] sm:$0xff]  ;;  %3452 = vrot.lane.b32.xlu1 %v7685_v18, %s5709_s29 }
 0x305   : > { %3234 = vrot.lane.b32.xlu0 %v7609_v53, %s5708_s28  ;;  %4693 = vmatmul.mubr.f32.gmra.mrb[38].mxu1 %v4367_v61  ;;  %3638 = vst.msk [vmem:[#allocation2 + $0x2d8] sm:$0xff] %vm288_vm0, %v3602_v32  ;;  %2920 = vst.msk [vmem:[#allocation2 + $0x300] sm:$0xff] %vm288_vm0, %v2884_v25  ;;  %v7690_v50 = vadd.f32 %v7312_v62, %v2263_v52  ;;  %v2937_v53 = vld [vmem:[#allocation3 + $0x69] sm:$0xff]  ;;  %v2939_v52 = vld [vmem:[#allocation3 + $0x79] sm:$0xff] }
 0x306   : > { %v3005_v22 = vpop.permute.xlu1 %3004  ;;  %v3370_v11 = vld [vmem:[#allocation3 + $0x82] sm:$0xff] }
 0x307   : > { %v4153_v21 = vpop.permute.xlu0 %4152  ;;  %3108 = vst.msk [vmem:[#allocation2 + $0x60] sm:$0xff] %vm506_vm2, %v3005_v22  ;;  %v3876_v3 = vld [vmem:[#allocation3 + $0xa4] sm:$0xff] }
 0x308   : > { %4258 = vst.msk [vmem:[#allocation2 + $0x38] sm:$0xff] %vm942_vm6, %v4153_v21  ;;  %3022 = vrot.lane.b32.xlu1 %v2937_v53, %s5707_s27  ;;  %v4092_v61 = vld [vmem:[#allocation3 + $0xa5] sm:$0xff] }
 0x309   : > { %3450 = vrot.lane.b32.xlu0 %v7695_v6, %s5709_s29  ;;  %v2267_v10 = vpop.f32.mrb[68].mxu0  ;;  %v3371_v22 = vld [vmem:[#allocation3 + $0x8a] sm:$0xff] }
 0x30a   : > { %v2268_v62 = vadd.f32 %v7558_v60, %v2267_v10  ;;  %v2269_v34 = vpop.f32.mrb[69].mxu0  ;;  %v3221_v33 = vpop.permute.xlu1 %3220  ;;  %v4373_v46 = vld [vmem:[#allocation2 + $0x48] sm:$0xff] }
 0x30b   : > { %v3723_v8 = vpop.permute.xlu0 %3722  ;;  %3324 = vst.msk [vmem:[#allocation2 + $0x60] sm:$0xff] %vm724_vm4, %v3221_v33 }
 0x30c   : > { %3827 = vst.msk [vmem:[#allocation2 + $0x50] sm:$0xff] %vm506_vm2, %v3723_v8  ;;  %v7708_v59 = vadd.f32 %v7357_v13, %v2268_v62  ;;  %2770 = vperm.xlu1 %5696, %v2592_v51   ;;  %v4089_v13 = vld [vmem:[#allocation3 + $0x8d] sm:$0xff]  ;;  %v2940_v8 = vld [vmem:[#allocation3 + $0x81] sm:$0xff] }
 0x30d   : > { %3020 = vrot.lane.b32.xlu0 %v2936_v1, %s5707_s27  ;;  %v4093_v51 = vld [vmem:[#allocation3 + $0xad] sm:$0xff] }
 0x30e   : > { %v2272_v14 = vpop.f32.mrb[70].mxu0  ;;  %v3437_v29 = vpop.permute.xlu1 %3436 }
 0x30f   : > { %v3939_v0 = vpop.permute.xlu0 %3938  ;;  %v4371_v17 = vld [vmem:[#allocation2 + $0x38] sm:$0xff]  ;;  %v2273_v26 = vadd.f32 %v7558_v60, %v2272_v14  ;;  %v2274_v12 = vpop.f32.mrb[71].mxu0  ;;  %3540 = vst.msk [vmem:[#allocation2 + $0x60] sm:$0xff] %vm942_vm6, %v3437_v29 }
 0x310   : > { %4043 = vst.msk [vmem:[#allocation2 + $0x50] sm:$0xff] %vm724_vm4, %v3939_v0  ;;  %4697 = vmatprep.mubr.f32.mxu1 %v4371_v17  ;;  %4174 = vrot.lane.b32.xlu1 %v4089_v13, %s5709_s29  ;;  %v3372_v0 = vld [vmem:[#allocation3 + $0x92] sm:$0xff] }
 0x311   : > { %2765 = vperm.xlu0 %5695, %v2591_v31   ;;  %4698 = vmatmul.mubr.f32.gmra.mrb[40].mxu1 %v4370_v49  ;;  %v7718_v38 = vadd.f32 %v7353_v5, %v2273_v26  ;;  %v3874_v5 = vld [vmem:[#allocation3 + $0x94] sm:$0xff]  ;;  %v2941_v26 = vld [vmem:[#allocation3 + $0x89] sm:$0xff] }
 0x312   : > { %v3007_v42 = vpop.permute.xlu1 %3006  ;;  %v3878_v14 = vld [vmem:[#allocation3 + $0xb4] sm:$0xff] }
 0x313   : > { %v4155_v54 = vpop.permute.xlu0 %4154  ;;  %3109 = vst.msk [vmem:[#allocation2 + $0x78] sm:$0xff] %vm506_vm2, %v3007_v42  ;;  %v4094_v49 = vld [vmem:[#allocation3 + $0xb5] sm:$0xff]  ;;  %v2552_v42 = vmax.f32 %v7648_v40, 0.0 }
 0x314   : > { %4259 = vst.msk [vmem:[#allocation2 + $0x50] sm:$0xff] %vm942_vm6, %v4155_v54  ;;  %3744 = vrot.lane.b32.xlu1 %v7660_v9, %s5707_s27  ;;  %v2942_v40 = vld [vmem:[#allocation3 + $0x91] sm:$0xff] }
 0x315   : > { %4172 = vrot.lane.b32.xlu0 %v4088_v39, %s5709_s29  ;;  %v3373_v39 = vld [vmem:[#allocation3 + $0x9a] sm:$0xff] }
 0x316   : > { %v3223_v63 = vpop.permute.xlu1 %3222  ;;  %v4376_v15 = vld [vmem:[#allocation2 + $0x60] sm:$0xff] }
 0x317   : > { %v3725_v60 = vpop.permute.xlu0 %3724  ;;  %3325 = vst.msk [vmem:[#allocation2 + $0x78] sm:$0xff] %vm724_vm4, %v3223_v63  ;;  %v3879_v63 = vld [vmem:[#allocation3 + $0xbc] sm:$0xff] }
 0x318   : > { %3828 = vst.msk [vmem:[#allocation2 + $0x68] sm:$0xff] %vm506_vm2, %v3725_v60  ;;  %3960 = vrot.lane.b32.xlu1 %v3874_v5, %s5708_s28 }
 0x319   : > { %3742 = vrot.lane.b32.xlu0 %v7669_v57, %s5707_s27 }
 0x31a   : > { %v3439_v19 = vpop.permute.xlu1 %3438 }
 0x31b   : > { %v3941_v16 = vpop.permute.xlu0 %3940  ;;  %v4374_v43 = vld [vmem:[#allocation2 + $0x50] sm:$0xff]  ;;  %3541 = vst.msk [vmem:[#allocation2 + $0x78] sm:$0xff] %vm942_vm6, %v3439_v19 }
 0x31c   : > { %4044 = vst.msk [vmem:[#allocation2 + $0x68] sm:$0xff] %vm724_vm4, %v3941_v16  ;;  %4702 = vmatprep.mubr.f32.mxu1 %v4374_v43  ;;  %4176 = vrot.lane.b32.xlu1 %v4090_v47, %s5709_s29 }
 0x31d   : > { %3958 = vrot.lane.b32.xlu0 %v3873_v48, %s5708_s28  ;;  %4703 = vmatmul.mubr.f32.gmra.mrb[42].mxu1 %v4373_v46 }
 0x31e   : > { %v3009_v20 = vpop.permute.xlu1 %3008 }
 0x31f   : > { %v4157_v36 = vpop.permute.xlu0 %4156  ;;  %3110 = vst.msk [vmem:[#allocation2 + $0x90] sm:$0xff] %vm506_vm2, %v3009_v20 }
 0x320   : > { %4260 = vst.msk [vmem:[#allocation2 + $0x68] sm:$0xff] %vm942_vm6, %v4157_v36  ;;  %3746 = vrot.lane.b32.xlu1 %v3873_v48, %s5707_s27  ;;  %v4095_v36 = vld [vmem:[#allocation3 + $0xbd] sm:$0xff] }
 0x321   : > { %3238 = vrot.lane.b32.xlu0 %v7695_v6, %s5708_s28  ;;  %v3877_v6 = vld [vmem:[#allocation3 + $0xac] sm:$0xff] }
 0x322   : > { %v3225_v24 = vpop.permute.xlu1 %3224  ;;  %v4379_v4 = vld [vmem:[#allocation2 + $0x78] sm:$0xff] }
 0x323   : > { %v3727_v58 = vpop.permute.xlu0 %3726  ;;  %3326 = vst.msk [vmem:[#allocation2 + $0x90] sm:$0xff] %vm724_vm4, %v3225_v24 }
 0x324   : > { %3829 = vst.msk [vmem:[#allocation2 + $0x80] sm:$0xff] %vm506_vm2, %v3727_v58  ;;  %3962 = vrot.lane.b32.xlu1 %v3875_v41, %s5708_s28 }
 0x325   : > { %3454 = vrot.lane.b32.xlu0 %v3369_v27, %s5709_s29 }
 0x326   : > { %v3441_v30 = vpop.permute.xlu1 %3440 }
 0x327   : > { %v3943_v35 = vpop.permute.xlu0 %3942  ;;  %v4377_v9 = vld [vmem:[#allocation2 + $0x68] sm:$0xff]  ;;  %3542 = vst.msk [vmem:[#allocation2 + $0x90] sm:$0xff] %vm942_vm6, %v3441_v30 }
 0x328   : > { %4045 = vst.msk [vmem:[#allocation2 + $0x80] sm:$0xff] %vm724_vm4, %v3943_v35  ;;  %4707 = vmatprep.mubr.f32.mxu1 %v4377_v9  ;;  %4178 = vrot.lane.b32.xlu1 %v4091_v55, %s5709_s29  ;;  %v3374_v35 = vld [vmem:[#allocation3 + $0xa2] sm:$0xff] }
 0x329   : > { %3024 = vrot.lane.b32.xlu0 %v2938_v2, %s5707_s27  ;;  %4708 = vmatmul.mubr.f32.gmra.mrb[44].mxu1 %v4376_v15  ;;  %v3880_v15 = vld [vmem:[#allocation3 + $0xc4] sm:$0xff] }
 0x32a   : > { %v3011_v44 = vpop.permute.xlu1 %3010 }
 0x32b   : > { %v4159_v23 = vpop.permute.xlu0 %4158  ;;  %3111 = vst.msk [vmem:[#allocation2 + $0xa8] sm:$0xff] %vm506_vm2, %v3011_v44 }
 0x32c   : > { %4261 = vst.msk [vmem:[#allocation2 + $0x80] sm:$0xff] %vm942_vm6, %v4159_v23  ;;  %3748 = vrot.lane.b32.xlu1 %v3874_v5, %s5707_s27 }
 0x32d   : > { %3240 = vrot.lane.b32.xlu0 %v7685_v18, %s5708_s28 }
 0x32e   : > { %v3227_v57 = vpop.permute.xlu1 %3226  ;;  %v4382_v34 = vld [vmem:[#allocation2 + $0x90] sm:$0xff] }
 0x32f   : > { %v3729_v37 = vpop.permute.xlu0 %3728  ;;  %3327 = vst.msk [vmem:[#allocation2 + $0xa8] sm:$0xff] %vm724_vm4, %v3227_v57 }
 0x330   : > { %3830 = vst.msk [vmem:[#allocation2 + $0x98] sm:$0xff] %vm506_vm2, %v3729_v37  ;;  %3964 = vrot.lane.b32.xlu1 %v3876_v3, %s5708_s28  ;;  %v2943_v37 = vld [vmem:[#allocation3 + $0x99] sm:$0xff] }
 0x331   : > { %3456 = vrot.lane.b32.xlu0 %v3370_v11, %s5709_s29 }
 0x332   : > { %v3443_v45 = vpop.permute.xlu1 %3442 }
 0x333   : > { %v3945_v7 = vpop.permute.xlu0 %3944  ;;  %v4380_v56 = vld [vmem:[#allocation2 + $0x80] sm:$0xff]  ;;  %3543 = vst.msk [vmem:[#allocation2 + $0xa8] sm:$0xff] %vm942_vm6, %v3443_v45 }
 0x334   : > { %4046 = vst.msk [vmem:[#allocation2 + $0x98] sm:$0xff] %vm724_vm4, %v3945_v7  ;;  %4712 = vmatprep.mubr.f32.mxu1 %v4380_v56  ;;  %4180 = vrot.lane.b32.xlu1 %v4092_v61, %s5709_s29  ;;  %v3881_v61 = vld [vmem:[#allocation3 + $0xcc] sm:$0xff] }
 0x335   : > { %3026 = vrot.lane.b32.xlu0 %v2939_v52, %s5707_s27  ;;  %4713 = vmatmul.mubr.f32.gmra.mrb[46].mxu1 %v4379_v4  ;;  %v3375_v52 = vld [vmem:[#allocation3 + $0xaa] sm:$0xff] }
 0x336   : > { %v3013_v25 = vpop.permute.xlu1 %3012 }
 0x337   : > { %v4161_v32 = vpop.permute.xlu0 %4160  ;;  %3112 = vst.msk [vmem:[#allocation2 + $0xc0] sm:$0xff] %vm506_vm2, %v3013_v25 }
 0x338   : > { %4262 = vst.msk [vmem:[#allocation2 + $0x98] sm:$0xff] %vm942_vm6, %v4161_v32  ;;  %3750 = vrot.lane.b32.xlu1 %v3875_v41, %s5707_s27  ;;  %v2554_v32 = vmax.f32 %v7690_v50, 0.0 }
 0x339   : > { %3242 = vrot.lane.b32.xlu0 %v3369_v27, %s5708_s28 }
 0x33a   : > { %v3229_v21 = vpop.permute.xlu1 %3228  ;;  %v4385_v12 = vld [vmem:[#allocation2 + $0xa8] sm:$0xff] }
 0x33b   : > { %v3731_v18 = vpop.permute.xlu0 %3730  ;;  %3328 = vst.msk [vmem:[#allocation2 + $0xc0] sm:$0xff] %vm724_vm4, %v3229_v21 }
 0x33c   : > { %3831 = vst.msk [vmem:[#allocation2 + $0xb0] sm:$0xff] %vm506_vm2, %v3731_v18  ;;  %3966 = vrot.lane.b32.xlu1 %v3877_v6, %s5708_s28  ;;  %v2944_v18 = vld [vmem:[#allocation3 + $0xa1] sm:$0xff] }
 0x33d   : > { %3458 = vrot.lane.b32.xlu0 %v3371_v22, %s5709_s29 }
 0x33e   : > { %v3445_v62 = vpop.permute.xlu1 %3444 }
 0x33f   : > { %v3947_v53 = vpop.permute.xlu0 %3946  ;;  %v4383_v10 = vld [vmem:[#allocation2 + $0x98] sm:$0xff]  ;;  %3544 = vst.msk [vmem:[#allocation2 + $0xc0] sm:$0xff] %vm942_vm6, %v3445_v62 }
 0x340   : > { %4047 = vst.msk [vmem:[#allocation2 + $0xb0] sm:$0xff] %vm724_vm4, %v3947_v53  ;;  %4717 = vmatprep.mubr.f32.mxu1 %v4383_v10  ;;  %4182 = vrot.lane.b32.xlu1 %v4093_v51, %s5709_s29  ;;  %v2553_v10 = vmax.f32 %v7673_v28, 0.0  ;;  %v3882_v28 = vld [vmem:[#allocation3 + $0xd4] sm:$0xff] }
 0x341   : > { %3028 = vrot.lane.b32.xlu0 %v2940_v8, %s5707_s27  ;;  %4718 = vmatmul.mubr.f32.gmra.mrb[48].mxu1 %v4382_v34 }
 0x342   : > { %v3015_v1 = vpop.permute.xlu1 %3014 }
 0x343   : > { %v4163_v33 = vpop.permute.xlu0 %4162  ;;  %3113 = vst.msk [vmem:[#allocation2 + $0xd8] sm:$0xff] %vm506_vm2, %v3015_v1 }
 0x344   : > { %4263 = vst.msk [vmem:[#allocation2 + $0xb0] sm:$0xff] %vm942_vm6, %v4163_v33  ;;  %3752 = vrot.lane.b32.xlu1 %v3876_v3, %s5707_s27  ;;  %v3376_v33 = vld [vmem:[#allocation3 + $0xb2] sm:$0xff] }
 0x345   : > { %3244 = vrot.lane.b32.xlu0 %v3370_v11, %s5708_s28  ;;  %v4096_v11 = vld [vmem:[#allocation3 + $0xc5] sm:$0xff] }
 0x346   : > { %v4388_v48 = vld [vmem:[#allocation2 + $0xc0] sm:$0xff] }
 0x347   : > { %v3733_v31 = vpop.permute.xlu0 %3732 }
 0x348   : > { %3832 = vst.msk [vmem:[#allocation2 + $0xc8] sm:$0xff] %vm506_vm2, %v3733_v31  ;;  %3968 = vrot.lane.b32.xlu1 %v3878_v14, %s5708_s28 }
 0x349   : > { %3460 = vrot.lane.b32.xlu0 %v3372_v0, %s5709_s29 }
 0x34b   : > { %v3949_v17 = vpop.permute.xlu0 %3948  ;;  %v4386_v29 = vld [vmem:[#allocation2 + $0xb0] sm:$0xff] }
 0x34c   : > { %4048 = vst.msk [vmem:[#allocation2 + $0xc8] sm:$0xff] %vm724_vm4, %v3949_v17  ;;  %4722 = vmatprep.mubr.f32.mxu1 %v4386_v29  ;;  %4184 = vrot.lane.b32.xlu1 %v4094_v49, %s5709_s29  ;;  %v2945_v17 = vld [vmem:[#allocation3 + $0xa9] sm:$0xff] }
 0x34d   : > { %3030 = vrot.lane.b32.xlu0 %v2941_v26, %s5707_s27  ;;  %4723 = vmatmul.mubr.f32.gmra.mrb[50].mxu1 %v4385_v12  ;;  %v4098_v26 = vld [vmem:[#allocation3 + $0xd5] sm:$0xff] }
 0x34f   : > { %v4165_v13 = vpop.permute.xlu0 %4164 }
 0x350   : > { %4264 = vst.msk [vmem:[#allocation2 + $0xc8] sm:$0xff] %vm942_vm6, %v4165_v13  ;;  %3754 = vrot.lane.b32.xlu1 %v3877_v6, %s5707_s27  ;;  %v4097_v6 = vld [vmem:[#allocation3 + $0xcd] sm:$0xff] }
 0x351   : > { %3246 = vrot.lane.b32.xlu0 %v3371_v22, %s5708_s28 }
 0x353   : > { %v3735_v54 = vpop.permute.xlu0 %3734  ;;  %v2751_v60 = vpop.permute.xlu1 %2750 }
 0x354   : > { %3833 = vst.msk [vmem:[#allocation2 + $0xe0] sm:$0xff] %vm506_vm2, %v3735_v54  ;;  %v2804_v5 = vmul.f32 %v2751_v60, %v2552_v42  ;;  %3970 = vrot.lane.b32.xlu1 %v3879_v63, %s5708_s28 }
 0x355   : > { %3462 = vrot.lane.b32.xlu0 %v3373_v39, %s5709_s29 }
 0x356   : > { %2844 = vst.msk [vmem:[#allocation3 + $0x10b] sm:$0xff] %vm288_vm0, %v2804_v5 }
 0x357   : > { %v3951_v16 = vpop.permute.xlu0 %3950  ;;  %v4389_v43 = vld [vmem:[#allocation2 + $0xc8] sm:$0xff]  ;;  %v7792_v19 = vpop.f32.mrb[72].mxu0 }
 0x358   : > { %4049 = vst.msk [vmem:[#allocation2 + $0xe0] sm:$0xff] %vm724_vm4, %v3951_v16  ;;  %4727 = vmatprep.mubr.f32.mxu1 %v4389_v43  ;;  %v4167_v46 = vpop.permute.xlu1 %4166  ;;  %v7794_v47 = vpop.f32.mrb[73].mxu0  ;;  %4186 = vrot.lane.b32.xlu1 %v4095_v36, %s5709_s29  ;;  %v3883_v36 = vld [vmem:[#allocation3 + $0xdc] sm:$0xff] }
 0x359   : > { %3032 = vrot.lane.b32.xlu0 %v2942_v40, %s5707_s27  ;;  %4728 = vmatmul.mubr.f32.gmra.mrb[52].mxu1 %v4388_v48  ;;  %4265 = vst.msk [vmem:[#allocation2 + $0xe0] sm:$0xff] %vm942_vm6, %v4167_v46  ;;  %v3377_v48 = vld [vmem:[#allocation3 + $0xba] sm:$0xff] }
 0x35b   : > { %v3231_v20 = vpop.permute.xlu0 %3230 }
 0x35c   : > { %3329 = vst.msk [vmem:[#allocation2 + $0xd8] sm:$0xff] %vm724_vm4, %v3231_v20  ;;  %v3737_v58 = vpop.permute.xlu1 %3736  ;;  %3756 = vrot.lane.b32.xlu1 %v3878_v14, %s5707_s27 }
 0x35d   : > { %3248 = vrot.lane.b32.xlu0 %v3372_v0, %s5708_s28  ;;  %3834 = vst.msk [vmem:[#allocation2 + $0xf8] sm:$0xff] %vm506_vm2, %v3737_v58  ;;  %v4320_v24 = vld [vmem:[#allocation3 + $0x106] sm:$0xff]  ;;  %v2946_v58 = vld [vmem:[#allocation3 + $0xb1] sm:$0xff] }
 0x35e   : > { %4356 = vst.msk [vmem:[#allocation2 + $0x2b0] sm:$0xff] %vm288_vm0, %v4320_v24  ;;  %v3603_v9 = vld [vmem:[#allocation3 + $0x10b] sm:$0xff] }
 0x35f   : > { %v3447_v27 = vpop.permute.xlu0 %3446  ;;  %v7805_v41 = vpop.f32.mrb[74].mxu0  ;;  %3639 = vst.msk [vmem:[#allocation2 + $0x2f0] sm:$0xff] %vm288_vm0, %v3603_v9  ;;  %v2885_v23 = vld [vmem:[#allocation3 + $0x108] sm:$0xff] }
 0x360   : > { %3545 = vst.msk [vmem:[#allocation2 + $0xd8] sm:$0xff] %vm942_vm6, %v3447_v27  ;;  %v3953_v30 = vpop.permute.xlu1 %3952  ;;  %v7807_v2 = vpop.f32.mrb[75].mxu0  ;;  %v4392_v55 = vld [vmem:[#allocation2 + $0xe0] sm:$0xff]  ;;  %3972 = vrot.lane.b32.xlu1 %v3880_v15, %s5708_s28 }
 0x361   : > { %3464 = vrot.lane.b32.xlu0 %v3374_v35, %s5709_s29  ;;  %4050 = vst.msk [vmem:[#allocation2 + $0xf8] sm:$0xff] %vm724_vm4, %v3953_v30  ;;  %4732 = vmatprep.mubr.f32.mxu1 %v4392_v55  ;;  %v4099_v27 = vld [vmem:[#allocation3 + $0xdd] sm:$0xff]  ;;  %v2556_v30 = vmax.f32 %v7718_v38, 0.0 }
 0x362   : > { %2921 = vst.msk [vmem:[#allocation2 + $0x318] sm:$0xff] %vm288_vm0, %v2885_v23 }
 0x363   : > { %v3017_v44 = vpop.permute.xlu0 %3016 }
 0x364   : > { %3114 = vst.msk [vmem:[#allocation2 + $0xf0] sm:$0xff] %vm506_vm2, %v3017_v44  ;;  %v3233_v57 = vpop.permute.xlu1 %3232  ;;  %4188 = vrot.lane.b32.xlu1 %v4096_v11, %s5709_s29 }
 0x365   : > { %3034 = vrot.lane.b32.xlu0 %v2943_v37, %s5707_s27  ;;  %3330 = vst.msk [vmem:[#allocation2 + $0xf0] sm:$0xff] %vm724_vm4, %v3233_v57  ;;  %v2555_v37 = vmax.f32 %v7708_v59, 0.0  ;;  %v3378_v57 = vld [vmem:[#allocation3 + $0xc2] sm:$0xff] }
 0x367   : > { %v4391_v3 = vld [vmem:[#allocation2 + $0xd8] sm:$0xff]  ;;  %v7818_v7 = vpop.f32.mrb[76].mxu0 }
 0x368   : > { %4733 = vmatmul.mubr.f32.gmra.mrb[54].mxu1 %v4391_v3  ;;  %v3449_v56 = vpop.permute.xlu1 %3448  ;;  %v7820_v45 = vpop.f32.mrb[77].mxu0  ;;  %3758 = vrot.lane.b32.xlu1 %v3879_v63, %s5707_s27 }
 0x369   : > { %3250 = vrot.lane.b32.xlu0 %v3373_v39, %s5708_s28  ;;  %3546 = vst.msk [vmem:[#allocation2 + $0xf0] sm:$0xff] %vm942_vm6, %v3449_v56 }
 0x36c   : > { %v3019_v4 = vpop.permute.xlu1 %3018  ;;  %3974 = vrot.lane.b32.xlu1 %v3881_v61, %s5708_s28 }
 0x36d   : > { %3466 = vrot.lane.b32.xlu0 %v3375_v52, %s5709_s29  ;;  %3115 = vst.msk [vmem:[#allocation2 + $0x108] sm:$0xff] %vm506_vm2, %v3019_v4 }
 0x36f   : > { %v7829_v25 = vpop.f32.mrb[78].mxu0 }
 0x370   : > { %v2761_v21 = vpop.permute.xlu1 %2760  ;;  %v7831_v22 = vpop.f32.mrb[79].mxu0  ;;  %4190 = vrot.lane.b32.xlu1 %v4097_v6, %s5709_s29  ;;  %v4394_v63 = vld [vmem:[#allocation2 + $0xf0] sm:$0xff] }
 0x371   : > { %3036 = vrot.lane.b32.xlu0 %v2944_v18, %s5707_s27  ;;  %v2806_v53 = vmul.f32 %v2761_v21, %v2554_v32  ;;  %v4100_v32 = vld [vmem:[#allocation3 + $0xe5] sm:$0xff] }
 0x373   : > { %2846 = vst.msk [vmem:[#allocation3 + $0x11b] sm:$0xff] %vm288_vm0, %v2806_v53 }
 0x374   : > { %v2756_v62 = vpop.permute.xlu0 %2755  ;;  %v4171_v34 = vpop.permute.xlu1 %4170  ;;  %3760 = vrot.lane.b32.xlu1 %v3880_v15, %s5707_s27 }
 0x375   : > { %v2805_v8 = vmul.f32 %v2756_v62, %v2553_v10  ;;  %3252 = vrot.lane.b32.xlu0 %v3374_v35, %s5708_s28 }
 0x377   : > { %2845 = vst.msk [vmem:[#allocation3 + $0x113] sm:$0xff] %vm288_vm0, %v2805_v8  ;;  %v7840_v50 = vpop.f32.mrb[80].mxu0 }
 0x378   : > { %v4169_v51 = vpop.permute.xlu0 %4168  ;;  %v3741_v1 = vpop.permute.xlu1 %3740  ;;  %3976 = vrot.lane.b32.xlu1 %v3882_v28, %s5708_s28 }
 0x379   : > { %4266 = vst.msk [vmem:[#allocation2 + $0xf8] sm:$0xff] %vm942_vm6, %v4169_v51  ;;  %v7843_v31 = vpop.f32.mrb[81].mxu0  ;;  %3468 = vrot.lane.b32.xlu0 %v3376_v33, %s5709_s29 }
 0x37a   : > { %3836 = vst.msk [vmem:[#allocation2 + $0x128] sm:$0xff] %vm506_vm2, %v3741_v1  ;;  %v3605_v0 = vld [vmem:[#allocation3 + $0x11b] sm:$0xff] }
 0x37b   : > { %3641 = vst.msk [vmem:[#allocation2 + $0x320] sm:$0xff] %vm288_vm0, %v3605_v0  ;;  %v3885_v0 = vld [vmem:[#allocation3 + $0xec] sm:$0xff] }
 0x37c   : > { %v3739_v14 = vpop.permute.xlu0 %3738  ;;  %v3957_v29 = vpop.permute.xlu1 %3956  ;;  %4192 = vrot.lane.b32.xlu1 %v4098_v26, %s5709_s29  ;;  %v2948_v26 = vld [vmem:[#allocation3 + $0xc1] sm:$0xff] }
 0x37d   : > { %3835 = vst.msk [vmem:[#allocation2 + $0x110] sm:$0xff] %vm506_vm2, %v3739_v14  ;;  %3038 = vrot.lane.b32.xlu0 %v2945_v17, %s5707_s27 }
 0x37e   : > { %v4321_v12 = vld [vmem:[#allocation3 + $0x10e] sm:$0xff]  ;;  %v4322_v49 = vld [vmem:[#allocation3 + $0x116] sm:$0xff]  ;;  %4052 = vst.msk [vmem:[#allocation2 + $0x128] sm:$0xff] %vm724_vm4, %v3957_v29 }
 0x37f   : > { %4357 = vst.msk [vmem:[#allocation2 + $0x2c8] sm:$0xff] %vm288_vm0, %v4321_v12  ;;  %4358 = vst.msk [vmem:[#allocation2 + $0x2e0] sm:$0xff] %vm288_vm0, %v4322_v49  ;;  %v7855_v13 = vpop.f32.mrb[82].mxu0  ;;  %v3604_v5 = vld [vmem:[#allocation3 + $0x113] sm:$0xff] }
 0x380   : > { %v3955_v54 = vpop.permute.xlu0 %3954  ;;  %v4395_v42 = vld [vmem:[#allocation2 + $0xf8] sm:$0xff]  ;;  %v3237_v39 = vpop.permute.xlu1 %3236  ;;  %3762 = vrot.lane.b32.xlu1 %v3881_v61, %s5707_s27  ;;  %v2886_v16 = vld [vmem:[#allocation3 + $0x110] sm:$0xff]  ;;  %3640 = vst.msk [vmem:[#allocation2 + $0x308] sm:$0xff] %vm288_vm0, %v3604_v5 }
 0x381   : > { %4051 = vst.msk [vmem:[#allocation2 + $0x110] sm:$0xff] %vm724_vm4, %v3955_v54  ;;  %v7858_v60 = vpop.f32.mrb[83].mxu0  ;;  %3254 = vrot.lane.b32.xlu0 %v3375_v52, %s5708_s28  ;;  %4737 = vmatprep.mubr.f32.mxu1 %v4395_v42  ;;  %v2887_v43 = vld [vmem:[#allocation3 + $0x118] sm:$0x3f]  ;;  %v3884_v52 = vld [vmem:[#allocation3 + $0xe4] sm:$0xff]  ;;  %v4101_v49 = vld [vmem:[#allocation3 + $0xed] sm:$0xff] }
 0x382   : > { %4267 = vst.msk [vmem:[#allocation2 + $0x110] sm:$0xff] %vm942_vm6, %v4171_v34  ;;  %4738 = vmatmul.mubr.f32.gmra.mrb[56].mxu1 %v4394_v63  ;;  %v2947_v61 = vld [vmem:[#allocation3 + $0xb9] sm:$0xff] }
 0x383   : > { %2922 = vst.msk [vmem:[#allocation2 + $0x330] sm:$0xff] %vm288_vm0, %v2886_v16 }
 0x384   : > { %v3235_v40 = vpop.permute.xlu0 %3234  ;;  %2923 = vst.msk [vmem:[#allocation2 + $0x348] sm:$0x3f] %vm324_vm1, %v2887_v43  ;;  %v3453_v46 = vpop.permute.xlu1 %3452  ;;  %3978 = vrot.lane.b32.xlu1 %v3883_v36, %s5708_s28  ;;  %v3380_v43 = vld [vmem:[#allocation3 + $0xd2] sm:$0xff] }
 0x385   : > { %3331 = vst.msk [vmem:[#allocation2 + $0x108] sm:$0xff] %vm724_vm4, %v3235_v40  ;;  %3470 = vrot.lane.b32.xlu0 %v3377_v48, %s5709_s29 }
 0x388   : > { %v3451_v20 = vpop.permute.xlu0 %3450  ;;  %v3023_v24 = vpop.permute.xlu1 %3022  ;;  %4194 = vrot.lane.b32.xlu1 %v4099_v27, %s5709_s29 }
 0x389   : > { %3547 = vst.msk [vmem:[#allocation2 + $0x108] sm:$0xff] %vm942_vm6, %v3451_v20  ;;  %3040 = vrot.lane.b32.xlu0 %v2946_v58, %s5707_s27  ;;  %v4398_v35 = vld [vmem:[#allocation2 + $0x110] sm:$0xff] }
 0x38a   : > { %3117 = vst.msk [vmem:[#allocation2 + $0x138] sm:$0xff] %vm506_vm2, %v3023_v24  ;;  %4742 = vmatprep.mubr.f32.mxu1 %v4398_v35  ;;  %v7873_v9 = vpop.f32.mrb[84].mxu0  ;;  %v4102_v24 = vld [vmem:[#allocation3 + $0xf5] sm:$0xff] }
 0x38b   : > { %v7876_v15 = vpop.f32.mrb[85].mxu0 }
 0x38c   : > { %v3021_v55 = vpop.permute.xlu0 %3020  ;;  %v2771_v23 = vpop.permute.xlu1 %2770  ;;  %3764 = vrot.lane.b32.xlu1 %v3882_v28, %s5707_s27 }
 0x38d   : > { %3116 = vst.msk [vmem:[#allocation2 + $0x120] sm:$0xff] %vm506_vm2, %v3021_v55  ;;  %3256 = vrot.lane.b32.xlu0 %v3376_v33, %s5708_s28  ;;  %v2808_v44 = vmul.f32 %v2771_v23, %v2556_v30  ;;  %v3379_v33 = vld [vmem:[#allocation3 + $0xca] sm:$0xff] }
 0x38e   : > { %3332 = vst.msk [vmem:[#allocation2 + $0x120] sm:$0xff] %vm724_vm4, %v3237_v39 }
 0x38f   : > { %3548 = vst.msk [vmem:[#allocation2 + $0x120] sm:$0xff] %vm942_vm6, %v3453_v46 }
 0x390   : > { %2848 = vst.msk [vmem:[#allocation3 + $0x12b] sm:$0x3f] %vm324_vm1, %v2808_v44  ;;  %v2766_v38 = vpop.permute.xlu0 %2765  ;;  %v4397_v11 = vld [vmem:[#allocation2 + $0x108] sm:$0xff]  ;;  %v4175_v56 = vpop.permute.xlu1 %4174  ;;  %3980 = vrot.lane.b32.xlu1 %v3884_v52, %s5708_s28 }
 0x391   : > { %v2807_v3 = vmul.f32 %v2766_v38, %v2555_v37  ;;  %3472 = vrot.lane.b32.xlu0 %v3378_v57, %s5709_s29  ;;  %4743 = vmatmul.mubr.f32.gmra.mrb[58].mxu1 %v4397_v11  ;;  %v3381_v37 = vld [vmem:[#allocation3 + $0xda] sm:$0xff] }
 0x393   : > { %2847 = vst.msk [vmem:[#allocation3 + $0x123] sm:$0xff] %vm288_vm0, %v2807_v3  ;;  %v2950_v3 = vld [vmem:[#allocation3 + $0xd1] sm:$0xff] }
 0x394   : > { %v4173_v4 = vpop.permute.xlu0 %4172  ;;  %v3745_v59 = vpop.permute.xlu1 %3744  ;;  %4196 = vrot.lane.b32.xlu1 %v4100_v32, %s5709_s29 }
 0x395   : > { %4268 = vst.msk [vmem:[#allocation2 + $0x128] sm:$0xff] %vm942_vm6, %v4173_v4  ;;  %3042 = vrot.lane.b32.xlu0 %v2947_v61, %s5707_s27  ;;  %v4103_v4 = vld [vmem:[#allocation3 + $0xfd] sm:$0xff] }
 0x396   : > { %3838 = vst.msk [vmem:[#allocation2 + $0x158] sm:$0xff] %vm506_vm2, %v3745_v59  ;;  %v7892_v21 = vpop.f32.mrb[86].mxu0  ;;  %v4400_v14 = vld [vmem:[#allocation2 + $0x120] sm:$0xff] }
 0x397   : > { %v4325_v18 = vld [vmem:[#allocation3 + $0x12e] sm:$0xff]  ;;  %v7895_v6 = vpop.f32.mrb[87].mxu0 }
 0x398   : > { %4361 = vst.msk [vmem:[#allocation2 + $0x328] sm:$0xff] %vm288_vm0, %v4325_v18  ;;  %v3743_v53 = vpop.permute.xlu0 %3742  ;;  %v3607_v10 = vld [vmem:[#allocation3 + $0x12b] sm:$0x3f]  ;;  %v3961_v62 = vpop.permute.xlu1 %3960  ;;  %3766 = vrot.lane.b32.xlu1 %v3883_v36, %s5707_s27 }
 0x399   : > { %3837 = vst.msk [vmem:[#allocation2 + $0x140] sm:$0xff] %vm506_vm2, %v3743_v53  ;;  %3258 = vrot.lane.b32.xlu0 %v3377_v48, %s5708_s28  ;;  %v3886_v48 = vld [vmem:[#allocation3 + $0xf4] sm:$0xff]  ;;  %v2949_v36 = vld [vmem:[#allocation3 + $0xc9] sm:$0xff] }
 0x39a   : > { %3643 = vst.msk [vmem:[#allocation2 + $0x350] sm:$0x3f] %vm324_vm1, %v3607_v10  ;;  %v4323_v8 = vld [vmem:[#allocation3 + $0x11e] sm:$0xff]  ;;  %v4324_v34 = vld [vmem:[#allocation3 + $0x126] sm:$0xff] }
 0x39b   : > { %4054 = vst.msk [vmem:[#allocation2 + $0x158] sm:$0xff] %vm724_vm4, %v3961_v62  ;;  %v3606_v17 = vld [vmem:[#allocation3 + $0x123] sm:$0xff] }
 0x39c   : > { %4359 = vst.msk [vmem:[#allocation2 + $0x2f8] sm:$0xff] %vm288_vm0, %v4323_v8  ;;  %4360 = vst.msk [vmem:[#allocation2 + $0x310] sm:$0xff] %vm288_vm0, %v4324_v34  ;;  %v3959_v51 = vpop.permute.xlu0 %3958  ;;  %v4401_v1 = vld [vmem:[#allocation2 + $0x128] sm:$0xff]  ;;  %v4177_v28 = vpop.permute.xlu1 %4176  ;;  %3982 = vrot.lane.b32.xlu1 %v3885_v0, %s5708_s28 }
 0x39d   : > { %4053 = vst.msk [vmem:[#allocation2 + $0x140] sm:$0xff] %vm724_vm4, %v3959_v51  ;;  %3474 = vrot.lane.b32.xlu0 %v3379_v33, %s5709_s29  ;;  %4747 = vmatprep.mubr.f32.mxu1 %v4401_v1  ;;  %v3382_v62 = vld [vmem:[#allocation3 + $0xe2] sm:$0xff] }
 0x39e   : > { %4269 = vst.msk [vmem:[#allocation2 + $0x140] sm:$0xff] %vm942_vm6, %v4175_v56  ;;  %4270 = vst.msk [vmem:[#allocation2 + $0x158] sm:$0xff] %vm942_vm6, %v4177_v28  ;;  %4748 = vmatmul.mubr.f32.gmra.mrb[60].mxu1 %v4400_v14  ;;  %v3888_v34 = vld [vmem:[#allocation3 + $0x104] sm:$0xff] }
 0x39f   : > { %3642 = vst.msk [vmem:[#allocation2 + $0x338] sm:$0xff] %vm288_vm0, %v3606_v17 }
 0x3a0   : > { %v3239_v29 = vpop.permute.xlu0 %3238  ;;  %v3747_v12 = vpop.permute.xlu1 %3746  ;;  %4198 = vrot.lane.b32.xlu1 %v4101_v49, %s5709_s29 }
 0x3a1   : > { %3333 = vst.msk [vmem:[#allocation2 + $0x138] sm:$0xff] %vm724_vm4, %v3239_v29  ;;  %3044 = vrot.lane.b32.xlu0 %v2948_v26, %s5707_s27  ;;  %v7969_v26 = vld [vmem:[%s8333_s5] ss:$0 sm:$0xff] }
 0x3a2   : > { %3839 = vst.msk [vmem:[#allocation2 + $0x170] sm:$0xff] %vm506_vm2, %v3747_v12  ;;  %v7914_v54 = vpop.f32.mrb[88].mxu0 }
 0x3a3   : > { %v7916_v42 = vpop.f32.mrb[89].mxu0 }
 0x3a4   : > { %v3455_v39 = vpop.permute.xlu0 %3454  ;;  %v3963_v63 = vpop.permute.xlu1 %3962  ;;  %3768 = vrot.lane.b32.xlu1 %v3884_v52, %s5707_s27 }
 0x3a5   : > { %3549 = vst.msk [vmem:[#allocation2 + $0x138] sm:$0xff] %vm942_vm6, %v3455_v39  ;;  %3260 = vrot.lane.b32.xlu0 %v3378_v57, %s5708_s28  ;;  %v4404_v5 = vld [vmem:[#allocation2 + $0x140] sm:$0xff]  ;;  %v4407_v27 = vld [vmem:[#allocation2 + $0x158] sm:$0xff]  ;;  %v3383_v39 = vld [vmem:[#allocation3 + $0xea] sm:$0xff] }
 0x3a6   : > { %4055 = vst.msk [vmem:[#allocation2 + $0x170] sm:$0xff] %vm724_vm4, %v3963_v63  ;;  %4752 = vmatprep.mubr.f32.mxu1 %v4404_v5  ;;  %v3887_v57 = vld [vmem:[#allocation3 + $0xfc] sm:$0xff] }
 0x3a8   : > { %v3025_v16 = vpop.permute.xlu0 %3024  ;;  %v4179_v40 = vpop.permute.xlu1 %4178  ;;  %3984 = vrot.lane.b32.xlu1 %v3886_v48, %s5708_s28 }
 0x3a9   : > { %3118 = vst.msk [vmem:[#allocation2 + $0x150] sm:$0xff] %vm506_vm2, %v3025_v16  ;;  %3476 = vrot.lane.b32.xlu0 %v3380_v43, %s5709_s29 }
 0x3aa   : > { %4271 = vst.msk [vmem:[#allocation2 + $0x170] sm:$0xff] %vm942_vm6, %v4179_v40  ;;  %v5113_v40 = vld [vmem:[%s5762_s26 + $0x13] sm:$0xff] }
 0x3ac   : > { %v3241_v46 = vpop.permute.xlu0 %3240  ;;  %v4403_v20 = vld [vmem:[#allocation2 + $0x138] sm:$0xff]  ;;  %v3749_v58 = vpop.permute.xlu1 %3748  ;;  %4200 = vrot.lane.b32.xlu1 %v4102_v24, %s5709_s29 }
 0x3ad   : > { %3334 = vst.msk [vmem:[#allocation2 + $0x150] sm:$0xff] %vm724_vm4, %v3241_v46  ;;  %3046 = vrot.lane.b32.xlu0 %v2949_v36, %s5707_s27  ;;  %4753 = vmatmul.mubr.f32.gmra.mrb[62].mxu1 %v4403_v20  ;;  %v2952_v36 = vld [vmem:[#allocation3 + $0xe1] sm:$0xff] }
 0x3ae   : > { %3840 = vst.msk [vmem:[#allocation2 + $0x188] sm:$0xff] %vm506_vm2, %v3749_v58  ;;  %4757 = vmatprep.mubr.f32.mxu1 %v4407_v27  ;;  %v7930_v35 = vpop.f32.mrb[90].mxu0  ;;  %v4105_v27 = vld [vmem:[#allocation3 + $0x10d] sm:$0xff] }
 0x3af   : > { %v7932_v30 = vpop.f32.mrb[91].mxu0 }
 0x3b0   : > { %v3457_v55 = vpop.permute.xlu0 %3456  ;;  %v3965_v23 = vpop.permute.xlu1 %3964  ;;  %3770 = vrot.lane.b32.xlu1 %v3885_v0, %s5707_s27  ;;  %v4104_v0 = vld [vmem:[#allocation3 + $0x105] sm:$0xff] }
 0x3b1   : > { %3550 = vst.msk [vmem:[#allocation2 + $0x150] sm:$0xff] %vm942_vm6, %v3457_v55  ;;  %3262 = vrot.lane.b32.xlu0 %v3379_v33, %s5708_s28  ;;  %v4410_v61 = vld [vmem:[#allocation2 + $0x170] sm:$0xff]  ;;  %v2951_v33 = vld [vmem:[#allocation3 + $0xd9] sm:$0xff] }
 0x3b2   : > { %4056 = vst.msk [vmem:[#allocation2 + $0x188] sm:$0xff] %vm724_vm4, %v3965_v23 }
 0x3b4   : > { %v3027_v44 = vpop.permute.xlu0 %3026  ;;  %v4181_v38 = vpop.permute.xlu1 %4180  ;;  %3986 = vrot.lane.b32.xlu1 %v3887_v57, %s5708_s28 }
 0x3b5   : > { %3119 = vst.msk [vmem:[#allocation2 + $0x168] sm:$0xff] %vm506_vm2, %v3027_v44  ;;  %3478 = vrot.lane.b32.xlu0 %v3381_v37, %s5709_s29 }
 0x3b6   : > { %4272 = vst.msk [vmem:[#allocation2 + $0x188] sm:$0xff] %vm942_vm6, %v4181_v38  ;;  %v3384_v38 = vld [vmem:[#allocation3 + $0xf2] sm:$0xff] }
 0x3b8   : > { %v3243_v11 = vpop.permute.xlu0 %3242  ;;  %v4406_v56 = vld [vmem:[#allocation2 + $0x150] sm:$0xff]  ;;  %v3751_v52 = vpop.permute.xlu1 %3750  ;;  %4202 = vrot.lane.b32.xlu1 %v4103_v4, %s5709_s29 }
 0x3b9   : > { %3335 = vst.msk [vmem:[#allocation2 + $0x168] sm:$0xff] %vm724_vm4, %v3243_v11  ;;  %3048 = vrot.lane.b32.xlu0 %v2950_v3, %s5707_s27  ;;  %4758 = vmatmul.mubr.f32.gmra.mrb[64].mxu1 %v4406_v56  ;;  %v3890_v56 = vld [vmem:[#allocation3 + $0x114] sm:$0xff] }
 0x3ba   : > { %3841 = vst.msk [vmem:[#allocation2 + $0x1a0] sm:$0xff] %vm506_vm2, %v3751_v52  ;;  %4762 = vmatprep.mubr.f32.mxu1 %v4410_v61  ;;  %v7946_v59 = vpop.f32.mrb[92].mxu0  ;;  %v5114_v52 = vld [vmem:[%s5762_s26 + $0x1b] sm:$0xff] }
 0x3bb   : > { %v7948_v32 = vpop.f32.mrb[93].mxu0 }
 0x3bc   : > { %v3459_v18 = vpop.permute.xlu0 %3458  ;;  %v3967_v53 = vpop.permute.xlu1 %3966  ;;  %3772 = vrot.lane.b32.xlu1 %v3886_v48, %s5707_s27 }
 0x3bd   : > { %3551 = vst.msk [vmem:[#allocation2 + $0x168] sm:$0xff] %vm942_vm6, %v3459_v18  ;;  %3264 = vrot.lane.b32.xlu0 %v3380_v43, %s5708_s28  ;;  %v4413_v14 = vld [vmem:[#allocation2 + $0x188] sm:$0xff] }
 0x3be   : > { %4057 = vst.msk [vmem:[#allocation2 + $0x1a0] sm:$0xff] %vm724_vm4, %v3967_v53  ;;  %v3889_v43 = vld [vmem:[#allocation3 + $0x10c] sm:$0xff] }
 0x3bf   : > { %v2953_v18 = vld [vmem:[#allocation3 + $0xe9] sm:$0xff] }
 0x3c0   : > { %v3029_v10 = vpop.permute.xlu0 %3028  ;;  %v4183_v8 = vpop.permute.xlu1 %4182  ;;  %3988 = vrot.lane.b32.xlu1 %v3888_v34, %s5708_s28 }
 0x3c1   : > { %3120 = vst.msk [vmem:[#allocation2 + $0x180] sm:$0xff] %vm506_vm2, %v3029_v10  ;;  %3480 = vrot.lane.b32.xlu0 %v3382_v62, %s5709_s29 }
 0x3c2   : > { %4273 = vst.msk [vmem:[#allocation2 + $0x1a0] sm:$0xff] %vm942_vm6, %v4183_v8  ;;  %v4106_v8 = vld [vmem:[#allocation3 + $0x115] sm:$0xff] }
 0x3c4   : > { %v3245_v51 = vpop.permute.xlu0 %3244  ;;  %v4409_v1 = vld [vmem:[#allocation2 + $0x168] sm:$0xff]  ;;  %v3753_v28 = vpop.permute.xlu1 %3752  ;;  %4204 = vrot.lane.b32.xlu1 %v4104_v0, %s5709_s29 }
 0x3c5   : > { %3336 = vst.msk [vmem:[#allocation2 + $0x180] sm:$0xff] %vm724_vm4, %v3245_v51  ;;  %3050 = vrot.lane.b32.xlu0 %v2951_v33, %s5707_s27  ;;  %4763 = vmatmul.mubr.f32.gmra.mrb[66].mxu1 %v4409_v1 }
 0x3c6   : > { %3842 = vst.msk [vmem:[#allocation2 + $0x1b8] sm:$0xff] %vm506_vm2, %v3753_v28  ;;  %4767 = vmatprep.mubr.f32.mxu1 %v4413_v14  ;;  %v3385_v28 = vld [vmem:[#allocation3 + $0xfa] sm:$0xff] }
 0x3c8   : > { %v3461_v17 = vpop.permute.xlu0 %3460  ;;  %v3969_v29 = vpop.permute.xlu1 %3968  ;;  %3774 = vrot.lane.b32.xlu1 %v3887_v57, %s5707_s27 }
 0x3c9   : > { %3552 = vst.msk [vmem:[#allocation2 + $0x180] sm:$0xff] %vm942_vm6, %v3461_v17  ;;  %3266 = vrot.lane.b32.xlu0 %v3381_v37, %s5708_s28  ;;  %v4416_v55 = vld [vmem:[#allocation2 + $0x1a0] sm:$0xff] }
 0x3ca   : > { %4058 = vst.msk [vmem:[#allocation2 + $0x1b8] sm:$0xff] %vm724_vm4, %v3969_v29  ;;  %v3891_v17 = vld [vmem:[#allocation3 + $0x11c] sm:$0xff] }
 0x3cc   : > { %v3031_v12 = vpop.permute.xlu0 %3030  ;;  %v4689_v49 = vpop.f32.mrb[36].mxu1  ;;  %3990 = vrot.lane.b32.xlu1 %v3889_v43, %s5708_s28 }
 0x3cd   : > { %3121 = vst.msk [vmem:[#allocation2 + $0x198] sm:$0xff] %vm506_vm2, %v3031_v12  ;;  %v4690_v63 = vadd.f32 %v7969_v26, %v4689_v49  ;;  %v4185_v5 = vpop.permute.xlu1 %4184  ;;  %3482 = vrot.lane.b32.xlu0 %v3383_v39, %s5709_s29  ;;  %v4691_v16 = vpop.f32.mrb[37].mxu1  ;;  %v5115_v12 = vld [vmem:[%s5762_s26 + $0x23] sm:$0xff] }
 0x3ce   : > { %4274 = vst.msk [vmem:[#allocation2 + $0x1b8] sm:$0xff] %vm942_vm6, %v4185_v5 }
 0x3cf   : > { %v4935_v48 = vadd.f32 %v7794_v47, %v4690_v63  ;;  %v2954_v63 = vld [vmem:[#allocation3 + $0xf1] sm:$0xff] }
 0x3d0   : > { %v3247_v46 = vpop.permute.xlu0 %3246  ;;  %v4412_v20 = vld [vmem:[#allocation2 + $0x180] sm:$0xff]  ;;  %4206 = vrot.lane.b32.xlu1 %v4105_v27, %s5709_s29 }
 0x3d1   : > { %v5149_v58 = vadd.f32 %v5113_v40, %v4935_v48  ;;  %3337 = vst.msk [vmem:[#allocation2 + $0x198] sm:$0xff] %vm724_vm4, %v3247_v46  ;;  %v3755_v24 = vpop.permute.xlu1 %3754  ;;  %3052 = vrot.lane.b32.xlu0 %v2952_v36, %s5707_s27  ;;  %4768 = vmatmul.mubr.f32.gmra.mrb[68].mxu1 %v4412_v20  ;;  %v4107_v40 = vld [vmem:[#allocation3 + $0x11d] sm:$0xff] }
 0x3d2   : > { %3843 = vst.msk [vmem:[#allocation2 + $0x1d0] sm:$0xff] %vm506_vm2, %v3755_v24  ;;  %4772 = vmatprep.mubr.f32.mxu1 %v4416_v55  ;;  %v3892_v55 = vld [vmem:[#allocation3 + $0x124] sm:$0xff] }
 0x3d3   : > { %5185 = vst.msk [vmem:[%s7982_s14] sm:$0xff] %vm288_vm0, %v5149_v58  ;;  %v3386_v58 = vld [vmem:[#allocation3 + $0x102] sm:$0xff] }
 0x3d4   : > { %v3463_v47 = vpop.permute.xlu0 %3462  ;;  %3776 = vrot.lane.b32.xlu1 %v3888_v34, %s5707_s27 }
 0x3d5   : > { %3553 = vst.msk [vmem:[#allocation2 + $0x198] sm:$0xff] %vm942_vm6, %v3463_v47  ;;  %v3971_v23 = vpop.permute.xlu1 %3970  ;;  %3268 = vrot.lane.b32.xlu0 %v3382_v62, %s5708_s28  ;;  %v4419_v34 = vld [vmem:[#allocation2 + $0x1b8] sm:$0xff] }
 0x3d6   : > { %4059 = vst.msk [vmem:[#allocation2 + $0x1d0] sm:$0xff] %vm724_vm4, %v3971_v23  ;;  %v5116_v23 = vld [vmem:[%s5762_s26 + $0x2b] sm:$0xff] }
 0x3d8   : > { %v3033_v44 = vpop.permute.xlu0 %3032  ;;  %v4694_v37 = vpop.f32.mrb[38].mxu1  ;;  %3992 = vrot.lane.b32.xlu1 %v3890_v56, %s5708_s28 }
 0x3d9   : > { %3122 = vst.msk [vmem:[#allocation2 + $0x1b0] sm:$0xff] %vm506_vm2, %v3033_v44  ;;  %v4695_v57 = vadd.f32 %v7969_v26, %v4694_v37  ;;  %v4187_v11 = vpop.permute.xlu1 %4186  ;;  %3484 = vrot.lane.b32.xlu0 %v3384_v38, %s5709_s29  ;;  %v4696_v3 = vpop.f32.mrb[39].mxu1 }
 0x3da   : > { %4275 = vst.msk [vmem:[#allocation2 + $0x1d0] sm:$0xff] %vm942_vm6, %v4187_v11 }
 0x3db   : > { %v4940_v4 = vadd.f32 %v7792_v19, %v4695_v57 }
 0x3dc   : > { %v3249_v61 = vpop.permute.xlu0 %3248  ;;  %v4415_v53 = vld [vmem:[#allocation2 + $0x198] sm:$0xff]  ;;  %4208 = vrot.lane.b32.xlu1 %v4106_v8, %s5709_s29  ;;  %v3893_v8 = vld [vmem:[#allocation3 + $0x12c] sm:$0xff] }
 0x3dd   : > { %v5150_v10 = vadd.f32 %v5114_v52, %v4940_v4  ;;  %3338 = vst.msk [vmem:[#allocation2 + $0x1b0] sm:$0xff] %vm724_vm4, %v3249_v61  ;;  %v3757_v62 = vpop.permute.xlu1 %3756  ;;  %3054 = vrot.lane.b32.xlu0 %v2953_v18, %s5707_s27  ;;  %4773 = vmatmul.mubr.f32.gmra.mrb[70].mxu1 %v4415_v53  ;;  %v3387_v53 = vld [vmem:[#allocation3 + $0x10a] sm:$0xff] }
 0x3de   : > { %3844 = vst.msk [vmem:[#allocation2 + $0x1e8] sm:$0xff] %vm506_vm2, %v3757_v62  ;;  %4777 = vmatprep.mubr.f32.mxu1 %v4419_v34 }
 0x3df   : > { %5186 = vst.msk [vmem:[%s7982_s14 + $0x8] sm:$0xff] %vm288_vm0, %v5150_v10 }
 0x3e0   : > { %v3465_v19 = vpop.permute.xlu0 %3464  ;;  %3778 = vrot.lane.b32.xlu1 %v3889_v43, %s5707_s27 }
 0x3e1   : > { %3554 = vst.msk [vmem:[#allocation2 + $0x1b0] sm:$0xff] %vm942_vm6, %v3465_v19  ;;  %v3973_v51 = vpop.permute.xlu1 %3972  ;;  %3270 = vrot.lane.b32.xlu0 %v3383_v39, %s5708_s28  ;;  %v4422_v48 = vld [vmem:[#allocation2 + $0x1d0] sm:$0xff] }
 0x3e2   : > { %4060 = vst.msk [vmem:[#allocation2 + $0x1e8] sm:$0xff] %vm724_vm4, %v3973_v51  ;;  %v5117_v19 = vld [vmem:[%s5762_s26 + $0x33] sm:$0xff] }
 0x3e4   : > { %v3035_v33 = vpop.permute.xlu0 %3034  ;;  %v4699_v1 = vpop.f32.mrb[40].mxu1  ;;  %3994 = vrot.lane.b32.xlu1 %v3891_v17, %s5708_s28 }
 0x3e5   : > { %3123 = vst.msk [vmem:[#allocation2 + $0x1c8] sm:$0xff] %vm506_vm2, %v3035_v33  ;;  %v4189_v0 = vpop.permute.xlu1 %4188  ;;  %v4700_v14 = vadd.f32 %v7969_v26, %v4699_v1  ;;  %3486 = vrot.lane.b32.xlu0 %v3385_v28, %s5709_s29  ;;  %v4701_v29 = vpop.f32.mrb[41].mxu1  ;;  %v2956_v1 = vld [vmem:[#allocation3 + $0x101] sm:$0xff] }
 0x3e6   : > { %4276 = vst.msk [vmem:[#allocation2 + $0x1e8] sm:$0xff] %vm942_vm6, %v4189_v0 }
 0x3e7   : > { %v4945_v49 = vadd.f32 %v7807_v2, %v4700_v14 }
 0x3e8   : > { %v3251_v39 = vpop.permute.xlu0 %3250  ;;  %v4418_v5 = vld [vmem:[#allocation2 + $0x1b0] sm:$0xff]  ;;  %4210 = vrot.lane.b32.xlu1 %v4107_v40, %s5709_s29 }
 0x3e9   : > { %v5151_v16 = vadd.f32 %v5115_v12, %v4945_v49  ;;  %3339 = vst.msk [vmem:[#allocation2 + $0x1c8] sm:$0xff] %vm724_vm4, %v3251_v39  ;;  %v3759_v43 = vpop.permute.xlu1 %3758  ;;  %3056 = vrot.lane.b32.xlu0 %v2954_v63, %s5707_s27  ;;  %4778 = vmatmul.mubr.f32.gmra.mrb[72].mxu1 %v4418_v5  ;;  %v3894_v49 = vld [vmem:[#allocation3 + $0x134] sm:$0xff] }
 0x3ea   : > { %3845 = vst.msk [vmem:[#allocation2 + $0x200] sm:$0xff] %vm506_vm2, %v3759_v43  ;;  %4782 = vmatprep.mubr.f32.mxu1 %v4422_v48  ;;  %v3388_v5 = vld [vmem:[#allocation3 + $0x112] sm:$0xff]  ;;  %v5118_v48 = vld [vmem:[%s5762_s26 + $0x3b] sm:$0xff] }
 0x3eb   : > { %5187 = vst.msk [vmem:[%s7982_s14 + $0x10] sm:$0xff] %vm288_vm0, %v5151_v16 }
 0x3ec   : > { %v3467_v2 = vpop.permute.xlu0 %3466  ;;  %3780 = vrot.lane.b32.xlu1 %v3890_v56, %s5707_s27  ;;  %v4108_v56 = vld [vmem:[#allocation3 + $0x125] sm:$0xff] }
 0x3ed   : > { %3555 = vst.msk [vmem:[#allocation2 + $0x1c8] sm:$0xff] %vm942_vm6, %v3467_v2  ;;  %v3975_v46 = vpop.permute.xlu1 %3974  ;;  %3272 = vrot.lane.b32.xlu0 %v3384_v38, %s5708_s28  ;;  %v2955_v38 = vld [vmem:[#allocation3 + $0xf9] sm:$0xff]  ;;  %v4425_v52 = vld [vmem:[#allocation2 + $0x1e8] sm:$0xff] }
 0x3ee   : > { %4061 = vst.msk [vmem:[#allocation2 + $0x200] sm:$0xff] %vm724_vm4, %v3975_v46  ;;  %v4110_v46 = vld [vmem:[#allocation3 + $0x135] sm:$0xff] }
 0x3f0   : > { %v3037_v36 = vpop.permute.xlu0 %3036  ;;  %v4704_v20 = vpop.f32.mrb[42].mxu1  ;;  %3996 = vrot.lane.b32.xlu1 %v3892_v55, %s5708_s28 }
 0x3f1   : > { %3124 = vst.msk [vmem:[#allocation2 + $0x1e0] sm:$0xff] %vm506_vm2, %v3037_v36  ;;  %v4191_v24 = vpop.permute.xlu1 %4190  ;;  %v4705_v27 = vadd.f32 %v7969_v26, %v4704_v20  ;;  %3488 = vrot.lane.b32.xlu0 %v3386_v58, %s5709_s29  ;;  %v4706_v47 = vpop.f32.mrb[43].mxu1  ;;  %v2957_v20 = vld [vmem:[#allocation3 + $0x109] sm:$0xff] }
 0x3f2   : > { %4277 = vst.msk [vmem:[#allocation2 + $0x200] sm:$0xff] %vm942_vm6, %v4191_v24 }
 0x3f3   : > { %v4950_v44 = vadd.f32 %v7805_v41, %v4705_v27 }
 0x3f4   : > { %v3253_v37 = vpop.permute.xlu0 %3252  ;;  %v4421_v57 = vld [vmem:[#allocation2 + $0x1c8] sm:$0xff]  ;;  %4212 = vrot.lane.b32.xlu1 %v4108_v56, %s5709_s29 }
 0x3f5   : > { %v5152_v11 = vadd.f32 %v5116_v23, %v4950_v44  ;;  %3340 = vst.msk [vmem:[#allocation2 + $0x1e0] sm:$0xff] %vm724_vm4, %v3253_v37  ;;  %v3761_v3 = vpop.permute.xlu1 %3760  ;;  %3058 = vrot.lane.b32.xlu0 %v2955_v38, %s5707_s27  ;;  %4783 = vmatmul.mubr.f32.gmra.mrb[74].mxu1 %v4421_v57  ;;  %v3679_v23 = vld [vmem:[#allocation3 + $0x12c] sm:$0x3f]  ;;  %v3895_v44 = vld [vmem:[#allocation3 + $0x13c] sm:$0x3f] }
 0x3f6   : > { %3846 = vst.msk [vmem:[#allocation2 + $0x218] sm:$0xff] %vm506_vm2, %v3761_v3  ;;  %4787 = vmatprep.mubr.f32.mxu1 %v4425_v52  ;;  %v3389_v57 = vld [vmem:[#allocation3 + $0x11a] sm:$0xff]  ;;  %v5119_v52 = vld [vmem:[%s5762_s26 + $0x43] sm:$0xff] }
 0x3f7   : > { %5188 = vst.msk [vmem:[%s7982_s14 + $0x18] sm:$0xff] %vm288_vm0, %v5152_v11 }
 0x3f8   : > { %v3469_v41 = vpop.permute.xlu0 %3468  ;;  %3782 = vrot.lane.b32.xlu1 %v3891_v17, %s5707_s27  ;;  %v4109_v17 = vld [vmem:[#allocation3 + $0x12d] sm:$0xff] }
 0x3f9   : > { %3556 = vst.msk [vmem:[#allocation2 + $0x1e0] sm:$0xff] %vm942_vm6, %v3469_v41  ;;  %v3977_v4 = vpop.permute.xlu1 %3976  ;;  %3274 = vrot.lane.b32.xlu0 %v3385_v28, %s5708_s28  ;;  %v4428_v29 = vld [vmem:[#allocation2 + $0x200] sm:$0xff] }
 0x3fa   : > { %4062 = vst.msk [vmem:[#allocation2 + $0x218] sm:$0xff] %vm724_vm4, %v3977_v4  ;;  %v4111_v4 = vld [vmem:[#allocation3 + $0x13d] sm:$0x3f] }
 0x3fc   : > { %v3039_v61 = vpop.permute.xlu0 %3038  ;;  %v4709_v18 = vpop.f32.mrb[44].mxu1  ;;  %3998 = vrot.lane.b32.xlu1 %v3893_v8, %s5708_s28 }
 0x3fd   : > { %3125 = vst.msk [vmem:[#allocation2 + $0x1f8] sm:$0xff] %vm506_vm2, %v3039_v61  ;;  %v4193_v10 = vpop.permute.xlu1 %4192  ;;  %v4710_v62 = vadd.f32 %v7969_v26, %v4709_v18  ;;  %3490 = vrot.lane.b32.xlu0 %v3387_v53, %s5709_s29  ;;  %v4711_v34 = vpop.f32.mrb[45].mxu1  ;;  %v2958_v18 = vld [vmem:[#allocation3 + $0x111] sm:$0xff] }
 0x3fe   : > { %4278 = vst.msk [vmem:[#allocation2 + $0x218] sm:$0xff] %vm942_vm6, %v4193_v10 }
 0x3ff   : > { %v4955_v51 = vadd.f32 %v7820_v45, %v4710_v62 }
 0x400   : > { %v3255_v33 = vpop.permute.xlu0 %3254  ;;  %v4424_v28 = vld [vmem:[#allocation2 + $0x1e0] sm:$0xff]  ;;  %4214 = vrot.lane.b32.xlu1 %v4109_v17, %s5709_s29 }
 0x401   : > { %v5153_v0 = vadd.f32 %v5117_v19, %v4955_v51  ;;  %3341 = vst.msk [vmem:[#allocation2 + $0x1f8] sm:$0xff] %vm724_vm4, %v3255_v33  ;;  %v3763_v14 = vpop.permute.xlu1 %3762  ;;  %3060 = vrot.lane.b32.xlu0 %v2956_v1, %s5707_s27  ;;  %4788 = vmatmul.mubr.f32.gmra.mrb[76].mxu1 %v4424_v28  ;;  %v3390_v33 = vld [vmem:[#allocation3 + $0x122] sm:$0xff] }
 0x402   : > { %3847 = vst.msk [vmem:[#allocation2 + $0x230] sm:$0xff] %vm506_vm2, %v3763_v14  ;;  %4792 = vmatprep.mubr.f32.mxu1 %v4428_v29  ;;  %v5120_v14 = vld [vmem:[%s5762_s26 + $0x4b] sm:$0xff] }
 0x403   : > { %5189 = vst.msk [vmem:[%s7982_s14 + $0x20] sm:$0xff] %vm288_vm0, %v5153_v0 }
 0x404   : > { %v3471_v45 = vpop.permute.xlu0 %3470  ;;  %3784 = vrot.lane.b32.xlu1 %v3892_v55, %s5707_s27 }
 0x405   : > { %3557 = vst.msk [vmem:[#allocation2 + $0x1f8] sm:$0xff] %vm942_vm6, %v3471_v45  ;;  %v3979_v12 = vpop.permute.xlu1 %3978  ;;  %3276 = vrot.lane.b32.xlu0 %v3386_v58, %s5708_s28  ;;  %v4431_v55 = vld [vmem:[#allocation2 + $0x218] sm:$0xff] }
 0x406   : > { %4063 = vst.msk [vmem:[#allocation2 + $0x230] sm:$0xff] %vm724_vm4, %v3979_v12  ;;  %v2959_v45 = vld [vmem:[#allocation3 + $0x119] sm:$0x3f] }
 0x408   : > { %v3041_v39 = vpop.permute.xlu0 %3040  ;;  %v4714_v63 = vpop.f32.mrb[46].mxu1  ;;  %4000 = vrot.lane.b32.xlu1 %v3894_v49, %s5708_s28 }
 0x409   : > { %3126 = vst.msk [vmem:[#allocation2 + $0x210] sm:$0xff] %vm506_vm2, %v3041_v39  ;;  %v4195_v16 = vpop.permute.xlu1 %4194  ;;  %v4715_v43 = vadd.f32 %v7969_v26, %v4714_v63  ;;  %3492 = vrot.lane.b32.xlu0 %v3388_v5, %s5709_s29  ;;  %v4716_v40 = vpop.f32.mrb[47].mxu1 }
 0x40a   : > { %4279 = vst.msk [vmem:[#allocation2 + $0x230] sm:$0xff] %vm942_vm6, %v4195_v16  ;;  %v3175_v16 = vld [vmem:[#allocation3 + $0x11a] sm:$0x3f] }
 0x40b   : > { %v4960_v2 = vadd.f32 %v7818_v7, %v4715_v43 }
 0x40c   : > { %v3257_v36 = vpop.permute.xlu0 %3256  ;;  %v4427_v58 = vld [vmem:[#allocation2 + $0x1f8] sm:$0xff]  ;;  %4216 = vrot.lane.b32.xlu1 %v4110_v46, %s5709_s29 }
 0x40d   : > { %v5154_v24 = vadd.f32 %v5118_v48, %v4960_v2  ;;  %3342 = vst.msk [vmem:[#allocation2 + $0x210] sm:$0xff] %vm724_vm4, %v3257_v36  ;;  %v3765_v27 = vpop.permute.xlu1 %3764  ;;  %3062 = vrot.lane.b32.xlu0 %v2957_v20, %s5707_s27  ;;  %4793 = vmatmul.mubr.f32.gmra.mrb[78].mxu1 %v4427_v58  ;;  %v3391_v48 = vld [vmem:[#allocation3 + $0x12a] sm:$0x3f]  ;;  %v5121_v20 = vld [vmem:[%s5762_s26 + $0x53] sm:$0xff] }
 0x40e   : > { %3848 = vst.msk [vmem:[#allocation2 + $0x248] sm:$0xff] %vm506_vm2, %v3765_v27  ;;  %4797 = vmatprep.mubr.f32.mxu1 %v4431_v55 }
 0x40f   : > { %5190 = vst.msk [vmem:[%s7982_s14 + $0x28] sm:$0xff] %vm288_vm0, %v5154_v24 }
 0x410   : > { %v3473_v7 = vpop.permute.xlu0 %3472  ;;  %3786 = vrot.lane.b32.xlu1 %v3679_v23, %s5707_s27 }
 0x411   : > { %3558 = vst.msk [vmem:[#allocation2 + $0x210] sm:$0xff] %vm942_vm6, %v3473_v7  ;;  %v3981_v47 = vpop.permute.xlu1 %3980  ;;  %3278 = vrot.lane.b32.xlu0 %v3387_v53, %s5708_s28  ;;  %v4434_v8 = vld [vmem:[#allocation2 + $0x230] sm:$0xff] }
 0x412   : > { %4064 = vst.msk [vmem:[#allocation2 + $0x248] sm:$0xff] %vm724_vm4, %v3981_v47 }
 0x414   : > { %v3043_v37 = vpop.permute.xlu0 %3042  ;;  %v4719_v38 = vpop.f32.mrb[48].mxu1  ;;  %4002 = vrot.lane.b32.xlu1 %v3895_v44, %s5708_s28 }
 0x415   : > { %3127 = vst.msk [vmem:[#allocation2 + $0x228] sm:$0xff] %vm506_vm2, %v3043_v37  ;;  %v4197_v11 = vpop.permute.xlu1 %4196  ;;  %v4720_v3 = vadd.f32 %v7969_v26, %v4719_v38  ;;  %3494 = vrot.lane.b32.xlu0 %v3389_v57, %s5709_s29  ;;  %v4721_v56 = vpop.f32.mrb[49].mxu1 }
 0x416   : > { %4280 = vst.msk [vmem:[#allocation2 + $0x248] sm:$0xff] %vm942_vm6, %v4197_v11 }
 0x417   : > { %v4965_v41 = vadd.f32 %v7831_v22, %v4720_v3 }
 0x418   : > { %v3259_v61 = vpop.permute.xlu0 %3258  ;;  %v4430_v53 = vld [vmem:[#allocation2 + $0x210] sm:$0xff]  ;;  %4218 = vrot.lane.b32.xlu1 %v4111_v4, %s5709_s29 }
 0x419   : > { %v5155_v10 = vadd.f32 %v5119_v52, %v4965_v41  ;;  %3343 = vst.msk [vmem:[#allocation2 + $0x228] sm:$0xff] %vm724_vm4, %v3259_v61  ;;  %v3767_v62 = vpop.permute.xlu1 %3766  ;;  %3064 = vrot.lane.b32.xlu0 %v2958_v18, %s5707_s27  ;;  %4798 = vmatmul.mubr.f32.gmra.mrb[80].mxu1 %v4430_v53  ;;  %v5122_v52 = vld [vmem:[%s5762_s26 + $0x5b] sm:$0xff] }
 0x41a   : > { %3849 = vst.msk [vmem:[#allocation2 + $0x260] sm:$0xff] %vm506_vm2, %v3767_v62  ;;  %4802 = vmatprep.mubr.f32.mxu1 %v4434_v8 }
 0x41b   : > { %5191 = vst.msk [vmem:[%s7982_s14 + $0x30] sm:$0xff] %vm288_vm0, %v5155_v10 }
 0x41c   : > { %v3475_v22 = vpop.permute.xlu0 %3474 }
 0x41d   : > { %3559 = vst.msk [vmem:[#allocation2 + $0x228] sm:$0xff] %vm942_vm6, %v3475_v22  ;;  %v3983_v34 = vpop.permute.xlu1 %3982  ;;  %3280 = vrot.lane.b32.xlu0 %v3388_v5, %s5708_s28  ;;  %v4437_v63 = vld [vmem:[#allocation2 + $0x248] sm:$0xff] }
 0x41e   : > { %4065 = vst.msk [vmem:[#allocation2 + $0x260] sm:$0xff] %vm724_vm4, %v3983_v34 }
 0x420   : > { %v3045_v19 = vpop.permute.xlu0 %3044  ;;  %v4724_v51 = vpop.f32.mrb[50].mxu1 }
 0x421   : > { %3128 = vst.msk [vmem:[#allocation2 + $0x240] sm:$0xff] %vm506_vm2, %v3045_v19  ;;  %v4199_v1 = vpop.permute.xlu1 %4198  ;;  %v4725_v28 = vadd.f32 %v7969_v26, %v4724_v51  ;;  %3496 = vrot.lane.b32.xlu0 %v3390_v33, %s5709_s29  ;;  %v4726_v0 = vpop.f32.mrb[51].mxu1 }
 0x422   : > { %4281 = vst.msk [vmem:[#allocation2 + $0x260] sm:$0xff] %vm942_vm6, %v4199_v1 }
 0x423   : > { %v4970_v17 = vadd.f32 %v7829_v25, %v4725_v28 }
 0x424   : > { %v3261_v29 = vpop.permute.xlu0 %3260  ;;  %v4433_v12 = vld [vmem:[#allocation2 + $0x228] sm:$0xff] }
 0x425   : > { %v5156_v49 = vadd.f32 %v5120_v14, %v4970_v17  ;;  %3344 = vst.msk [vmem:[#allocation2 + $0x240] sm:$0xff] %vm724_vm4, %v3261_v29  ;;  %v3769_v39 = vpop.permute.xlu1 %3768  ;;  %3066 = vrot.lane.b32.xlu0 %v2959_v45, %s5707_s27  ;;  %4803 = vmatmul.mubr.f32.gmra.mrb[82].mxu1 %v4433_v12 }
 0x426   : > { %3850 = vst.msk [vmem:[#allocation2 + $0x278] sm:$0xff] %vm506_vm2, %v3769_v39  ;;  %4807 = vmatprep.mubr.f32.mxu1 %v4437_v63  ;;  %v5123_v39 = vld [vmem:[%s5762_s26 + $0x63] sm:$0xff] }
 0x427   : > { %5192 = vst.msk [vmem:[%s7982_s14 + $0x38] sm:$0xff] %vm288_vm0, %v5156_v49 }
 0x428   : > { %v3477_v5 = vpop.permute.xlu0 %3476 }
 0x429   : > { %3560 = vst.msk [vmem:[#allocation2 + $0x240] sm:$0xff] %vm942_vm6, %v3477_v5  ;;  %v3985_v25 = vpop.permute.xlu1 %3984  ;;  %3282 = vrot.lane.b32.xlu0 %v3175_v16, %s5708_s28  ;;  %v4440_v47 = vld [vmem:[#allocation2 + $0x260] sm:$0xff] }
 0x42a   : > { %4066 = vst.msk [vmem:[#allocation2 + $0x278] sm:$0xff] %vm724_vm4, %v3985_v25 }
 0x42c   : > { %v3047_v43 = vpop.permute.xlu0 %3046  ;;  %v4729_v40 = vpop.f32.mrb[52].mxu1 }
 0x42d   : > { %3129 = vst.msk [vmem:[#allocation2 + $0x258] sm:$0xff] %vm506_vm2, %v3047_v43  ;;  %v4201_v2 = vpop.permute.xlu1 %4200  ;;  %v4730_v46 = vadd.f32 %v7969_v26, %v4729_v40  ;;  %3498 = vrot.lane.b32.xlu0 %v3391_v48, %s5709_s29  ;;  %v4731_v36 = vpop.f32.mrb[53].mxu1 }
 0x42e   : > { %4282 = vst.msk [vmem:[#allocation2 + $0x278] sm:$0xff] %vm942_vm6, %v4201_v2 }
 0x42f   : > { %v4975_v58 = vadd.f32 %v7843_v31, %v4730_v46 }
 0x430   : > { %v3263_v24 = vpop.permute.xlu0 %3262  ;;  %v4436_v27 = vld [vmem:[#allocation2 + $0x240] sm:$0xff] }
 0x431   : > { %v5157_v55 = vadd.f32 %v5121_v20, %v4975_v58  ;;  %3345 = vst.msk [vmem:[#allocation2 + $0x258] sm:$0xff] %vm724_vm4, %v3263_v24  ;;  %v3771_v7 = vpop.permute.xlu1 %3770  ;;  %4808 = vmatmul.mubr.f32.gmra.mrb[84].mxu1 %v4436_v27 }
 0x432   : > { %3851 = vst.msk [vmem:[#allocation2 + $0x290] sm:$0xff] %vm506_vm2, %v3771_v7  ;;  %4812 = vmatprep.mubr.f32.mxu1 %v4440_v47 }
 0x433   : > { %5193 = vst.msk [vmem:[%s7982_s14 + $0x40] sm:$0xff] %vm288_vm0, %v5157_v55  ;;  %v5124_v55 = vld [vmem:[%s5762_s26 + $0x6b] sm:$0xff] }
 0x434   : > { %v3479_v23 = vpop.permute.xlu0 %3478 }
 0x435   : > { %3561 = vst.msk [vmem:[#allocation2 + $0x258] sm:$0xff] %vm942_vm6, %v3479_v23  ;;  %v3987_v44 = vpop.permute.xlu1 %3986  ;;  %v4443_v4 = vld [vmem:[#allocation2 + $0x278] sm:$0xff] }
 0x436   : > { %4067 = vst.msk [vmem:[#allocation2 + $0x290] sm:$0xff] %vm724_vm4, %v3987_v44 }
 0x438   : > { %v3049_v31 = vpop.permute.xlu0 %3048 }
 0x439   : > { %3130 = vst.msk [vmem:[#allocation2 + $0x270] sm:$0xff] %vm506_vm2, %v3049_v31  ;;  %v4203_v37 = vpop.permute.xlu1 %4202 }
 0x43a   : > { %4283 = vst.msk [vmem:[#allocation2 + $0x290] sm:$0xff] %vm942_vm6, %v4203_v37 }
 0x43b   : > { %v4734_v38 = vpop.f32.mrb[54].mxu1 }
 0x43c   : > { %v4735_v57 = vadd.f32 %v7969_v26, %v4734_v38  ;;  %v3265_v11 = vpop.permute.xlu0 %3264  ;;  %v4736_v3 = vpop.f32.mrb[55].mxu1  ;;  %v4439_v56 = vld [vmem:[#allocation2 + $0x258] sm:$0xff] }
 0x43d   : > { %3346 = vst.msk [vmem:[#allocation2 + $0x270] sm:$0xff] %vm724_vm4, %v3265_v11  ;;  %v3773_v41 = vpop.permute.xlu1 %3772  ;;  %4813 = vmatmul.mubr.f32.gmra.mrb[86].mxu1 %v4439_v56 }
 0x43e   : > { %v4980_v61 = vadd.f32 %v7840_v50, %v4735_v57  ;;  %3852 = vst.msk [vmem:[#allocation2 + $0x2a8] sm:$0xff] %vm506_vm2, %v3773_v41  ;;  %4817 = vmatprep.mubr.f32.mxu1 %v4443_v4  ;;  %v5125_v41 = vld [vmem:[%s5762_s26 + $0x73] sm:$0xff] }
 0x440   : > { %v5158_v18 = vadd.f32 %v5122_v52, %v4980_v61  ;;  %v3481_v53 = vpop.permute.xlu0 %3480 }
 0x441   : > { %3562 = vst.msk [vmem:[#allocation2 + $0x270] sm:$0xff] %vm942_vm6, %v3481_v53  ;;  %v3989_v10 = vpop.permute.xlu1 %3988  ;;  %v4446_v19 = vld [vmem:[#allocation2 + $0x290] sm:$0xff] }
 0x442   : > { %5194 = vst.msk [vmem:[%s7982_s14 + $0x48] sm:$0xff] %vm288_vm0, %v5158_v18 }
 0x443   : > { %4068 = vst.msk [vmem:[#allocation2 + $0x2a8] sm:$0xff] %vm724_vm4, %v3989_v10 }
 0x444   : > { %v3051_v62 = vpop.permute.xlu0 %3050 }
 0x445   : > { %3131 = vst.msk [vmem:[#allocation2 + $0x288] sm:$0xff] %vm506_vm2, %v3051_v62  ;;  %v4205_v8 = vpop.permute.xlu1 %4204 }
 0x446   : > { %4284 = vst.msk [vmem:[#allocation2 + $0x2a8] sm:$0xff] %vm942_vm6, %v4205_v8 }
 0x448   : > { %v3267_v22 = vpop.permute.xlu0 %3266  ;;  %v4442_v50 = vld [vmem:[#allocation2 + $0x270] sm:$0xff] }
 0x449   : > { %3347 = vst.msk [vmem:[#allocation2 + $0x288] sm:$0xff] %vm724_vm4, %v3267_v22  ;;  %v3775_v34 = vpop.permute.xlu1 %3774  ;;  %4818 = vmatmul.mubr.f32.gmra.mrb[88].mxu1 %v4442_v50 }
 0x44a   : > { %3853 = vst.msk [vmem:[#allocation2 + $0x2c0] sm:$0xff] %vm506_vm2, %v3775_v34  ;;  %4822 = vmatprep.mubr.f32.mxu1 %v4446_v19 }
 0x44c   : > { %v3483_v51 = vpop.permute.xlu0 %3482 }
 0x44d   : > { %3563 = vst.msk [vmem:[#allocation2 + $0x288] sm:$0xff] %vm942_vm6, %v3483_v51  ;;  %v3991_v33 = vpop.permute.xlu1 %3990  ;;  %v4449_v45 = vld [vmem:[#allocation2 + $0x2a8] sm:$0xff] }
 0x44e   : > { %4069 = vst.msk [vmem:[#allocation2 + $0x2c0] sm:$0xff] %vm724_vm4, %v3991_v33 }
 0x450   : > { %v3053_v1 = vpop.permute.xlu0 %3052 }
 0x451   : > { %3132 = vst.msk [vmem:[#allocation2 + $0x2a0] sm:$0xff] %vm506_vm2, %v3053_v1  ;;  %v4207_v28 = vpop.permute.xlu1 %4206 }
 0x452   : > { %4285 = vst.msk [vmem:[#allocation2 + $0x2c0] sm:$0xff] %vm942_vm6, %v4207_v28  ;;  %v5126_v28 = vld [vmem:[%s5762_s26 + $0x7b] sm:$0xff] }
 0x454   : > { %v3269_v0 = vpop.permute.xlu0 %3268  ;;  %v4445_v14 = vld [vmem:[#allocation2 + $0x288] sm:$0xff] }
 0x455   : > { %3348 = vst.msk [vmem:[#allocation2 + $0x2a0] sm:$0xff] %vm724_vm4, %v3269_v0  ;;  %v3777_v17 = vpop.permute.xlu1 %3776  ;;  %v4739_v29 = vpop.f32.mrb[56].mxu1  ;;  %4823 = vmatmul.mubr.f32.gmra.mrb[90].mxu1 %v4445_v14 }
 0x456   : > { %3854 = vst.msk [vmem:[#allocation2 + $0x2d8] sm:$0xff] %vm506_vm2, %v3777_v17  ;;  %v4740_v12 = vadd.f32 %v7969_v26, %v4739_v29  ;;  %v4741_v49 = vpop.f32.mrb[57].mxu1  ;;  %4827 = vmatprep.mubr.f32.mxu1 %v4449_v45 }
 0x458   : > { %v4985_v63 = vadd.f32 %v7858_v60, %v4740_v12  ;;  %v3485_v5 = vpop.permute.xlu0 %3484 }
 0x459   : > { %3564 = vst.msk [vmem:[#allocation2 + $0x2a0] sm:$0xff] %vm942_vm6, %v3485_v5  ;;  %v3993_v16 = vpop.permute.xlu1 %3992  ;;  %v4452_v46 = vld [vmem:[#allocation2 + $0x2c0] sm:$0xff] }
 0x45a   : > { %v5159_v25 = vadd.f32 %v5123_v39, %v4985_v63  ;;  %4070 = vst.msk [vmem:[#allocation2 + $0x2d8] sm:$0xff] %vm724_vm4, %v3993_v16 }
 0x45c   : > { %5195 = vst.msk [vmem:[%s7982_s14 + $0x50] sm:$0xff] %vm288_vm0, %v5159_v25  ;;  %v3055_v43 = vpop.permute.xlu0 %3054 }
 0x45d   : > { %3133 = vst.msk [vmem:[#allocation2 + $0x2b8] sm:$0xff] %vm506_vm2, %v3055_v43  ;;  %v4209_v40 = vpop.permute.xlu1 %4208  ;;  %v5127_v43 = vld [vmem:[%s5762_s26 + $0x83] sm:$0xff] }
 0x45e   : > { %4286 = vst.msk [vmem:[#allocation2 + $0x2d8] sm:$0xff] %vm942_vm6, %v4209_v40 }
 0x460   : > { %v3271_v48 = vpop.permute.xlu0 %3270  ;;  %v4448_v2 = vld [vmem:[#allocation2 + $0x2a0] sm:$0xff] }
 0x461   : > { %3349 = vst.msk [vmem:[#allocation2 + $0x2b8] sm:$0xff] %vm724_vm4, %v3271_v48  ;;  %v3779_v60 = vpop.permute.xlu1 %3778  ;;  %4828 = vmatmul.mubr.f32.gmra.mrb[92].mxu1 %v4448_v2 }
 0x462   : > { %3855 = vst.msk [vmem:[#allocation2 + $0x2f0] sm:$0xff] %vm506_vm2, %v3779_v60  ;;  %4832 = vmatprep.mubr.f32.mxu1 %v4452_v46 }
 0x464   : > { %v3487_v36 = vpop.permute.xlu0 %3486  ;;  %v4744_v20 = vpop.f32.mrb[58].mxu1 }
 0x465   : > { %3565 = vst.msk [vmem:[#allocation2 + $0x2b8] sm:$0xff] %vm942_vm6, %v3487_v36  ;;  %v3995_v58 = vpop.permute.xlu1 %3994  ;;  %v4745_v24 = vadd.f32 %v7969_v26, %v4744_v20  ;;  %v4746_v27 = vpop.f32.mrb[59].mxu1  ;;  %v4455_v57 = vld [vmem:[#allocation2 + $0x2d8] sm:$0xff] }
 0x466   : > { %4071 = vst.msk [vmem:[#allocation2 + $0x2f0] sm:$0xff] %vm724_vm4, %v3995_v58 }
 0x467   : > { %v4990_v7 = vadd.f32 %v7855_v13, %v4745_v24 }
 0x468   : > { %v3057_v47 = vpop.permute.xlu0 %3056 }
 0x469   : > { %v5160_v23 = vadd.f32 %v5124_v55, %v4990_v7  ;;  %3134 = vst.msk [vmem:[#allocation2 + $0x2d0] sm:$0xff] %vm506_vm2, %v3057_v47  ;;  %v4211_v44 = vpop.permute.xlu1 %4210  ;;  %v5128_v47 = vld [vmem:[%s5762_s26 + $0x8b] sm:$0xff] }
 0x46a   : > { %4287 = vst.msk [vmem:[#allocation2 + $0x2f0] sm:$0xff] %vm942_vm6, %v4211_v44 }
 0x46b   : > { %5196 = vst.msk [vmem:[%s7982_s14 + $0x58] sm:$0xff] %vm288_vm0, %v5160_v23 }
 0x46c   : > { %v3273_v31 = vpop.permute.xlu0 %3272  ;;  %v4451_v37 = vld [vmem:[#allocation2 + $0x2b8] sm:$0xff] }
 0x46d   : > { %3350 = vst.msk [vmem:[#allocation2 + $0x2d0] sm:$0xff] %vm724_vm4, %v3273_v31  ;;  %v3781_v38 = vpop.permute.xlu1 %3780  ;;  %4833 = vmatmul.mubr.f32.gmra.mrb[94].mxu1 %v4451_v37 }
 0x46e   : > { %3856 = vst.msk [vmem:[#allocation2 + $0x308] sm:$0xff] %vm506_vm2, %v3781_v38  ;;  %4837 = vmatprep.mubr.f32.mxu1 %v4455_v57 }
 0x470   : > { %v3489_v13 = vpop.permute.xlu0 %3488 }
 0x471   : > { %3566 = vst.msk [vmem:[#allocation2 + $0x2d0] sm:$0xff] %vm942_vm6, %v3489_v13  ;;  %v3997_v11 = vpop.permute.xlu1 %3996  ;;  %v4749_v3 = vpop.f32.mrb[60].mxu1  ;;  %v4458_v22 = vld [vmem:[#allocation2 + $0x2f0] sm:$0xff] }
 0x472   : > { %4072 = vst.msk [vmem:[#allocation2 + $0x308] sm:$0xff] %vm724_vm4, %v3997_v11  ;;  %v4750_v56 = vadd.f32 %v7969_v26, %v4749_v3  ;;  %v4751_v52 = vpop.f32.mrb[61].mxu1 }
 0x474   : > { %v4995_v4 = vadd.f32 %v7876_v15, %v4750_v56  ;;  %v3059_v61 = vpop.permute.xlu0 %3058  ;;  %v5129_v56 = vld [vmem:[%s5762_s26 + $0x93] sm:$0xff] }
 0x475   : > { %3135 = vst.msk [vmem:[#allocation2 + $0x2e8] sm:$0xff] %vm506_vm2, %v3059_v61  ;;  %v4213_v18 = vpop.permute.xlu1 %4212 }
 0x476   : > { %v5161_v53 = vadd.f32 %v5125_v41, %v4995_v4  ;;  %4288 = vst.msk [vmem:[#allocation2 + $0x308] sm:$0xff] %vm942_vm6, %v4213_v18 }
 0x478   : > { %5197 = vst.msk [vmem:[%s7982_s14 + $0x60] sm:$0xff] %vm288_vm0, %v5161_v53  ;;  %v3275_v10 = vpop.permute.xlu0 %3274  ;;  %v4454_v62 = vld [vmem:[#allocation2 + $0x2d0] sm:$0xff] }
 0x479   : > { %3351 = vst.msk [vmem:[#allocation2 + $0x2e8] sm:$0xff] %vm724_vm4, %v3275_v10  ;;  %v3783_v8 = vpop.permute.xlu1 %3782  ;;  %4838 = vmatmul.mubr.f32.gmra.mrb[96].mxu1 %v4454_v62 }
 0x47a   : > { %3857 = vst.msk [vmem:[#allocation2 + $0x320] sm:$0xff] %vm506_vm2, %v3783_v8  ;;  %4842 = vmatprep.mubr.f32.mxu1 %v4458_v22  ;;  %v5130_v22 = vld [vmem:[%s5762_s26 + $0x9b] sm:$0xff] }
 0x47c   : > { %v3491_v15 = vpop.permute.xlu0 %3490 }
 0x47d   : > { %3567 = vst.msk [vmem:[#allocation2 + $0x2e8] sm:$0xff] %vm942_vm6, %v3491_v15  ;;  %v3999_v50 = vpop.permute.xlu1 %3998  ;;  %v4461_v12 = vld [vmem:[#allocation2 + $0x308] sm:$0xff] }
 0x47e   : > { %4073 = vst.msk [vmem:[#allocation2 + $0x320] sm:$0xff] %vm724_vm4, %v3999_v50 }
 0x480   : > { %v3061_v34 = vpop.permute.xlu0 %3060  ;;  %v4754_v19 = vpop.f32.mrb[62].mxu1 }
 0x481   : > { %3136 = vst.msk [vmem:[#allocation2 + $0x300] sm:$0xff] %vm506_vm2, %v3061_v34  ;;  %v4215_v51 = vpop.permute.xlu1 %4214  ;;  %v4755_v33 = vadd.f32 %v7969_v26, %v4754_v19  ;;  %v4756_v1 = vpop.f32.mrb[63].mxu1  ;;  %v4432_v34 = vld [vmem:[#allocation2 + $0x220] sm:$0xff]  ;;  %v4435_v19 = vld [vmem:[#allocation2 + $0x238] sm:$0xff] }
 0x482   : > { %4289 = vst.msk [vmem:[#allocation2 + $0x320] sm:$0xff] %vm942_vm6, %v4215_v51  ;;  %v4438_v51 = vld [vmem:[#allocation2 + $0x250] sm:$0xff]  ;;  %v4441_v1 = vld [vmem:[#allocation2 + $0x268] sm:$0xff] }
 0x483   : > { %v5000_v0 = vadd.f32 %v7873_v9, %v4755_v33 }
 0x484   : > { %v3277_v14 = vpop.permute.xlu0 %3276  ;;  %v4457_v17 = vld [vmem:[#allocation2 + $0x2e8] sm:$0xff] }
 0x485   : > { %v5162_v29 = vadd.f32 %v5126_v28, %v5000_v0  ;;  %3352 = vst.msk [vmem:[#allocation2 + $0x300] sm:$0xff] %vm724_vm4, %v3277_v14  ;;  %v3785_v45 = vpop.permute.xlu1 %3784  ;;  %4843 = vmatmul.mubr.f32.gmra.mrb[98].mxu1 %v4457_v17  ;;  %v4444_v0 = vld [vmem:[#allocation2 + $0x280] sm:$0xff] }
 0x486   : > { %3858 = vst.msk [vmem:[#allocation2 + $0x338] sm:$0xff] %vm506_vm2, %v3785_v45  ;;  %4847 = vmatprep.mubr.f32.mxu1 %v4461_v12  ;;  %v5131_v14 = vld [vmem:[%s5762_s26 + $0xa3] sm:$0xff]  ;;  %v4450_v12 = vld [vmem:[#allocation2 + $0x2b0] sm:$0xff] }
 0x487   : > { %5198 = vst.msk [vmem:[%s7982_s14 + $0x68] sm:$0xff] %vm288_vm0, %v5162_v29  ;;  %v4447_v29 = vld [vmem:[#allocation2 + $0x298] sm:$0xff] }
 0x488   : > { %v3493_v49 = vpop.permute.xlu0 %3492 }
 0x489   : > { %3568 = vst.msk [vmem:[#allocation2 + $0x300] sm:$0xff] %vm942_vm6, %v3493_v49  ;;  %v4001_v39 = vpop.permute.xlu1 %4000  ;;  %v4464_v36 = vld [vmem:[#allocation2 + $0x320] sm:$0xff] }
 0x48a   : > { %4074 = vst.msk [vmem:[#allocation2 + $0x338] sm:$0xff] %vm724_vm4, %v4001_v39  ;;  %v4456_v49 = vld [vmem:[#allocation2 + $0x2e0] sm:$0xff] }
 0x48c   : > { %v3063_v9 = vpop.permute.xlu0 %3062  ;;  %v4759_v63 = vpop.f32.mrb[64].mxu1 }
 0x48d   : > { %3137 = vst.msk [vmem:[#allocation2 + $0x318] sm:$0xff] %vm506_vm2, %v3063_v9  ;;  %v4217_v5 = vpop.permute.xlu1 %4216  ;;  %v4760_v16 = vadd.f32 %v7969_v26, %v4759_v63  ;;  %v4761_v25 = vpop.f32.mrb[65].mxu1  ;;  %v4459_v9 = vld [vmem:[#allocation2 + $0x2f8] sm:$0xff] }
 0x48e   : > { %4290 = vst.msk [vmem:[#allocation2 + $0x338] sm:$0xff] %vm942_vm6, %v4217_v5  ;;  %v5132_v25 = vld [vmem:[%s5762_s26 + $0xab] sm:$0xff] }
 0x48f   : > { %v5005_v40 = vadd.f32 %v7895_v6, %v4760_v16  ;;  %v4462_v16 = vld [vmem:[#allocation2 + $0x310] sm:$0xff] }
 0x490   : > { %v3279_v48 = vpop.permute.xlu0 %3278  ;;  %v4460_v2 = vld [vmem:[#allocation2 + $0x300] sm:$0xff] }
 0x491   : > { %v5163_v60 = vadd.f32 %v5127_v43, %v5005_v40  ;;  %3353 = vst.msk [vmem:[#allocation2 + $0x318] sm:$0xff] %vm724_vm4, %v3279_v48  ;;  %v3787_v46 = vpop.permute.xlu1 %3786  ;;  %4848 = vmatmul.mubr.f32.gmra.mrb[100].mxu1 %v4460_v2  ;;  %v4468_v40 = vld [vmem:[#allocation2 + $0x340] sm:$0xff]  ;;  %v4465_v48 = vld [vmem:[#allocation2 + $0x328] sm:$0xff] }
 0x492   : > { %3859 = vst.msk [vmem:[#allocation2 + $0x350] sm:$0x3f] %vm542_vm3, %v3787_v46  ;;  %4852 = vmatprep.mubr.f32.mxu1 %v4464_v36 }
 0x493   : > { %5199 = vst.msk [vmem:[%s7982_s14 + $0x70] sm:$0xff] %vm288_vm0, %v5163_v60  ;;  %v4471_v60 = vld [vmem:[#allocation2 + $0x358] sm:$0x3f] }
 0x494   : > { %v3495_v20 = vpop.permute.xlu0 %3494 }
 0x495   : > { %3569 = vst.msk [vmem:[#allocation2 + $0x318] sm:$0xff] %vm942_vm6, %v3495_v20  ;;  %v4003_v58 = vpop.permute.xlu1 %4002  ;;  %v4467_v44 = vld [vmem:[#allocation2 + $0x338] sm:$0xff] }
 0x496   : > { %4075 = vst.msk [vmem:[#allocation2 + $0x350] sm:$0x3f] %vm760_vm5, %v4003_v58  ;;  %v5133_v58 = vld [vmem:[%s5762_s26 + $0xb3] sm:$0xff] }
 0x498   : > { %v3065_v6 = vpop.permute.xlu0 %3064  ;;  %v4764_v24 = vpop.f32.mrb[66].mxu1 }
 0x499   : > { %3138 = vst.msk [vmem:[#allocation2 + $0x330] sm:$0xff] %vm506_vm2, %v3065_v6  ;;  %v4765_v27 = vadd.f32 %v7969_v26, %v4764_v24  ;;  %v4766_v55 = vpop.f32.mrb[67].mxu1  ;;  %v4219_v7 = vpop.permute.xlu1 %4218 }
 0x49a   : > { %4291 = vst.msk [vmem:[#allocation2 + $0x350] sm:$0x3f] %vm978_vm7, %v4219_v7  ;;  %v5134_v7 = vld [vmem:[%s5762_s26 + $0xbb] sm:$0xff] }
 0x49b   : > { %v5010_v23 = vadd.f32 %v7892_v21, %v4765_v27 }
 0x49c   : > { %v3281_v31 = vpop.permute.xlu0 %3280  ;;  %v4463_v37 = vld [vmem:[#allocation2 + $0x318] sm:$0xff] }
 0x49d   : > { %v5164_v38 = vadd.f32 %v5128_v47, %v5010_v23  ;;  %3354 = vst.msk [vmem:[#allocation2 + $0x330] sm:$0xff] %vm724_vm4, %v3281_v31  ;;  %4853 = vmatmul.mubr.f32.gmra.mrb[102].mxu1 %v4463_v37 }
 0x49e   : > { %4857 = vmatprep.mubr.f32.mxu1 %v4467_v44 }
 0x49f   : > { %5200 = vst.msk [vmem:[%s7982_s14 + $0x78] sm:$0xff] %vm288_vm0, %v5164_v38 }
 0x4a0   : > { %v3497_v57 = vpop.permute.xlu0 %3496 }
 0x4a1   : > { %3570 = vst.msk [vmem:[#allocation2 + $0x330] sm:$0xff] %vm942_vm6, %v3497_v57  ;;  %v4470_v41 = vld [vmem:[#allocation2 + $0x350] sm:$0x3f] }
 0x4a4   : > { %v3067_v13 = vpop.permute.xlu0 %3066  ;;  %v4769_v11 = vpop.f32.mrb[68].mxu1 }
 0x4a5   : > { %3139 = vst.msk [vmem:[#allocation2 + $0x348] sm:$0x3f] %vm542_vm3, %v3067_v13  ;;  %v4770_v21 = vadd.f32 %v7969_v26, %v4769_v11  ;;  %v4771_v3 = vpop.f32.mrb[69].mxu1 }
 0x4a7   : > { %v5015_v52 = vadd.f32 %v7916_v42, %v4770_v21 }
 0x4a8   : > { %v3283_v4 = vpop.permute.xlu0 %3282  ;;  %v4466_v61 = vld [vmem:[#allocation2 + $0x330] sm:$0xff] }
 0x4a9   : > { %v5165_v18 = vadd.f32 %v5129_v56, %v5015_v52  ;;  %3355 = vst.msk [vmem:[#allocation2 + $0x348] sm:$0x3f] %vm760_vm5, %v3283_v4  ;;  %4858 = vmatmul.mubr.f32.gmra.mrb[104].mxu1 %v4466_v61 }
 0x4aa   : > { %4862 = vmatprep.mubr.f32.mxu1 %v4470_v41 }
 0x4ab   : > { %5201 = vst.msk [vmem:[%s7982_s14 + $0x80] sm:$0xff] %vm288_vm0, %v5165_v18 }
 0x4ac   : > { %v3499_v53 = vpop.permute.xlu0 %3498 }
 0x4ad   : > { %3571 = vst.msk [vmem:[#allocation2 + $0x348] sm:$0x3f] %vm978_vm7, %v3499_v53 }
 0x4b0   : > { %v4774_v10 = vpop.f32.mrb[70].mxu1 }
 0x4b1   : > { %v4775_v62 = vadd.f32 %v7969_v26, %v4774_v10  ;;  %v4776_v8 = vpop.f32.mrb[71].mxu1 }
 0x4b3   : > { %v5020_v42 = vadd.f32 %v7914_v54, %v4775_v62 }
 0x4b4   : > { %v4469_v15 = vld [vmem:[#allocation2 + $0x348] sm:$0x3f] }
 0x4b5   : > { %v5166_v50 = vadd.f32 %v5130_v22, %v5020_v42  ;;  %4863 = vmatmul.mubr.f32.gmra.mrb[106].mxu1 %v4469_v15 }
 0x4b6   : > { %5542 = vmatprep.mubr.msk.f32.mxu1 %vm288_vm0, %v4432_v34 }
 0x4b7   : > { %5202 = vst.msk [vmem:[%s7982_s14 + $0x88] sm:$0xff] %vm288_vm0, %v5166_v50 }
 0x4b9   : > { %5543 = vmatmul.mubr.msk.f32.vlgmr.msra.gmra.mrb[108].mxu1 %vm288_vm0, %v4435_v19 }
 0x4ba   : > { %5545 = vmatprep.mubr.msk.f32.mxu1 %vm288_vm0, %v4438_v51 }
 0x4bc   : > { %v4779_v33 = vpop.f32.mrb[72].mxu1 }
 0x4bd   : > { %v4780_v54 = vadd.f32 %v7969_v26, %v4779_v33  ;;  %v4781_v28 = vpop.f32.mrb[73].mxu1  ;;  %5546 = vmatmul.mubr.msk.f32.gmra.mrb[110].mxu1 %vm288_vm0, %v4441_v1  ;;  %v4453_v26 = vld [vmem:[#allocation2 + $0x2c8] sm:$0xff] }
 0x4be   : > { %5548 = vmatprep.mubr.msk.f32.mxu1 %vm288_vm0, %v4444_v0  ;;  %v5136_v28 = vld [vmem:[%s5762_s26 + $0xcb] sm:$0xff] }
 0x4bf   : > { %v5025_v17 = vadd.f32 %v7932_v30, %v4780_v54  ;;  %v8238_v30 = vld [vmem:[%s8333_s5] ss:$0 sm:$0xff] }
 0x4c1   : > { %v5167_v45 = vadd.f32 %v5131_v14, %v5025_v17  ;;  %5549 = vmatmul.mubr.msk.f32.gmra.mrb[112].mxu1 %vm288_vm0, %v4447_v29  ;;  %v5135_v17 = vld [vmem:[%s5762_s26 + $0xc3] sm:$0xff] }
 0x4c2   : > { %5551 = vmatprep.mubr.msk.f32.mxu1 %vm288_vm0, %v4450_v12 }
 0x4c3   : > { %5203 = vst.msk [vmem:[%s7982_s14 + $0x90] sm:$0xff] %vm288_vm0, %v5167_v45 }
 0x4c5   : > { %5552 = vmatmul.mubr.msk.f32.gmra.mrb[114].mxu1 %vm288_vm0, %v4453_v26 }
 0x4c6   : > { %5554 = vmatprep.mubr.msk.f32.mxu1 %vm288_vm0, %v4456_v49 }
 0x4c8   : > { %v4784_v39 = vpop.f32.mrb[74].mxu1 }
 0x4c9   : > { %v4785_v63 = vadd.f32 %v8238_v30, %v4784_v39  ;;  %v4786_v5 = vpop.f32.mrb[75].mxu1  ;;  %5555 = vmatmul.mubr.msk.f32.gmra.mrb[116].mxu1 %vm288_vm0, %v4459_v9  ;;  %v5138_v9 = vld [vmem:[%s5762_s26 + $0xdb] sm:$0xff] }
 0x4ca   : > { %5557 = vmatprep.mubr.msk.f32.mxu1 %vm288_vm0, %v4462_v16  ;;  %v5137_v16 = vld [vmem:[%s5762_s26 + $0xd3] sm:$0xff] }
 0x4cb   : > { %v5030_v43 = vadd.f32 %v7930_v35, %v4785_v63 }
 0x4cd   : > { %v5168_v2 = vadd.f32 %v5132_v25, %v5030_v43  ;;  %5558 = vmatmul.mubr.msk.f32.gmra.mrb[118].mxu1 %vm288_vm0, %v4465_v48 }
 0x4ce   : > { %5560 = vmatprep.mubr.msk.f32.mxu1 %vm288_vm0, %v4468_v40 }
 0x4cf   : > { %5204 = vst.msk [vmem:[%s7982_s14 + $0x98] sm:$0xff] %vm288_vm0, %v5168_v2 }
 0x4d1   : > { %5561 = vmatmul.mubr.msk.f32.gmra.mrb[120].mxu1 %vm288_vm0, %v4471_v60 }
 0x4d4   : > { %v4789_v46 = vpop.f32.mrb[76].mxu1 }
 0x4d5   : > { %v4790_v36 = vadd.f32 %v8238_v30, %v4789_v46  ;;  %v4791_v20 = vpop.f32.mrb[77].mxu1  ;;  %v5140_v46 = vld [vmem:[%s5762_s26 + $0xeb] sm:$0xff] }
 0x4d7   : > { %v5035_v35 = vadd.f32 %v7948_v32, %v4790_v36 }
 0x4d9   : > { %v5169_v6 = vadd.f32 %v5133_v58, %v5035_v35  ;;  %v5139_v58 = vld [vmem:[%s5762_s26 + $0xe3] sm:$0xff] }
 0x4db   : > { %5205 = vst.msk [vmem:[%s7982_s14 + $0xa0] sm:$0xff] %vm288_vm0, %v5169_v6 }
 0x4e0   : > { %v4794_v24 = vpop.f32.mrb[78].mxu1 }
 0x4e1   : > { %v4795_v27 = vadd.f32 %v8238_v30, %v4794_v24  ;;  %v4796_v55 = vpop.f32.mrb[79].mxu1 }
 0x4e3   : > { %v5040_v47 = vadd.f32 %v7946_v59, %v4795_v27 }
 0x4e5   : > { %v5170_v23 = vadd.f32 %v5134_v7, %v5040_v47  ;;  %v5142_v47 = vld [vmem:[%s5762_s26 + $0xfb] sm:$0xff] }
 0x4e7   : > { %5206 = vst.msk [vmem:[%s7982_s14 + $0xa8] sm:$0xff] %vm288_vm0, %v5170_v23 }
 0x4ec   : > { %v4799_v44 = vpop.f32.mrb[80].mxu1 }
 0x4ed   : > { %v4801_v31 = vpop.f32.mrb[81].mxu1  ;;  %v4800_v1 = vadd.f32 %v8238_v30, %v4799_v44 }
 0x4ee   : > { %v5141_v31 = vld [vmem:[%s5762_s26 + $0xf3] sm:$0xff] }
 0x4f8   : > { %v4804_v37 = vpop.f32.mrb[82].mxu1 }
 0x4f9   : > { %v4806_v38 = vpop.f32.mrb[83].mxu1  ;;  %v4805_v33 = vadd.f32 %v8238_v30, %v4804_v37 }
 0x504   : > { %v4809_v57 = vpop.f32.mrb[84].mxu1 }
 0x505   : > { %v4811_v13 = vpop.f32.mrb[85].mxu1  ;;  %v4810_v26 = vadd.f32 %v8238_v30, %v4809_v57 }
 0x510   : > { %v4814_v32 = vpop.f32.mrb[86].mxu1 }
 0x511   : > { %v4816_v11 = vpop.f32.mrb[87].mxu1  ;;  %v4815_v45 = vadd.f32 %v8238_v30, %v4814_v32 }
 0x51c   : > { %v4819_v21 = vpop.f32.mrb[88].mxu1 }
 0x51d   : > { %v4821_v3 = vpop.f32.mrb[89].mxu1  ;;  %v4820_v48 = vadd.f32 %v8238_v30, %v4819_v21  ;;  %v5144_v21 = vld [vmem:[%s5762_s26 + $0x10b] sm:$0xff] }
 0x528   : > { %v4824_v56 = vpop.f32.mrb[90].mxu1 }
 0x529   : > { %v4826_v52 = vpop.f32.mrb[91].mxu1  ;;  %v4825_v43 = vadd.f32 %v8238_v30, %v4824_v56 }
 0x52a   : > { %v5143_v52 = vld [vmem:[%s5762_s26 + $0x103] sm:$0xff] }
 0x534   : > { %v4829_v41 = vpop.f32.mrb[92].mxu1 }
 0x535   : > { %v4831_v4 = vpop.f32.mrb[93].mxu1  ;;  %v4830_v27 = vadd.f32 %v8238_v30, %v4829_v41 }
 0x540   : > { %v4834_v61 = vpop.f32.mrb[94].mxu1 }
 0x541   : > { %v4836_v18 = vpop.f32.mrb[95].mxu1  ;;  %v4835_v6 = vadd.f32 %v8238_v30, %v4834_v61 }
 0x54c   : > { %v4839_v59 = vpop.f32.mrb[96].mxu1 }
 0x54d   : > { %v4841_v53 = vpop.f32.mrb[97].mxu1  ;;  %v4840_v13 = vadd.f32 %v8238_v30, %v4839_v59 }
 0x558   : > { %v4844_v10 = vpop.f32.mrb[98].mxu1 }
 0x559   : > { %v4846_v62 = vpop.f32.mrb[99].mxu1  ;;  %v4845_v38 = vadd.f32 %v8238_v30, %v4844_v10  ;;  %v5146_v10 = vld [vmem:[%s5762_s26 + $0x11b] sm:$0xff] }
 0x564   : > { %v8260_v8 = vpop.f32.mrb[100].mxu1 }
 0x565   : > { %v4851_v22 = vpop.f32.mrb[101].mxu1  ;;  %v4850_v18 = vadd.f32 %v8238_v30, %v8260_v8 }
 0x570   : > { %v4854_v42 = vpop.f32.mrb[102].mxu1 }
 0x571   : > { %v4856_v15 = vpop.f32.mrb[103].mxu1  ;;  %v4855_v4 = vadd.f32 %v8238_v30, %v4854_v42 }
 0x572   : > { %v5145_v15 = vld [vmem:[%s5762_s26 + $0x113] sm:$0xff] }
 0x57c   : > { %v8262_v50 = vpop.f32.mrb[104].mxu1 }
 0x57d   : > { %v4861_v34 = vpop.f32.mrb[105].mxu1 }
 0x588   : > { %v8264_v19 = vpop.f32.mrb[106].mxu1 }
 0x589   : > { %v4866_v51 = vpop.f32.mrb[107].mxu1  ;;  %v4865_v34 = vadd.f32 %v8238_v30, %v8264_v19 }
 0x58a   : > { %v4860_v51 = vadd.f32 %v8238_v30, %v8262_v50 }
 0x58c   : > { %v5544_v54 = vpop.f32.mrb[108].mxu1 }
 0x58d   : > { %v5050_v0 = vadd.f32 %v5544_v54, %v4805_v33  ;;  %v5044_v14 = vpop.f32.mrb[109].mxu1  ;;  %v5148_v54 = vld [vmem:[%s5762_s26 + $0x12b] sm:$0x3f] }
 0x58e   : > { %v5045_v29 = vadd.f32 %v5044_v14, %v4800_v1  ;;  %v5147_v14 = vld [vmem:[%s5762_s26 + $0x123] sm:$0xff] }
 0x58f   : > { %v5172_v12 = vadd.f32 %v5136_v28, %v5050_v0 }
 0x590   : > { %v5171_v49 = vadd.f32 %v5135_v17, %v5045_v29  ;;  %v5547_v39 = vpop.f32.mrb[110].mxu1 }
 0x591   : > { %5208 = vst.msk [vmem:[%s7982_s14 + $0xb8] sm:$0xff] %vm288_vm0, %v5172_v12  ;;  %v5060_v63 = vadd.f32 %v5547_v39, %v4815_v45  ;;  %v5054_v5 = vpop.f32.mrb[111].mxu1 }
 0x592   : > { %5207 = vst.msk [vmem:[%s7982_s14 + $0xb0] sm:$0xff] %vm288_vm0, %v5171_v49  ;;  %v5055_v25 = vadd.f32 %v5054_v5, %v4810_v26 }
 0x593   : > { %v5174_v40 = vadd.f32 %v5138_v9, %v5060_v63 }
 0x594   : > { %v5173_v2 = vadd.f32 %v5137_v16, %v5055_v25  ;;  %v5550_v60 = vpop.f32.mrb[112].mxu1 }
 0x595   : > { %5210 = vst.msk [vmem:[%s7982_s14 + $0xc8] sm:$0xff] %vm288_vm0, %v5174_v40  ;;  %v5070_v36 = vadd.f32 %v5550_v60, %v4825_v43  ;;  %v5064_v20 = vpop.f32.mrb[113].mxu1 }
 0x596   : > { %5209 = vst.msk [vmem:[%s7982_s14 + $0xc0] sm:$0xff] %vm288_vm0, %v5173_v2  ;;  %v5065_v35 = vadd.f32 %v5064_v20, %v4820_v48 }
 0x597   : > { %v5176_v24 = vadd.f32 %v5140_v46, %v5070_v36 }
 0x598   : > { %v5175_v55 = vadd.f32 %v5139_v58, %v5065_v35  ;;  %v5553_v7 = vpop.f32.mrb[114].mxu1 }
 0x599   : > { %5212 = vst.msk [vmem:[%s7982_s14 + $0xd8] sm:$0xff] %vm288_vm0, %v5176_v24  ;;  %v5080_v23 = vadd.f32 %v5553_v7, %v4835_v6  ;;  %v5074_v44 = vpop.f32.mrb[115].mxu1 }
 0x59a   : > { %5211 = vst.msk [vmem:[%s7982_s14 + $0xd0] sm:$0xff] %vm288_vm0, %v5175_v55  ;;  %v5075_v37 = vadd.f32 %v5074_v44, %v4830_v27 }
 0x59b   : > { %v5178_v57 = vadd.f32 %v5142_v47, %v5080_v23 }
 0x59c   : > { %v5177_v32 = vadd.f32 %v5141_v31, %v5075_v37  ;;  %v5556_v11 = vpop.f32.mrb[116].mxu1 }
 0x59d   : > { %5214 = vst.msk [vmem:[%s7982_s14 + $0xe8] sm:$0xff] %vm288_vm0, %v5178_v57  ;;  %v5090_v3 = vadd.f32 %v5556_v11, %v4845_v38  ;;  %v5084_v56 = vpop.f32.mrb[117].mxu1 }
 0x59e   : > { %5213 = vst.msk [vmem:[%s7982_s14 + $0xe0] sm:$0xff] %vm288_vm0, %v5177_v32  ;;  %v5085_v41 = vadd.f32 %v5084_v56, %v4840_v13 }
 0x59f   : > { %v5180_v61 = vadd.f32 %v5144_v21, %v5090_v3 }
 0x5a0   : > { %v5179_v59 = vadd.f32 %v5143_v52, %v5085_v41  ;;  %v5559_v53 = vpop.f32.mrb[118].mxu1 }
 0x5a1   : > { %5216 = vst.msk [vmem:[%s7982_s14 + $0xf8] sm:$0xff] %vm288_vm0, %v5180_v61  ;;  %v5100_v62 = vadd.f32 %v5559_v53, %v4855_v4  ;;  %v5094_v22 = vpop.f32.mrb[119].mxu1 }
 0x5a2   : > { %5215 = vst.msk [vmem:[%s7982_s14 + $0xf0] sm:$0xff] %vm288_vm0, %v5179_v59  ;;  %v5095_v42 = vadd.f32 %v5094_v22, %v4850_v18 }
 0x5a3   : > { %v5182_v8 = vadd.f32 %v5146_v10, %v5100_v62 }
 0x5a4   : > { %v5181_v33 = vadd.f32 %v5145_v15, %v5095_v42  ;;  %v5562_v1 = vpop.f32.mrb[120].mxu1 }
 0x5a5   : > { %5218 = vst.msk [vmem:[%s7982_s14 + $0x108] sm:$0xff] %vm288_vm0, %v5182_v8  ;;  %v5110_v28 = vadd.f32 %v5562_v1, %v4865_v34  ;;  %v5104_v0 = vpop.f32.mrb[121].mxu1 }
 0x5a6   : > { %5217 = vst.msk [vmem:[%s7982_s14 + $0x100] sm:$0xff] %vm288_vm0, %v5181_v33  ;;  %v5105_v17 = vadd.f32 %v5104_v0, %v4860_v51 }
 0x5a7   : > { %v5184_v29 = vadd.f32 %v5148_v54, %v5110_v28 }
 0x5a8   : > { %v5183_v45 = vadd.f32 %v5147_v14, %v5105_v17 }
 0x5a9   : > { %5220 = vst.msk [vmem:[%s7982_s14 + $0x118] sm:$0x3f] %vm324_vm1, %v5184_v29 }
 0x5aa   : > { %5219 = vst.msk [vmem:[%s7982_s14 + $0x110] sm:$0xff] %vm288_vm0, %v5183_v45 }
 0x5ab PF: > { %s16_s21 = sadd.s32 1, %s5705_s21  }
 0x5ac   : > { %p13_p4 = scmp.ge.s32.totalorder %s16_s21, 4  }
 0x5ae   :  { %15 = sbr.rel (!%p13_p4) target bundleno = 1 (0x1), region = 74 }

</bundles_post_ra>
